<compile_context>
chip_gen: v7x
topology: tpu7x:2x2x1
jax: 0.10.0
libtpu: 0.0.40
codegen_flags: <defaults>
</compile_context>

<pallas_src>
import functools

import jax
import jax.numpy as jnp
from jax.experimental import pallas as pl
from jax.experimental.pallas import tpu as pltpu


def _residual_block_kernel(*refs, HW, W, HAS_SC, EPS=1e-5):
    if HAS_SC:
        (x_ref, temb_ref, mask_ref,
         g1_ref, b1_ref, m1cg_ref, m1gc_ref, w1_ref,
         g2_ref, b2_ref, m2cg_ref, m2gc_ref, w2_ref, cb2_ref,
         sw_ref, sb_ref, o_ref) = refs
    else:
        (x_ref, temb_ref, mask_ref,
         g1_ref, b1_ref, m1cg_ref, m1gc_ref, w1_ref,
         g2_ref, b2_ref, m2cg_ref, m2gc_ref, w2_ref, cb2_ref, o_ref) = refs
        sw_ref = sb_ref = None

    def swish(v):
        # x * sigmoid(x); the reciprocal goes to the EUP slot (approx recip),
        # keeping the VALU free in the VPU-bound small-C stages.
        return v * pl.reciprocal(1.0 + jnp.exp(-v), approx=True)

    def group_norm(v, gamma, beta, mem_cg, mem_gc):
        # v: [C, HW] f32.  mem_gc[g, c] = 1/(cpg*HW) if channel c is in group
        # g (else 0); mem_cg[c, g] = 1 membership.  mem_cg @ (mem_gc @ s) is
        # the per-group mean broadcast back to every channel of the group --
        # numerically identical to the dense [C,C] averaging matrix but only
        # 2*C*G f32 of VMEM.  Centered (two-pass) biased variance, eps=1e-5 ->
        # exactly torch.nn.GroupNorm.  All stats in f32.
        s1 = jnp.sum(v, axis=1, keepdims=True)                            # [C, 1]
        mean = jnp.dot(mem_cg,
                       jnp.dot(mem_gc, s1, preferred_element_type=jnp.float32),
                       preferred_element_type=jnp.float32)                # [C, 1]
        d = v - mean
        s2 = jnp.sum(d * d, axis=1, keepdims=True)                        # [C, 1]
        var = jnp.dot(mem_cg,
                      jnp.dot(mem_gc, s2, preferred_element_type=jnp.float32),
                      preferred_element_type=jnp.float32)                 # [C, 1]
        inv = jax.lax.rsqrt(var + EPS)
        return d * (inv * gamma) + beta

    def conv3x3(v, w_ref):
        # v: [C, HW] f32 (post-activation).  Per kernel row ky, build the 3
        # shifted taps, cast each to bf16 immediately and mask in bf16 (the
        # center tap's mask is all ones and is skipped), stack to a
        # [3C, HW] bf16 slab and accumulate one MXU dot per row:
        #   acc += w_ref[ky] ([Co, 3C] bf16) @ slab ([3C, HW] bf16)  (f32 acc)
        # Shifts are lane rotates (XLU); masks come from the VMEM-resident
        # mask_ref (no in-kernel iotas).  Whenever mask==1 the shifted flat
        # index lies in [0, HW), so the roll wrap-around never leaks.
        acc = None
        for ky in range(3):
            taps = []
            for kx in range(3):
                k = ky * 3 + kx
                d = (ky - 1) * W + (kx - 1)
                shifted = v if d == 0 else pltpu.roll(v, shift=(-d) % HW, axis=1)
                tap = shifted.astype(jnp.bfloat16)
                if k != 4:                      # center tap: mask is all ones
                    tap = tap * mask_ref[k:k + 1, :].astype(jnp.bfloat16)
                taps.append(tap)
            slab = jnp.concatenate(taps, axis=0)                          # [3C, HW] bf16
            part = jnp.dot(w_ref[ky], slab,
                           preferred_element_type=jnp.float32)            # [Co, HW] f32
            acc = part if acc is None else acc + part
        return acc

    x = x_ref[0]                                                          # [Ci, HW] f32

    # h = conv1(act1(norm1(x)))
    h = group_norm(x, g1_ref[...], b1_ref[...], m1cg_ref[...], m1gc_ref[...])
    h = conv3x3(swish(h), w1_ref)                                         # [Co, HW]

    # h += time_emb(time_act(t))[:, :, None, None]
    # (projection + conv1 bias folded wrapper-side into temb_ref.)
    h = h + temb_ref[0]                                                   # [Co,1] bcast

    # h = conv2(dropout(act2(norm2(h))))
    h = group_norm(h, g2_ref[...], b2_ref[...], m2cg_ref[...], m2gc_ref[...])
    # TODO(synk): nn.Dropout(0.1) implemented as eval-mode identity (no PRNG masking).
    h = conv3x3(swish(h), w2_ref) + cb2_ref[...]

    # shortcut: 1x1 conv when C_in != C_out, identity otherwise (wrapper branch).
    if HAS_SC:
        sc = jnp.dot(sw_ref[...], x.astype(jnp.bfloat16),
                     preferred_element_type=jnp.float32) + sb_ref[...]
    else:
        sc = x

    o_ref[0] = (h + sc).astype(o_ref.dtype)


def residual_block(x, t, params, n_groups):
    """x: [B, C_in, H, W] (NCHW, like the PyTorch module); t: [B, time_channels]."""
    B, C_in, H, Wd = x.shape
    HW = H * Wd
    C_out = params["conv1_w"].shape[-1]
    has_sc = C_in != C_out
    assert C_in % n_groups == 0 and C_out % n_groups == 0, \
        "GroupNorm requires channels divisible by n_groups"
    # NOTE: if HW is not a multiple of 128 the lane axis is padded; only
    # 128-multiple HW has been validated with the roll/mask tap construction.

    # Wrapper-side flatten (free layout plumbing, no in-kernel relayouts).
    x_flat = x.reshape(B, C_in, HW).astype(jnp.float32)

    # Time-embedding projection hoisted out of the serial per-batch loop:
    # temb = swish(t) @ time_w + time_b + conv1_b   (conv1 bias folded in).
    t_sw = t * jax.nn.sigmoid(t)
    temb = t_sw @ params["time_w"] + params["time_b"] + params["conv1_b"]
    temb_col = temb.reshape(B, C_out, 1).astype(jnp.float32)              # [B, Co, 1]

    # 3x3 "same"-padding validity masks, one [HW] row per tap (f32 in VMEM,
    # cast to bf16 per-row inside the kernel right before the bf16 multiply).
    row = jnp.arange(HW, dtype=jnp.int32) // Wd
    col = jnp.arange(HW, dtype=jnp.int32) % Wd
    masks = []
    for ky in range(3):
        for kx in range(3):
            dy, dx = ky - 1, kx - 1
            masks.append((row + dy >= 0) & (row + dy < H)
                         & (col + dx >= 0) & (col + dx < Wd))
    mask9 = jnp.stack(masks, axis=0).astype(jnp.float32)                  # [9, HW]

    # Factored group-membership matrices for GroupNorm statistics.
    def group_members(c):
        cpg = c // n_groups
        g = jnp.arange(c, dtype=jnp.int32) // cpg
        onehot = (g[:, None] == jnp.arange(n_groups, dtype=jnp.int32)[None, :]
                  ).astype(jnp.float32)                                   # [C, G]
        return onehot, (onehot / float(cpg * HW)).T                       # [C,G], [G,C]

    mem1_cg, mem1_gc = group_members(C_in)
    mem2_cg, mem2_gc = group_members(C_out)

    # Conv weights HWIO [3,3,Ci,Co] -> [3, Co, 3*Ci] (one K=3*Ci chunk per ky),
    # K ordering (kx, ci) matching the in-kernel tap stack.
    def conv_weight_rows(w):
        kh, kw, ci, co = w.shape
        return (jnp.transpose(w, (0, 3, 1, 2))        # [kh, Co, kw, Ci]
                .reshape(kh, co, kw * ci)
                .astype(jnp.bfloat16))

    col_f32 = lambda v: v.reshape(-1, 1).astype(jnp.float32)

    inputs = [
        x_flat, temb_col, mask9,
        col_f32(params["gn1_g"]), col_f32(params["gn1_b"]), mem1_cg, mem1_gc,
        conv_weight_rows(params["conv1_w"]),
        col_f32(params["gn2_g"]), col_f32(params["gn2_b"]), mem2_cg, mem2_gc,
        conv_weight_rows(params["conv2_w"]), col_f32(params["conv2_b"]),
    ]
    if has_sc:
        inputs += [params["sc_w"].T.astype(jnp.bfloat16),                 # [Co, Ci]
                   col_f32(params["sc_b"])]

    # VMEM budget sized from the actual buffers (with headroom), clamped so it
    # is valid on every chip generation (v7x has 64 MiB physical VMEM).
    const_bytes = sum(int(a.size) * a.dtype.itemsize for a in inputs[2:])
    io_bytes = (C_in * HW + C_out * HW + C_out) * 4          # per-step x / out / temb
    tap_bytes = 3 * max(C_in, C_out) * HW * 2                # bf16 tap slab (one ky row)
    tmp_bytes = (C_in + 3 * C_out) * HW * 4 + tap_bytes      # x, h, GN temps, conv acc
    vmem_limit = 2 * io_bytes + 2 * const_bytes + 2 * tmp_bytes
    vmem_limit = int(min(64 * 2**20, max(32 * 2**20, vmem_limit)))

    kernel = functools.partial(_residual_block_kernel,
                               HW=HW, W=Wd, HAS_SC=has_sc)

    def build_call(const_pipeline_mode):
        def const_spec(a):
            n = a.ndim
            idx = lambda b, n=n: (0,) * n
            if const_pipeline_mode is None:
                return pl.BlockSpec(a.shape, idx)
            return pl.BlockSpec(a.shape, idx, pipeline_mode=const_pipeline_mode)

        in_specs = [
            pl.BlockSpec((1, C_in, HW), lambda b: (b, 0, 0)),             # x
            pl.BlockSpec((1, C_out, 1), lambda b: (b, 0, 0)),             # temb
        ] + [const_spec(a) for a in inputs[2:]]

        return pl.pallas_call(
            kernel,
            out_shape=jax.ShapeDtypeStruct((B, C_out, HW), jnp.float32),
            grid=(B,),
            in_specs=in_specs,
            out_specs=pl.BlockSpec((1, C_out, HW), lambda b: (b, 0, 0)),  # lane-dense
            compiler_params=pltpu.CompilerParams(
                dimension_semantics=("parallel",),
                vmem_limit_bytes=vmem_limit),
        )

    try:
        # Single-buffer the grid-invariant operands (weights, masks, GN params):
        # constant-index blocks don't need double buffering.
        out = build_call(pl.Buffered(1))(*inputs)
    except Exception:
        # Fallback for JAX versions without single-buffer pipeline_mode support.
        out = build_call(None)(*inputs)

    return out.reshape(B, C_out, H, Wd)


def residual_block_reference(x, t, params, n_groups, eps=1e-5):
    """Pure-JAX f32 reference with PyTorch (NCHW) semantics."""
    def swish(v):
        return v * jax.nn.sigmoid(v)

    def group_norm(v, gamma, beta):
        B, C, H, W = v.shape
        vg = v.reshape(B, n_groups, C // n_groups, H, W)
        mean = vg.mean(axis=(2, 3, 4), keepdims=True)
        var = vg.var(axis=(2, 3, 4), keepdims=True)
        vn = ((vg - mean) / jnp.sqrt(var + eps)).reshape(B, C, H, W)
        return vn * gamma.reshape(1, C, 1, 1) + beta.reshape(1, C, 1, 1)

    def conv3x3(v, w, b):
        y = jax.lax.conv_general_dilated(
            v, w, window_strides=(1, 1), padding=((1, 1), (1, 1)),
            dimension_numbers=("NCHW", "HWIO", "NCHW"))
        return y + b.reshape(1, -1, 1, 1)

    h = conv3x3(swish(group_norm(x, params["gn1_g"], params["gn1_b"])),
                params["conv1_w"], params["conv1_b"])
    temb = swish(t) @ params["time_w"] + params["time_b"]
    h = h + temb[:, :, None, None]
    h = conv3x3(swish(group_norm(h, params["gn2_g"], params["gn2_b"])),
                params["conv2_w"], params["conv2_b"])
    if "sc_w" in params:
        sc = (jnp.einsum("bchw,co->bohw", x, params["sc_w"])
              + params["sc_b"].reshape(1, -1, 1, 1))
    else:
        sc = x
    return h + sc


if __name__ == "__main__":
    B, H, W = 2, 16, 16
    C_IN, C_OUT, T_CH, N_GROUPS = 8, 16, 32, 4

    key = jax.random.PRNGKey(0)
    ks = jax.random.split(key, 10)
    x = jax.random.normal(ks[0], (B, C_IN, H, W), jnp.float32)
    t = jax.random.normal(ks[1], (B, T_CH), jnp.float32)

    def init(k, shape, scale=0.1):
        return scale * jax.random.normal(k, shape, jnp.float32)

    params = {
        # GroupNorm params use PyTorch default init (weight=1, bias=0).
        "gn1_g": jnp.ones((C_IN,), jnp.float32),
        "gn1_b": jnp.zeros((C_IN,), jnp.float32),
        "conv1_w": init(ks[2], (3, 3, C_IN, C_OUT)),      # HWIO
        "conv1_b": init(ks[3], (C_OUT,)),
        "time_w": init(ks[4], (T_CH, C_OUT)),
        "time_b": init(ks[5], (C_OUT,)),
        "gn2_g": jnp.ones((C_OUT,), jnp.float32),
        "gn2_b": jnp.zeros((C_OUT,), jnp.float32),
        "conv2_w": init(ks[6], (3, 3, C_OUT, C_OUT)),     # HWIO
        "conv2_b": init(ks[7], (C_OUT,)),
        # C_IN != C_OUT here, so the module has a 1x1-conv shortcut.
        "sc_w": init(ks[8], (C_IN, C_OUT)),
        "sc_b": init(ks[9], (C_OUT,)),
    }

    out = jax.block_until_ready(residual_block(x, t, params, N_GROUPS))
    ref = residual_block_reference(x, t, params, N_GROUPS)

    assert out.shape == (B, C_OUT, H, W)
    max_err = float(jnp.max(jnp.abs(out - ref)))
    # Kernel runs the conv/linear matmuls with bf16 operands (f32 accumulate)
    # and an approx-reciprocal sigmoid; the reference is pure f32 -> allow a
    # few 1e-2 of absolute slack.
    assert max_err < 8e-2, f"mismatch vs reference, max abs err = {max_err}"
    print("KERNEL_OK")
</pallas_src>

<mosaic_0001>
module attributes {stable_mosaic.version = 11 : i64} {
  func.func @_residual_block_kernel(%arg0: i32, %arg1: memref<1x8x256xf32, #tpu.memory_space<vmem>>, %arg2: memref<1x16x1xf32, #tpu.memory_space<vmem>>, %arg3: memref<9x256xf32, #tpu.memory_space<vmem>>, %arg4: memref<8x1xf32, #tpu.memory_space<vmem>>, %arg5: memref<8x1xf32, #tpu.memory_space<vmem>>, %arg6: memref<8x4xf32, #tpu.memory_space<vmem>>, %arg7: memref<4x8xf32, #tpu.memory_space<vmem>>, %arg8: memref<3x16x24xbf16, #tpu.memory_space<vmem>>, %arg9: memref<16x1xf32, #tpu.memory_space<vmem>>, %arg10: memref<16x1xf32, #tpu.memory_space<vmem>>, %arg11: memref<16x4xf32, #tpu.memory_space<vmem>>, %arg12: memref<4x16xf32, #tpu.memory_space<vmem>>, %arg13: memref<3x16x48xbf16, #tpu.memory_space<vmem>>, %arg14: memref<16x1xf32, #tpu.memory_space<vmem>>, %arg15: memref<16x8xbf16, #tpu.memory_space<vmem>>, %arg16: memref<16x1xf32, #tpu.memory_space<vmem>>, %arg17: memref<1x16x256xf32, #tpu.memory_space<vmem>>) attributes {dimension_semantics = [#tpu.dimension_semantics<parallel>], iteration_bounds = array<i64: 2>, scalar_prefetch = 0 : i64, scratch_operands = 0 : i64, tpu.core_type = #tpu.core_type<tc>, window_params = [{transform_indices = @transform_0, window_bounds = array<i64: 1, 8, 256>}, {transform_indices = @transform_1, window_bounds = array<i64: 1, 16, 1>}, {pipeline_mode = #tpu.pipeline_mode<synchronous>, transform_indices = @transform_2, window_bounds = array<i64: 9, 256>}, {pipeline_mode = #tpu.pipeline_mode<synchronous>, transform_indices = @transform_3, window_bounds = array<i64: 8, 1>}, {pipeline_mode = #tpu.pipeline_mode<synchronous>, transform_indices = @transform_4, window_bounds = array<i64: 8, 1>}, {pipeline_mode = #tpu.pipeline_mode<synchronous>, transform_indices = @transform_5, window_bounds = array<i64: 8, 4>}, {pipeline_mode = #tpu.pipeline_mode<synchronous>, transform_indices = @transform_6, window_bounds = array<i64: 4, 8>}, {pipeline_mode = #tpu.pipeline_mode<synchronous>, transform_indices = @transform_7, window_bounds = array<i64: 3, 16, 24>}, {pipeline_mode = #tpu.pipeline_mode<synchronous>, transform_indices = @transform_8, window_bounds = array<i64: 16, 1>}, {pipeline_mode = #tpu.pipeline_mode<synchronous>, transform_indices = @transform_9, window_bounds = array<i64: 16, 1>}, {pipeline_mode = #tpu.pipeline_mode<synchronous>, transform_indices = @transform_10, window_bounds = array<i64: 16, 4>}, {pipeline_mode = #tpu.pipeline_mode<synchronous>, transform_indices = @transform_11, window_bounds = array<i64: 4, 16>}, {pipeline_mode = #tpu.pipeline_mode<synchronous>, transform_indices = @transform_12, window_bounds = array<i64: 3, 16, 48>}, {pipeline_mode = #tpu.pipeline_mode<synchronous>, transform_indices = @transform_13, window_bounds = array<i64: 16, 1>}, {pipeline_mode = #tpu.pipeline_mode<synchronous>, transform_indices = @transform_14, window_bounds = array<i64: 16, 8>}, {pipeline_mode = #tpu.pipeline_mode<synchronous>, transform_indices = @transform_15, window_bounds = array<i64: 16, 1>}, {transform_indices = @transform_16, window_bounds = array<i64: 1, 16, 256>}]} {
    %c0 = arith.constant 0 : index
    %c0_0 = arith.constant 0 : index
    %c0_1 = arith.constant 0 : index
    %0 = vector.load %arg1[%c0, %c0_0, %c0_1] : memref<1x8x256xf32, #tpu.memory_space<vmem>>, vector<1x8x256xf32>
    %1 = vector.shape_cast %0 : vector<1x8x256xf32> to vector<8x256xf32>
    %c0_2 = arith.constant 0 : index
    %c0_3 = arith.constant 0 : index
    %2 = vector.load %arg4[%c0_2, %c0_3] : memref<8x1xf32, #tpu.memory_space<vmem>>, vector<8x1xf32>
    %c0_4 = arith.constant 0 : index
    %c0_5 = arith.constant 0 : index
    %3 = vector.load %arg5[%c0_4, %c0_5] : memref<8x1xf32, #tpu.memory_space<vmem>>, vector<8x1xf32>
    %c0_6 = arith.constant 0 : index
    %c0_7 = arith.constant 0 : index
    %4 = vector.load %arg6[%c0_6, %c0_7] : memref<8x4xf32, #tpu.memory_space<vmem>>, vector<8x4xf32>
    %c0_8 = arith.constant 0 : index
    %c0_9 = arith.constant 0 : index
    %5 = vector.load %arg7[%c0_8, %c0_9] : memref<4x8xf32, #tpu.memory_space<vmem>>, vector<4x8xf32>
    %cst = arith.constant dense<0.000000e+00> : vector<8xf32>
    %6 = vector.multi_reduction <add>, %1, %cst [1] : vector<8x256xf32> to vector<8xf32>
    %7 = vector.shape_cast %6 : vector<8xf32> to vector<8x1xf32>
    %cst_10 = arith.constant dense<0.000000e+00> : vector<4x1xf32>
    %8 = tpu.matmul %5, %7, %cst_10 {dimension_numbers = #tpu.dot_dimension_numbers<[1], [0], [0], [1], [0, 0, 1, 1], [], []>} : vector<4x8xf32>, vector<8x1xf32>, vector<4x1xf32> -> vector<4x1xf32>
    %cst_11 = arith.constant dense<0.000000e+00> : vector<8x1xf32>
    %9 = tpu.matmul %4, %8, %cst_11 {dimension_numbers = #tpu.dot_dimension_numbers<[1], [0], [0], [1], [0, 0, 1, 1], [], []>} : vector<8x4xf32>, vector<4x1xf32>, vector<8x1xf32> -> vector<8x1xf32>
    %10 = vector.broadcast %9 : vector<8x1xf32> to vector<8x256xf32>
    %11 = arith.subf %1, %10 : vector<8x256xf32>
    %12 = arith.mulf %11, %11 : vector<8x256xf32>
    %cst_12 = arith.constant dense<0.000000e+00> : vector<8xf32>
    %13 = vector.multi_reduction <add>, %12, %cst_12 [1] : vector<8x256xf32> to vector<8xf32>
    %14 = vector.shape_cast %13 : vector<8xf32> to vector<8x1xf32>
    %cst_13 = arith.constant dense<0.000000e+00> : vector<4x1xf32>
    %15 = tpu.matmul %5, %14, %cst_13 {dimension_numbers = #tpu.dot_dimension_numbers<[1], [0], [0], [1], [0, 0, 1, 1], [], []>} : vector<4x8xf32>, vector<8x1xf32>, vector<4x1xf32> -> vector<4x1xf32>
    %cst_14 = arith.constant dense<0.000000e+00> : vector<8x1xf32>
    %16 = tpu.matmul %4, %15, %cst_14 {dimension_numbers = #tpu.dot_dimension_numbers<[1], [0], [0], [1], [0, 0, 1, 1], [], []>} : vector<8x4xf32>, vector<4x1xf32>, vector<8x1xf32> -> vector<8x1xf32>
    %cst_15 = arith.constant 9.99999974E-6 : f32
    %17 = vector.broadcast %cst_15 : f32 to vector<8x1xf32>
    %18 = arith.addf %16, %17 : vector<8x1xf32>
    %19 = math.rsqrt %18 : vector<8x1xf32>
    %20 = arith.mulf %19, %2 : vector<8x1xf32>
    %21 = vector.broadcast %20 : vector<8x1xf32> to vector<8x256xf32>
    %22 = arith.mulf %11, %21 : vector<8x256xf32>
    %23 = vector.broadcast %3 : vector<8x1xf32> to vector<8x256xf32>
    %24 = arith.addf %22, %23 : vector<8x256xf32>
    %cst_16 = arith.constant 0.000000e+00 : f32
    %25 = vector.broadcast %cst_16 : f32 to vector<8x256xf32>
    %26 = arith.subf %25, %24 : vector<8x256xf32>
    %27 = math.exp %26 : vector<8x256xf32>
    %cst_17 = arith.constant 1.000000e+00 : f32
    %28 = vector.broadcast %cst_17 : f32 to vector<8x256xf32>
    %29 = arith.addf %28, %27 : vector<8x256xf32>
    %30 = tpu.reciprocal %29 {approx = true} : vector<8x256xf32> -> vector<8x256xf32>
    %31 = arith.mulf %24, %30 : vector<8x256xf32>
    %c17_i32 = arith.constant 17 : i32
    %32 = tpu.dynamic_rotate %31 by %c17_i32 dim 1 : vector<8x256xf32>, i32 -> vector<8x256xf32>
    %33 = arith.truncf %32 : vector<8x256xf32> to vector<8x256xbf16>
    %c0_18 = arith.constant 0 : index
    %c0_19 = arith.constant 0 : index
    %34 = vector.load %arg3[%c0_18, %c0_19] : memref<9x256xf32, #tpu.memory_space<vmem>>, vector<1x256xf32>
    %35 = arith.truncf %34 : vector<1x256xf32> to vector<1x256xbf16>
    %36 = vector.broadcast %35 : vector<1x256xbf16> to vector<8x256xbf16>
    %37 = arith.mulf %33, %36 : vector<8x256xbf16>
    %c16_i32 = arith.constant 16 : i32
    %38 = tpu.dynamic_rotate %31 by %c16_i32 dim 1 : vector<8x256xf32>, i32 -> vector<8x256xf32>
    %39 = arith.truncf %38 : vector<8x256xf32> to vector<8x256xbf16>
    %c1 = arith.constant 1 : index
    %c0_20 = arith.constant 0 : index
    %40 = vector.load %arg3[%c1, %c0_20] : memref<9x256xf32, #tpu.memory_space<vmem>>, vector<1x256xf32>
    %41 = arith.truncf %40 : vector<1x256xf32> to vector<1x256xbf16>
    %42 = vector.broadcast %41 : vector<1x256xbf16> to vector<8x256xbf16>
    %43 = arith.mulf %39, %42 : vector<8x256xbf16>
    %c15_i32 = arith.constant 15 : i32
    %44 = tpu.dynamic_rotate %31 by %c15_i32 dim 1 : vector<8x256xf32>, i32 -> vector<8x256xf32>
    %45 = arith.truncf %44 : vector<8x256xf32> to vector<8x256xbf16>
    %c2 = arith.constant 2 : index
    %c0_21 = arith.constant 0 : index
    %46 = vector.load %arg3[%c2, %c0_21] : memref<9x256xf32, #tpu.memory_space<vmem>>, vector<1x256xf32>
    %47 = arith.truncf %46 : vector<1x256xf32> to vector<1x256xbf16>
    %48 = vector.broadcast %47 : vector<1x256xbf16> to vector<8x256xbf16>
    %49 = arith.mulf %45, %48 : vector<8x256xbf16>
    %50 = tpu.concatenate %37, %43, %49 in 0 : vector<8x256xbf16>, vector<8x256xbf16>, vector<8x256xbf16> -> vector<24x256xbf16>
    %c0_22 = arith.constant 0 : index
    %c0_23 = arith.constant 0 : index
    %c0_24 = arith.constant 0 : index
    %51 = vector.load %arg8[%c0_22, %c0_23, %c0_24] : memref<3x16x24xbf16, #tpu.memory_space<vmem>>, vector<1x16x24xbf16>
    %52 = vector.shape_cast %51 : vector<1x16x24xbf16> to vector<16x24xbf16>
    %cst_25 = arith.constant dense<0.000000e+00> : vector<16x256xf32>
    %53 = tpu.matmul %52, %50, %cst_25 {dimension_numbers = #tpu.dot_dimension_numbers<[1], [0], [0], [1], [0, 0, 1, 1], [], []>} : vector<16x24xbf16>, vector<24x256xbf16>, vector<16x256xf32> -> vector<16x256xf32>
    %c1_i32 = arith.constant 1 : i32
    %54 = tpu.dynamic_rotate %31 by %c1_i32 dim 1 : vector<8x256xf32>, i32 -> vector<8x256xf32>
    %55 = arith.truncf %54 : vector<8x256xf32> to vector<8x256xbf16>
    %c3 = arith.constant 3 : index
    %c0_26 = arith.constant 0 : index
    %56 = vector.load %arg3[%c3, %c0_26] : memref<9x256xf32, #tpu.memory_space<vmem>>, vector<1x256xf32>
    %57 = arith.truncf %56 : vector<1x256xf32> to vector<1x256xbf16>
    %58 = vector.broadcast %57 : vector<1x256xbf16> to vector<8x256xbf16>
    %59 = arith.mulf %55, %58 : vector<8x256xbf16>
    %60 = arith.truncf %31 : vector<8x256xf32> to vector<8x256xbf16>
    %c255_i32 = arith.constant 255 : i32
    %61 = tpu.dynamic_rotate %31 by %c255_i32 dim 1 : vector<8x256xf32>, i32 -> vector<8x256xf32>
    %62 = arith.truncf %61 : vector<8x256xf32> to vector<8x256xbf16>
    %c5 = arith.constant 5 : index
    %c0_27 = arith.constant 0 : index
    %63 = vector.load %arg3[%c5, %c0_27] : memref<9x256xf32, #tpu.memory_space<vmem>>, vector<1x256xf32>
    %64 = arith.truncf %63 : vector<1x256xf32> to vector<1x256xbf16>
    %65 = vector.broadcast %64 : vector<1x256xbf16> to vector<8x256xbf16>
    %66 = arith.mulf %62, %65 : vector<8x256xbf16>
    %67 = tpu.concatenate %59, %60, %66 in 0 : vector<8x256xbf16>, vector<8x256xbf16>, vector<8x256xbf16> -> vector<24x256xbf16>
    %c1_28 = arith.constant 1 : index
    %c0_29 = arith.constant 0 : index
    %c0_30 = arith.constant 0 : index
    %68 = vector.load %arg8[%c1_28, %c0_29, %c0_30] : memref<3x16x24xbf16, #tpu.memory_space<vmem>>, vector<1x16x24xbf16>
    %69 = vector.shape_cast %68 : vector<1x16x24xbf16> to vector<16x24xbf16>
    %cst_31 = arith.constant dense<0.000000e+00> : vector<16x256xf32>
    %70 = tpu.matmul %69, %67, %cst_31 {dimension_numbers = #tpu.dot_dimension_numbers<[1], [0], [0], [1], [0, 0, 1, 1], [], []>} : vector<16x24xbf16>, vector<24x256xbf16>, vector<16x256xf32> -> vector<16x256xf32>
    %71 = arith.addf %53, %70 : vector<16x256xf32>
    %c241_i32 = arith.constant 241 : i32
    %72 = tpu.dynamic_rotate %31 by %c241_i32 dim 1 : vector<8x256xf32>, i32 -> vector<8x256xf32>
    %73 = arith.truncf %72 : vector<8x256xf32> to vector<8x256xbf16>
    %c6 = arith.constant 6 : index
    %c0_32 = arith.constant 0 : index
    %74 = vector.load %arg3[%c6, %c0_32] : memref<9x256xf32, #tpu.memory_space<vmem>>, vector<1x256xf32>
    %75 = arith.truncf %74 : vector<1x256xf32> to vector<1x256xbf16>
    %76 = vector.broadcast %75 : vector<1x256xbf16> to vector<8x256xbf16>
    %77 = arith.mulf %73, %76 : vector<8x256xbf16>
    %c240_i32 = arith.constant 240 : i32
    %78 = tpu.dynamic_rotate %31 by %c240_i32 dim 1 : vector<8x256xf32>, i32 -> vector<8x256xf32>
    %79 = arith.truncf %78 : vector<8x256xf32> to vector<8x256xbf16>
    %c7 = arith.constant 7 : index
    %c0_33 = arith.constant 0 : index
    %80 = vector.load %arg3[%c7, %c0_33] : memref<9x256xf32, #tpu.memory_space<vmem>>, vector<1x256xf32>
    %81 = arith.truncf %80 : vector<1x256xf32> to vector<1x256xbf16>
    %82 = vector.broadcast %81 : vector<1x256xbf16> to vector<8x256xbf16>
    %83 = arith.mulf %79, %82 : vector<8x256xbf16>
    %c239_i32 = arith.constant 239 : i32
    %84 = tpu.dynamic_rotate %31 by %c239_i32 dim 1 : vector<8x256xf32>, i32 -> vector<8x256xf32>
    %85 = arith.truncf %84 : vector<8x256xf32> to vector<8x256xbf16>
    %c8 = arith.constant 8 : index
    %c0_34 = arith.constant 0 : index
    %86 = vector.load %arg3[%c8, %c0_34] : memref<9x256xf32, #tpu.memory_space<vmem>>, vector<1x256xf32>
    %87 = arith.truncf %86 : vector<1x256xf32> to vector<1x256xbf16>
    %88 = vector.broadcast %87 : vector<1x256xbf16> to vector<8x256xbf16>
    %89 = arith.mulf %85, %88 : vector<8x256xbf16>
    %90 = tpu.concatenate %77, %83, %89 in 0 : vector<8x256xbf16>, vector<8x256xbf16>, vector<8x256xbf16> -> vector<24x256xbf16>
    %c2_35 = arith.constant 2 : index
    %c0_36 = arith.constant 0 : index
    %c0_37 = arith.constant 0 : index
    %91 = vector.load %arg8[%c2_35, %c0_36, %c0_37] : memref<3x16x24xbf16, #tpu.memory_space<vmem>>, vector<1x16x24xbf16>
    %92 = vector.shape_cast %91 : vector<1x16x24xbf16> to vector<16x24xbf16>
    %cst_38 = arith.constant dense<0.000000e+00> : vector<16x256xf32>
    %93 = tpu.matmul %92, %90, %cst_38 {dimension_numbers = #tpu.dot_dimension_numbers<[1], [0], [0], [1], [0, 0, 1, 1], [], []>} : vector<16x24xbf16>, vector<24x256xbf16>, vector<16x256xf32> -> vector<16x256xf32>
    %94 = arith.addf %71, %93 : vector<16x256xf32>
    %c0_39 = arith.constant 0 : index
    %c0_40 = arith.constant 0 : index
    %c0_41 = arith.constant 0 : index
    %95 = vector.load %arg2[%c0_39, %c0_40, %c0_41] : memref<1x16x1xf32, #tpu.memory_space<vmem>>, vector<1x16x1xf32>
    %96 = vector.shape_cast %95 : vector<1x16x1xf32> to vector<16x1xf32>
    %97 = vector.broadcast %96 : vector<16x1xf32> to vector<16x256xf32>
    %98 = arith.addf %94, %97 : vector<16x256xf32>
    %c0_42 = arith.constant 0 : index
    %c0_43 = arith.constant 0 : index
    %99 = vector.load %arg9[%c0_42, %c0_43] : memref<16x1xf32, #tpu.memory_space<vmem>>, vector<16x1xf32>
    %c0_44 = arith.constant 0 : index
    %c0_45 = arith.constant 0 : index
    %100 = vector.load %arg10[%c0_44, %c0_45] : memref<16x1xf32, #tpu.memory_space<vmem>>, vector<16x1xf32>
    %c0_46 = arith.constant 0 : index
    %c0_47 = arith.constant 0 : index
    %101 = vector.load %arg11[%c0_46, %c0_47] : memref<16x4xf32, #tpu.memory_space<vmem>>, vector<16x4xf32>
    %c0_48 = arith.constant 0 : index
    %c0_49 = arith.constant 0 : index
    %102 = vector.load %arg12[%c0_48, %c0_49] : memref<4x16xf32, #tpu.memory_space<vmem>>, vector<4x16xf32>
    %cst_50 = arith.constant dense<0.000000e+00> : vector<16xf32>
    %103 = vector.multi_reduction <add>, %98, %cst_50 [1] : vector<16x256xf32> to vector<16xf32>
    %104 = vector.shape_cast %103 : vector<16xf32> to vector<16x1xf32>
    %cst_51 = arith.constant dense<0.000000e+00> : vector<4x1xf32>
    %105 = tpu.matmul %102, %104, %cst_51 {dimension_numbers = #tpu.dot_dimension_numbers<[1], [0], [0], [1], [0, 0, 1, 1], [], []>} : vector<4x16xf32>, vector<16x1xf32>, vector<4x1xf32> -> vector<4x1xf32>
    %cst_52 = arith.constant dense<0.000000e+00> : vector<16x1xf32>
    %106 = tpu.matmul %101, %105, %cst_52 {dimension_numbers = #tpu.dot_dimension_numbers<[1], [0], [0], [1], [0, 0, 1, 1], [], []>} : vector<16x4xf32>, vector<4x1xf32>, vector<16x1xf32> -> vector<16x1xf32>
    %107 = vector.broadcast %106 : vector<16x1xf32> to vector<16x256xf32>
    %108 = arith.subf %98, %107 : vector<16x256xf32>
    %109 = arith.mulf %108, %108 : vector<16x256xf32>
    %cst_53 = arith.constant dense<0.000000e+00> : vector<16xf32>
    %110 = vector.multi_reduction <add>, %109, %cst_53 [1] : vector<16x256xf32> to vector<16xf32>
    %111 = vector.shape_cast %110 : vector<16xf32> to vector<16x1xf32>
    %cst_54 = arith.constant dense<0.000000e+00> : vector<4x1xf32>
    %112 = tpu.matmul %102, %111, %cst_54 {dimension_numbers = #tpu.dot_dimension_numbers<[1], [0], [0], [1], [0, 0, 1, 1], [], []>} : vector<4x16xf32>, vector<16x1xf32>, vector<4x1xf32> -> vector<4x1xf32>
    %cst_55 = arith.constant dense<0.000000e+00> : vector<16x1xf32>
    %113 = tpu.matmul %101, %112, %cst_55 {dimension_numbers = #tpu.dot_dimension_numbers<[1], [0], [0], [1], [0, 0, 1, 1], [], []>} : vector<16x4xf32>, vector<4x1xf32>, vector<16x1xf32> -> vector<16x1xf32>
    %cst_56 = arith.constant 9.99999974E-6 : f32
    %114 = vector.broadcast %cst_56 : f32 to vector<16x1xf32>
    %115 = arith.addf %113, %114 : vector<16x1xf32>
    %116 = math.rsqrt %115 : vector<16x1xf32>
    %117 = arith.mulf %116, %99 : vector<16x1xf32>
    %118 = vector.broadcast %117 : vector<16x1xf32> to vector<16x256xf32>
    %119 = arith.mulf %108, %118 : vector<16x256xf32>
    %120 = vector.broadcast %100 : vector<16x1xf32> to vector<16x256xf32>
    %121 = arith.addf %119, %120 : vector<16x256xf32>
    %cst_57 = arith.constant 0.000000e+00 : f32
    %122 = vector.broadcast %cst_57 : f32 to vector<16x256xf32>
    %123 = arith.subf %122, %121 : vector<16x256xf32>
    %124 = math.exp %123 : vector<16x256xf32>
    %cst_58 = arith.constant 1.000000e+00 : f32
    %125 = vector.broadcast %cst_58 : f32 to vector<16x256xf32>
    %126 = arith.addf %125, %124 : vector<16x256xf32>
    %127 = tpu.reciprocal %126 {approx = true} : vector<16x256xf32> -> vector<16x256xf32>
    %128 = arith.mulf %121, %127 : vector<16x256xf32>
    %c17_i32_59 = arith.constant 17 : i32
    %129 = tpu.dynamic_rotate %128 by %c17_i32_59 dim 1 : vector<16x256xf32>, i32 -> vector<16x256xf32>
    %130 = arith.truncf %129 : vector<16x256xf32> to vector<16x256xbf16>
    %c0_60 = arith.constant 0 : index
    %c0_61 = arith.constant 0 : index
    %131 = vector.load %arg3[%c0_60, %c0_61] : memref<9x256xf32, #tpu.memory_space<vmem>>, vector<1x256xf32>
    %132 = arith.truncf %131 : vector<1x256xf32> to vector<1x256xbf16>
    %133 = vector.broadcast %132 : vector<1x256xbf16> to vector<16x256xbf16>
    %134 = arith.mulf %130, %133 : vector<16x256xbf16>
    %c16_i32_62 = arith.constant 16 : i32
    %135 = tpu.dynamic_rotate %128 by %c16_i32_62 dim 1 : vector<16x256xf32>, i32 -> vector<16x256xf32>
    %136 = arith.truncf %135 : vector<16x256xf32> to vector<16x256xbf16>
    %c1_63 = arith.constant 1 : index
    %c0_64 = arith.constant 0 : index
    %137 = vector.load %arg3[%c1_63, %c0_64] : memref<9x256xf32, #tpu.memory_space<vmem>>, vector<1x256xf32>
    %138 = arith.truncf %137 : vector<1x256xf32> to vector<1x256xbf16>
    %139 = vector.broadcast %138 : vector<1x256xbf16> to vector<16x256xbf16>
    %140 = arith.mulf %136, %139 : vector<16x256xbf16>
    %c15_i32_65 = arith.constant 15 : i32
    %141 = tpu.dynamic_rotate %128 by %c15_i32_65 dim 1 : vector<16x256xf32>, i32 -> vector<16x256xf32>
    %142 = arith.truncf %141 : vector<16x256xf32> to vector<16x256xbf16>
    %c2_66 = arith.constant 2 : index
    %c0_67 = arith.constant 0 : index
    %143 = vector.load %arg3[%c2_66, %c0_67] : memref<9x256xf32, #tpu.memory_space<vmem>>, vector<1x256xf32>
    %144 = arith.truncf %143 : vector<1x256xf32> to vector<1x256xbf16>
    %145 = vector.broadcast %144 : vector<1x256xbf16> to vector<16x256xbf16>
    %146 = arith.mulf %142, %145 : vector<16x256xbf16>
    %147 = tpu.concatenate %134, %140, %146 in 0 : vector<16x256xbf16>, vector<16x256xbf16>, vector<16x256xbf16> -> vector<48x256xbf16>
    %c0_68 = arith.constant 0 : index
    %c0_69 = arith.constant 0 : index
    %c0_70 = arith.constant 0 : index
    %148 = vector.load %arg13[%c0_68, %c0_69, %c0_70] : memref<3x16x48xbf16, #tpu.memory_space<vmem>>, vector<1x16x48xbf16>
    %149 = vector.shape_cast %148 : vector<1x16x48xbf16> to vector<16x48xbf16>
    %cst_71 = arith.constant dense<0.000000e+00> : vector<16x256xf32>
    %150 = tpu.matmul %149, %147, %cst_71 {dimension_numbers = #tpu.dot_dimension_numbers<[1], [0], [0], [1], [0, 0, 1, 1], [], []>} : vector<16x48xbf16>, vector<48x256xbf16>, vector<16x256xf32> -> vector<16x256xf32>
    %c1_i32_72 = arith.constant 1 : i32
    %151 = tpu.dynamic_rotate %128 by %c1_i32_72 dim 1 : vector<16x256xf32>, i32 -> vector<16x256xf32>
    %152 = arith.truncf %151 : vector<16x256xf32> to vector<16x256xbf16>
    %c3_73 = arith.constant 3 : index
    %c0_74 = arith.constant 0 : index
    %153 = vector.load %arg3[%c3_73, %c0_74] : memref<9x256xf32, #tpu.memory_space<vmem>>, vector<1x256xf32>
    %154 = arith.truncf %153 : vector<1x256xf32> to vector<1x256xbf16>
    %155 = vector.broadcast %154 : vector<1x256xbf16> to vector<16x256xbf16>
    %156 = arith.mulf %152, %155 : vector<16x256xbf16>
    %157 = arith.truncf %128 : vector<16x256xf32> to vector<16x256xbf16>
    %c255_i32_75 = arith.constant 255 : i32
    %158 = tpu.dynamic_rotate %128 by %c255_i32_75 dim 1 : vector<16x256xf32>, i32 -> vector<16x256xf32>
    %159 = arith.truncf %158 : vector<16x256xf32> to vector<16x256xbf16>
    %c5_76 = arith.constant 5 : index
    %c0_77 = arith.constant 0 : index
    %160 = vector.load %arg3[%c5_76, %c0_77] : memref<9x256xf32, #tpu.memory_space<vmem>>, vector<1x256xf32>
    %161 = arith.truncf %160 : vector<1x256xf32> to vector<1x256xbf16>
    %162 = vector.broadcast %161 : vector<1x256xbf16> to vector<16x256xbf16>
    %163 = arith.mulf %159, %162 : vector<16x256xbf16>
    %164 = tpu.concatenate %156, %157, %163 in 0 : vector<16x256xbf16>, vector<16x256xbf16>, vector<16x256xbf16> -> vector<48x256xbf16>
    %c1_78 = arith.constant 1 : index
    %c0_79 = arith.constant 0 : index
    %c0_80 = arith.constant 0 : index
    %165 = vector.load %arg13[%c1_78, %c0_79, %c0_80] : memref<3x16x48xbf16, #tpu.memory_space<vmem>>, vector<1x16x48xbf16>
    %166 = vector.shape_cast %165 : vector<1x16x48xbf16> to vector<16x48xbf16>
    %cst_81 = arith.constant dense<0.000000e+00> : vector<16x256xf32>
    %167 = tpu.matmul %166, %164, %cst_81 {dimension_numbers = #tpu.dot_dimension_numbers<[1], [0], [0], [1], [0, 0, 1, 1], [], []>} : vector<16x48xbf16>, vector<48x256xbf16>, vector<16x256xf32> -> vector<16x256xf32>
    %168 = arith.addf %150, %167 : vector<16x256xf32>
    %c241_i32_82 = arith.constant 241 : i32
    %169 = tpu.dynamic_rotate %128 by %c241_i32_82 dim 1 : vector<16x256xf32>, i32 -> vector<16x256xf32>
    %170 = arith.truncf %169 : vector<16x256xf32> to vector<16x256xbf16>
    %c6_83 = arith.constant 6 : index
    %c0_84 = arith.constant 0 : index
    %171 = vector.load %arg3[%c6_83, %c0_84] : memref<9x256xf32, #tpu.memory_space<vmem>>, vector<1x256xf32>
    %172 = arith.truncf %171 : vector<1x256xf32> to vector<1x256xbf16>
    %173 = vector.broadcast %172 : vector<1x256xbf16> to vector<16x256xbf16>
    %174 = arith.mulf %170, %173 : vector<16x256xbf16>
    %c240_i32_85 = arith.constant 240 : i32
    %175 = tpu.dynamic_rotate %128 by %c240_i32_85 dim 1 : vector<16x256xf32>, i32 -> vector<16x256xf32>
    %176 = arith.truncf %175 : vector<16x256xf32> to vector<16x256xbf16>
    %c7_86 = arith.constant 7 : index
    %c0_87 = arith.constant 0 : index
    %177 = vector.load %arg3[%c7_86, %c0_87] : memref<9x256xf32, #tpu.memory_space<vmem>>, vector<1x256xf32>
    %178 = arith.truncf %177 : vector<1x256xf32> to vector<1x256xbf16>
    %179 = vector.broadcast %178 : vector<1x256xbf16> to vector<16x256xbf16>
    %180 = arith.mulf %176, %179 : vector<16x256xbf16>
    %c239_i32_88 = arith.constant 239 : i32
    %181 = tpu.dynamic_rotate %128 by %c239_i32_88 dim 1 : vector<16x256xf32>, i32 -> vector<16x256xf32>
    %182 = arith.truncf %181 : vector<16x256xf32> to vector<16x256xbf16>
    %c8_89 = arith.constant 8 : index
    %c0_90 = arith.constant 0 : index
    %183 = vector.load %arg3[%c8_89, %c0_90] : memref<9x256xf32, #tpu.memory_space<vmem>>, vector<1x256xf32>
    %184 = arith.truncf %183 : vector<1x256xf32> to vector<1x256xbf16>
    %185 = vector.broadcast %184 : vector<1x256xbf16> to vector<16x256xbf16>
    %186 = arith.mulf %182, %185 : vector<16x256xbf16>
    %187 = tpu.concatenate %174, %180, %186 in 0 : vector<16x256xbf16>, vector<16x256xbf16>, vector<16x256xbf16> -> vector<48x256xbf16>
    %c2_91 = arith.constant 2 : index
    %c0_92 = arith.constant 0 : index
    %c0_93 = arith.constant 0 : index
    %188 = vector.load %arg13[%c2_91, %c0_92, %c0_93] : memref<3x16x48xbf16, #tpu.memory_space<vmem>>, vector<1x16x48xbf16>
    %189 = vector.shape_cast %188 : vector<1x16x48xbf16> to vector<16x48xbf16>
    %cst_94 = arith.constant dense<0.000000e+00> : vector<16x256xf32>
    %190 = tpu.matmul %189, %187, %cst_94 {dimension_numbers = #tpu.dot_dimension_numbers<[1], [0], [0], [1], [0, 0, 1, 1], [], []>} : vector<16x48xbf16>, vector<48x256xbf16>, vector<16x256xf32> -> vector<16x256xf32>
    %191 = arith.addf %168, %190 : vector<16x256xf32>
    %c0_95 = arith.constant 0 : index
    %c0_96 = arith.constant 0 : index
    %192 = vector.load %arg14[%c0_95, %c0_96] : memref<16x1xf32, #tpu.memory_space<vmem>>, vector<16x1xf32>
    %193 = vector.broadcast %192 : vector<16x1xf32> to vector<16x256xf32>
    %194 = arith.addf %191, %193 : vector<16x256xf32>
    %c0_97 = arith.constant 0 : index
    %c0_98 = arith.constant 0 : index
    %195 = vector.load %arg15[%c0_97, %c0_98] : memref<16x8xbf16, #tpu.memory_space<vmem>>, vector<16x8xbf16>
    %196 = arith.truncf %1 : vector<8x256xf32> to vector<8x256xbf16>
    %cst_99 = arith.constant dense<0.000000e+00> : vector<16x256xf32>
    %197 = tpu.matmul %195, %196, %cst_99 {dimension_numbers = #tpu.dot_dimension_numbers<[1], [0], [0], [1], [0, 0, 1, 1], [], []>} : vector<16x8xbf16>, vector<8x256xbf16>, vector<16x256xf32> -> vector<16x256xf32>
    %c0_100 = arith.constant 0 : index
    %c0_101 = arith.constant 0 : index
    %198 = vector.load %arg16[%c0_100, %c0_101] : memref<16x1xf32, #tpu.memory_space<vmem>>, vector<16x1xf32>
    %199 = vector.broadcast %198 : vector<16x1xf32> to vector<16x256xf32>
    %200 = arith.addf %197, %199 : vector<16x256xf32>
    %201 = arith.addf %194, %200 : vector<16x256xf32>
    %c0_102 = arith.constant 0 : index
    %c0_103 = arith.constant 0 : index
    %c0_104 = arith.constant 0 : index
    %202 = vector.load %arg17[%c0_102, %c0_103, %c0_104] : memref<1x16x256xf32, #tpu.memory_space<vmem>>, vector<1x16x256xf32>
    %203 = vector.shape_cast %202 : vector<1x16x256xf32> to vector<16x256xf32>
    %204 = vector.shape_cast %201 : vector<16x256xf32> to vector<1x16x256xf32>
    tpu.vector_store %arg17[%c0_102, %c0_103, %c0_104], %204 {strides = array<i32>} : memref<1x16x256xf32, #tpu.memory_space<vmem>>, vector<1x16x256xf32>,
    return
  }
  func.func @transform_0(%arg0: i32) -> (i32, i32, i32) {
    %c0_i32 = arith.constant 0 : i32
    %c0_i32_0 = arith.constant 0 : i32
    %c0_i32_1 = arith.constant 0 : i32
    return %arg0, %c0_i32, %c0_i32_0 : i32, i32, i32
  }
  func.func @transform_1(%arg0: i32) -> (i32, i32, i32) {
    %c0_i32 = arith.constant 0 : i32
    %c0_i32_0 = arith.constant 0 : i32
    %c0_i32_1 = arith.constant 0 : i32
    return %arg0, %c0_i32, %c0_i32_0 : i32, i32, i32
  }
  func.func @transform_2(%arg0: i32) -> (i32, i32) {
    %c0_i32 = arith.constant 0 : i32
    %c0_i32_0 = arith.constant 0 : i32
    %c0_i32_1 = arith.constant 0 : i32
    return %c0_i32, %c0_i32_0 : i32, i32
  }
  func.func @transform_3(%arg0: i32) -> (i32, i32) {
    %c0_i32 = arith.constant 0 : i32
    %c0_i32_0 = arith.constant 0 : i32
    %c0_i32_1 = arith.constant 0 : i32
    return %c0_i32, %c0_i32_0 : i32, i32
  }
  func.func @transform_4(%arg0: i32) -> (i32, i32) {
    %c0_i32 = arith.constant 0 : i32
    %c0_i32_0 = arith.constant 0 : i32
    %c0_i32_1 = arith.constant 0 : i32
    return %c0_i32, %c0_i32_0 : i32, i32
  }
  func.func @transform_5(%arg0: i32) -> (i32, i32) {
    %c0_i32 = arith.constant 0 : i32
    %c0_i32_0 = arith.constant 0 : i32
    %c0_i32_1 = arith.constant 0 : i32
    return %c0_i32, %c0_i32_0 : i32, i32
  }
  func.func @transform_6(%arg0: i32) -> (i32, i32) {
    %c0_i32 = arith.constant 0 : i32
    %c0_i32_0 = arith.constant 0 : i32
    %c0_i32_1 = arith.constant 0 : i32
    return %c0_i32, %c0_i32_0 : i32, i32
  }
  func.func @transform_7(%arg0: i32) -> (i32, i32, i32) {
    %c0_i32 = arith.constant 0 : i32
    %c0_i32_0 = arith.constant 0 : i32
    %c0_i32_1 = arith.constant 0 : i32
    %c0_i32_2 = arith.constant 0 : i32
    return %c0_i32, %c0_i32_0, %c0_i32_1 : i32, i32, i32
  }
  func.func @transform_8(%arg0: i32) -> (i32, i32) {
    %c0_i32 = arith.constant 0 : i32
    %c0_i32_0 = arith.constant 0 : i32
    %c0_i32_1 = arith.constant 0 : i32
    return %c0_i32, %c0_i32_0 : i32, i32
  }
  func.func @transform_9(%arg0: i32) -> (i32, i32) {
    %c0_i32 = arith.constant 0 : i32
    %c0_i32_0 = arith.constant 0 : i32
    %c0_i32_1 = arith.constant 0 : i32
    return %c0_i32, %c0_i32_0 : i32, i32
  }
  func.func @transform_10(%arg0: i32) -> (i32, i32) {
    %c0_i32 = arith.constant 0 : i32
    %c0_i32_0 = arith.constant 0 : i32
    %c0_i32_1 = arith.constant 0 : i32
    return %c0_i32, %c0_i32_0 : i32, i32
  }
  func.func @transform_11(%arg0: i32) -> (i32, i32) {
    %c0_i32 = arith.constant 0 : i32
    %c0_i32_0 = arith.constant 0 : i32
    %c0_i32_1 = arith.constant 0 : i32
    return %c0_i32, %c0_i32_0 : i32, i32
  }
  func.func @transform_12(%arg0: i32) -> (i32, i32, i32) {
    %c0_i32 = arith.constant 0 : i32
    %c0_i32_0 = arith.constant 0 : i32
    %c0_i32_1 = arith.constant 0 : i32
    %c0_i32_2 = arith.constant 0 : i32
    return %c0_i32, %c0_i32_0, %c0_i32_1 : i32, i32, i32
  }
  func.func @transform_13(%arg0: i32) -> (i32, i32) {
    %c0_i32 = arith.constant 0 : i32
    %c0_i32_0 = arith.constant 0 : i32
    %c0_i32_1 = arith.constant 0 : i32
    return %c0_i32, %c0_i32_0 : i32, i32
  }
  func.func @transform_14(%arg0: i32) -> (i32, i32) {
    %c0_i32 = arith.constant 0 : i32
    %c0_i32_0 = arith.constant 0 : i32
    %c0_i32_1 = arith.constant 0 : i32
    return %c0_i32, %c0_i32_0 : i32, i32
  }
  func.func @transform_15(%arg0: i32) -> (i32, i32) {
    %c0_i32 = arith.constant 0 : i32
    %c0_i32_0 = arith.constant 0 : i32
    %c0_i32_1 = arith.constant 0 : i32
    return %c0_i32, %c0_i32_0 : i32, i32
  }
  func.func @transform_16(%arg0: i32) -> (i32, i32, i32) {
    %c0_i32 = arith.constant 0 : i32
    %c0_i32_0 = arith.constant 0 : i32
    %c0_i32_1 = arith.constant 0 : i32
    return %arg0, %c0_i32, %c0_i32_0 : i32, i32, i32
  }
}

module attributes {stable_mosaic.version = 11 : i64} {
  func.func @_residual_block_kernel(%arg0: i32, %arg1: memref<1x8x256xf32, #tpu.memory_space<vmem>>, %arg2: memref<1x16x1xf32, #tpu.memory_space<vmem>>, %arg3: memref<9x256xf32, #tpu.memory_space<vmem>>, %arg4: memref<8x1xf32, #tpu.memory_space<vmem>>, %arg5: memref<8x1xf32, #tpu.memory_space<vmem>>, %arg6: memref<8x4xf32, #tpu.memory_space<vmem>>, %arg7: memref<4x8xf32, #tpu.memory_space<vmem>>, %arg8: memref<3x16x24xbf16, #tpu.memory_space<vmem>>, %arg9: memref<16x1xf32, #tpu.memory_space<vmem>>, %arg10: memref<16x1xf32, #tpu.memory_space<vmem>>, %arg11: memref<16x4xf32, #tpu.memory_space<vmem>>, %arg12: memref<4x16xf32, #tpu.memory_space<vmem>>, %arg13: memref<3x16x48xbf16, #tpu.memory_space<vmem>>, %arg14: memref<16x1xf32, #tpu.memory_space<vmem>>, %arg15: memref<16x8xbf16, #tpu.memory_space<vmem>>, %arg16: memref<16x1xf32, #tpu.memory_space<vmem>>, %arg17: memref<1x16x256xf32, #tpu.memory_space<vmem>>) attributes {dimension_semantics = [#tpu.dimension_semantics<parallel>], iteration_bounds = array<i64: 2>, scalar_prefetch = 0 : i64, scratch_operands = 0 : i64, tpu.core_type = #tpu.core_type<tc>, window_params = [{transform_indices = @transform_0, window_bounds = array<i64: 1, 8, 256>}, {transform_indices = @transform_1, window_bounds = array<i64: 1, 16, 1>}, {pipeline_mode = #tpu.pipeline_mode<synchronous>, transform_indices = @transform_2, window_bounds = array<i64: 9, 256>}, {pipeline_mode = #tpu.pipeline_mode<synchronous>, transform_indices = @transform_3, window_bounds = array<i64: 8, 1>}, {pipeline_mode = #tpu.pipeline_mode<synchronous>, transform_indices = @transform_4, window_bounds = array<i64: 8, 1>}, {pipeline_mode = #tpu.pipeline_mode<synchronous>, transform_indices = @transform_5, window_bounds = array<i64: 8, 4>}, {pipeline_mode = #tpu.pipeline_mode<synchronous>, transform_indices = @transform_6, window_bounds = array<i64: 4, 8>}, {pipeline_mode = #tpu.pipeline_mode<synchronous>, transform_indices = @transform_7, window_bounds = array<i64: 3, 16, 24>}, {pipeline_mode = #tpu.pipeline_mode<synchronous>, transform_indices = @transform_8, window_bounds = array<i64: 16, 1>}, {pipeline_mode = #tpu.pipeline_mode<synchronous>, transform_indices = @transform_9, window_bounds = array<i64: 16, 1>}, {pipeline_mode = #tpu.pipeline_mode<synchronous>, transform_indices = @transform_10, window_bounds = array<i64: 16, 4>}, {pipeline_mode = #tpu.pipeline_mode<synchronous>, transform_indices = @transform_11, window_bounds = array<i64: 4, 16>}, {pipeline_mode = #tpu.pipeline_mode<synchronous>, transform_indices = @transform_12, window_bounds = array<i64: 3, 16, 48>}, {pipeline_mode = #tpu.pipeline_mode<synchronous>, transform_indices = @transform_13, window_bounds = array<i64: 16, 1>}, {pipeline_mode = #tpu.pipeline_mode<synchronous>, transform_indices = @transform_14, window_bounds = array<i64: 16, 8>}, {pipeline_mode = #tpu.pipeline_mode<synchronous>, transform_indices = @transform_15, window_bounds = array<i64: 16, 1>}, {transform_indices = @transform_16, window_bounds = array<i64: 1, 16, 256>}]} {
    %c0 = arith.constant 0 : index
    %c0_0 = arith.constant 0 : index
    %c0_1 = arith.constant 0 : index
    %0 = vector.load %arg1[%c0, %c0_0, %c0_1] : memref<1x8x256xf32, #tpu.memory_space<vmem>>, vector<1x8x256xf32>
    %1 = vector.shape_cast %0 : vector<1x8x256xf32> to vector<8x256xf32>
    %c0_2 = arith.constant 0 : index
    %c0_3 = arith.constant 0 : index
    %2 = vector.load %arg4[%c0_2, %c0_3] : memref<8x1xf32, #tpu.memory_space<vmem>>, vector<8x1xf32>
    %c0_4 = arith.constant 0 : index
    %c0_5 = arith.constant 0 : index
    %3 = vector.load %arg5[%c0_4, %c0_5] : memref<8x1xf32, #tpu.memory_space<vmem>>, vector<8x1xf32>
    %c0_6 = arith.constant 0 : index
    %c0_7 = arith.constant 0 : index
    %4 = vector.load %arg6[%c0_6, %c0_7] : memref<8x4xf32, #tpu.memory_space<vmem>>, vector<8x4xf32>
    %c0_8 = arith.constant 0 : index
    %c0_9 = arith.constant 0 : index
    %5 = vector.load %arg7[%c0_8, %c0_9] : memref<4x8xf32, #tpu.memory_space<vmem>>, vector<4x8xf32>
    %cst = arith.constant dense<0.000000e+00> : vector<8xf32>
    %6 = vector.multi_reduction <add>, %1, %cst [1] : vector<8x256xf32> to vector<8xf32>
    %7 = vector.shape_cast %6 : vector<8xf32> to vector<8x1xf32>
    %cst_10 = arith.constant dense<0.000000e+00> : vector<4x1xf32>
    %8 = tpu.matmul %5, %7, %cst_10 {dimension_numbers = #tpu.dot_dimension_numbers<[1], [0], [0], [1], [0, 0, 1, 1], [], []>} : vector<4x8xf32>, vector<8x1xf32>, vector<4x1xf32> -> vector<4x1xf32>
    %cst_11 = arith.constant dense<0.000000e+00> : vector<8x1xf32>
    %9 = tpu.matmul %4, %8, %cst_11 {dimension_numbers = #tpu.dot_dimension_numbers<[1], [0], [0], [1], [0, 0, 1, 1], [], []>} : vector<8x4xf32>, vector<4x1xf32>, vector<8x1xf32> -> vector<8x1xf32>
    %10 = vector.broadcast %9 : vector<8x1xf32> to vector<8x256xf32>
    %11 = arith.subf %1, %10 : vector<8x256xf32>
    %12 = arith.mulf %11, %11 : vector<8x256xf32>
    %cst_12 = arith.constant dense<0.000000e+00> : vector<8xf32>
    %13 = vector.multi_reduction <add>, %12, %cst_12 [1] : vector<8x256xf32> to vector<8xf32>
    %14 = vector.shape_cast %13 : vector<8xf32> to vector<8x1xf32>
    %cst_13 = arith.constant dense<0.000000e+00> : vector<4x1xf32>
    %15 = tpu.matmul %5, %14, %cst_13 {dimension_numbers = #tpu.dot_dimension_numbers<[1], [0], [0], [1], [0, 0, 1, 1], [], []>} : vector<4x8xf32>, vector<8x1xf32>, vector<4x1xf32> -> vector<4x1xf32>
    %cst_14 = arith.constant dense<0.000000e+00> : vector<8x1xf32>
    %16 = tpu.matmul %4, %15, %cst_14 {dimension_numbers = #tpu.dot_dimension_numbers<[1], [0], [0], [1], [0, 0, 1, 1], [], []>} : vector<8x4xf32>, vector<4x1xf32>, vector<8x1xf32> -> vector<8x1xf32>
    %cst_15 = arith.constant 9.99999974E-6 : f32
    %17 = vector.broadcast %cst_15 : f32 to vector<8x1xf32>
    %18 = arith.addf %16, %17 : vector<8x1xf32>
    %19 = math.rsqrt %18 : vector<8x1xf32>
    %20 = arith.mulf %19, %2 : vector<8x1xf32>
    %21 = vector.broadcast %20 : vector<8x1xf32> to vector<8x256xf32>
    %22 = arith.mulf %11, %21 : vector<8x256xf32>
    %23 = vector.broadcast %3 : vector<8x1xf32> to vector<8x256xf32>
    %24 = arith.addf %22, %23 : vector<8x256xf32>
    %cst_16 = arith.constant 0.000000e+00 : f32
    %25 = vector.broadcast %cst_16 : f32 to vector<8x256xf32>
    %26 = arith.subf %25, %24 : vector<8x256xf32>
    %27 = math.exp %26 : vector<8x256xf32>
    %cst_17 = arith.constant 1.000000e+00 : f32
    %28 = vector.broadcast %cst_17 : f32 to vector<8x256xf32>
    %29 = arith.addf %28, %27 : vector<8x256xf32>
    %30 = tpu.reciprocal %29 {approx = true} : vector<8x256xf32> -> vector<8x256xf32>
    %31 = arith.mulf %24, %30 : vector<8x256xf32>
    %c17_i32 = arith.constant 17 : i32
    %32 = tpu.dynamic_rotate %31 by %c17_i32 dim 1 : vector<8x256xf32>, i32 -> vector<8x256xf32>
    %33 = arith.truncf %32 : vector<8x256xf32> to vector<8x256xbf16>
    %c0_18 = arith.constant 0 : index
    %c0_19 = arith.constant 0 : index
    %34 = vector.load %arg3[%c0_18, %c0_19] : memref<9x256xf32, #tpu.memory_space<vmem>>, vector<1x256xf32>
    %35 = arith.truncf %34 : vector<1x256xf32> to vector<1x256xbf16>
    %36 = vector.broadcast %35 : vector<1x256xbf16> to vector<8x256xbf16>
    %37 = arith.mulf %33, %36 : vector<8x256xbf16>
    %c16_i32 = arith.constant 16 : i32
    %38 = tpu.dynamic_rotate %31 by %c16_i32 dim 1 : vector<8x256xf32>, i32 -> vector<8x256xf32>
    %39 = arith.truncf %38 : vector<8x256xf32> to vector<8x256xbf16>
    %c1 = arith.constant 1 : index
    %c0_20 = arith.constant 0 : index
    %40 = vector.load %arg3[%c1, %c0_20] : memref<9x256xf32, #tpu.memory_space<vmem>>, vector<1x256xf32>
    %41 = arith.truncf %40 : vector<1x256xf32> to vector<1x256xbf16>
    %42 = vector.broadcast %41 : vector<1x256xbf16> to vector<8x256xbf16>
    %43 = arith.mulf %39, %42 : vector<8x256xbf16>
    %c15_i32 = arith.constant 15 : i32
    %44 = tpu.dynamic_rotate %31 by %c15_i32 dim 1 : vector<8x256xf32>, i32 -> vector<8x256xf32>
    %45 = arith.truncf %44 : vector<8x256xf32> to vector<8x256xbf16>
    %c2 = arith.constant 2 : index
    %c0_21 = arith.constant 0 : index
    %46 = vector.load %arg3[%c2, %c0_21] : memref<9x256xf32, #tpu.memory_space<vmem>>, vector<1x256xf32>
    %47 = arith.truncf %46 : vector<1x256xf32> to vector<1x256xbf16>
    %48 = vector.broadcast %47 : vector<1x256xbf16> to vector<8x256xbf16>
    %49 = arith.mulf %45, %48 : vector<8x256xbf16>
    %50 = tpu.concatenate %37, %43, %49 in 0 : vector<8x256xbf16>, vector<8x256xbf16>, vector<8x256xbf16> -> vector<24x256xbf16>
    %c0_22 = arith.constant 0 : index
    %c0_23 = arith.constant 0 : index
    %c0_24 = arith.constant 0 : index
    %51 = vector.load %arg8[%c0_22, %c0_23, %c0_24] : memref<3x16x24xbf16, #tpu.memory_space<vmem>>, vector<1x16x24xbf16>
    %52 = vector.shape_cast %51 : vector<1x16x24xbf16> to vector<16x24xbf16>
    %cst_25 = arith.constant dense<0.000000e+00> : vector<16x256xf32>
    %53 = tpu.matmul %52, %50, %cst_25 {dimension_numbers = #tpu.dot_dimension_numbers<[1], [0], [0], [1], [0, 0, 1, 1], [], []>} : vector<16x24xbf16>, vector<24x256xbf16>, vector<16x256xf32> -> vector<16x256xf32>
    %c1_i32 = arith.constant 1 : i32
    %54 = tpu.dynamic_rotate %31 by %c1_i32 dim 1 : vector<8x256xf32>, i32 -> vector<8x256xf32>
    %55 = arith.truncf %54 : vector<8x256xf32> to vector<8x256xbf16>
    %c3 = arith.constant 3 : index
    %c0_26 = arith.constant 0 : index
    %56 = vector.load %arg3[%c3, %c0_26] : memref<9x256xf32, #tpu.memory_space<vmem>>, vector<1x256xf32>
    %57 = arith.truncf %56 : vector<1x256xf32> to vector<1x256xbf16>
    %58 = vector.broadcast %57 : vector<1x256xbf16> to vector<8x256xbf16>
    %59 = arith.mulf %55, %58 : vector<8x256xbf16>
    %60 = arith.truncf %31 : vector<8x256xf32> to vector<8x256xbf16>
    %c255_i32 = arith.constant 255 : i32
    %61 = tpu.dynamic_rotate %31 by %c255_i32 dim 1 : vector<8x256xf32>, i32 -> vector<8x256xf32>
    %62 = arith.truncf %61 : vector<8x256xf32> to vector<8x256xbf16>
    %c5 = arith.constant 5 : index
    %c0_27 = arith.constant 0 : index
    %63 = vector.load %arg3[%c5, %c0_27] : memref<9x256xf32, #tpu.memory_space<vmem>>, vector<1x256xf32>
    %64 = arith.truncf %63 : vector<1x256xf32> to vector<1x256xbf16>
    %65 = vector.broadcast %64 : vector<1x256xbf16> to vector<8x256xbf16>
    %66 = arith.mulf %62, %65 : vector<8x256xbf16>
    %67 = tpu.concatenate %59, %60, %66 in 0 : vector<8x256xbf16>, vector<8x256xbf16>, vector<8x256xbf16> -> vector<24x256xbf16>
    %c1_28 = arith.constant 1 : index
    %c0_29 = arith.constant 0 : index
    %c0_30 = arith.constant 0 : index
    %68 = vector.load %arg8[%c1_28, %c0_29, %c0_30] : memref<3x16x24xbf16, #tpu.memory_space<vmem>>, vector<1x16x24xbf16>
    %69 = vector.shape_cast %68 : vector<1x16x24xbf16> to vector<16x24xbf16>
    %cst_31 = arith.constant dense<0.000000e+00> : vector<16x256xf32>
    %70 = tpu.matmul %69, %67, %cst_31 {dimension_numbers = #tpu.dot_dimension_numbers<[1], [0], [0], [1], [0, 0, 1, 1], [], []>} : vector<16x24xbf16>, vector<24x256xbf16>, vector<16x256xf32> -> vector<16x256xf32>
    %71 = arith.addf %53, %70 : vector<16x256xf32>
    %c241_i32 = arith.constant 241 : i32
    %72 = tpu.dynamic_rotate %31 by %c241_i32 dim 1 : vector<8x256xf32>, i32 -> vector<8x256xf32>
    %73 = arith.truncf %72 : vector<8x256xf32> to vector<8x256xbf16>
    %c6 = arith.constant 6 : index
    %c0_32 = arith.constant 0 : index
    %74 = vector.load %arg3[%c6, %c0_32] : memref<9x256xf32, #tpu.memory_space<vmem>>, vector<1x256xf32>
    %75 = arith.truncf %74 : vector<1x256xf32> to vector<1x256xbf16>
    %76 = vector.broadcast %75 : vector<1x256xbf16> to vector<8x256xbf16>
    %77 = arith.mulf %73, %76 : vector<8x256xbf16>
    %c240_i32 = arith.constant 240 : i32
    %78 = tpu.dynamic_rotate %31 by %c240_i32 dim 1 : vector<8x256xf32>, i32 -> vector<8x256xf32>
    %79 = arith.truncf %78 : vector<8x256xf32> to vector<8x256xbf16>
    %c7 = arith.constant 7 : index
    %c0_33 = arith.constant 0 : index
    %80 = vector.load %arg3[%c7, %c0_33] : memref<9x256xf32, #tpu.memory_space<vmem>>, vector<1x256xf32>
    %81 = arith.truncf %80 : vector<1x256xf32> to vector<1x256xbf16>
    %82 = vector.broadcast %81 : vector<1x256xbf16> to vector<8x256xbf16>
    %83 = arith.mulf %79, %82 : vector<8x256xbf16>
    %c239_i32 = arith.constant 239 : i32
    %84 = tpu.dynamic_rotate %31 by %c239_i32 dim 1 : vector<8x256xf32>, i32 -> vector<8x256xf32>
    %85 = arith.truncf %84 : vector<8x256xf32> to vector<8x256xbf16>
    %c8 = arith.constant 8 : index
    %c0_34 = arith.constant 0 : index
    %86 = vector.load %arg3[%c8, %c0_34] : memref<9x256xf32, #tpu.memory_space<vmem>>, vector<1x256xf32>
    %87 = arith.truncf %86 : vector<1x256xf32> to vector<1x256xbf16>
    %88 = vector.broadcast %87 : vector<1x256xbf16> to vector<8x256xbf16>
    %89 = arith.mulf %85, %88 : vector<8x256xbf16>
    %90 = tpu.concatenate %77, %83, %89 in 0 : vector<8x256xbf16>, vector<8x256xbf16>, vector<8x256xbf16> -> vector<24x256xbf16>
    %c2_35 = arith.constant 2 : index
    %c0_36 = arith.constant 0 : index
    %c0_37 = arith.constant 0 : index
    %91 = vector.load %arg8[%c2_35, %c0_36, %c0_37] : memref<3x16x24xbf16, #tpu.memory_space<vmem>>, vector<1x16x24xbf16>
    %92 = vector.shape_cast %91 : vector<1x16x24xbf16> to vector<16x24xbf16>
    %cst_38 = arith.constant dense<0.000000e+00> : vector<16x256xf32>
    %93 = tpu.matmul %92, %90, %cst_38 {dimension_numbers = #tpu.dot_dimension_numbers<[1], [0], [0], [1], [0, 0, 1, 1], [], []>} : vector<16x24xbf16>, vector<24x256xbf16>, vector<16x256xf32> -> vector<16x256xf32>
    %94 = arith.addf %71, %93 : vector<16x256xf32>
    %c0_39 = arith.constant 0 : index
    %c0_40 = arith.constant 0 : index
    %c0_41 = arith.constant 0 : index
    %95 = vector.load %arg2[%c0_39, %c0_40, %c0_41] : memref<1x16x1xf32, #tpu.memory_space<vmem>>, vector<1x16x1xf32>
    %96 = vector.shape_cast %95 : vector<1x16x1xf32> to vector<16x1xf32>
    %97 = vector.broadcast %96 : vector<16x1xf32> to vector<16x256xf32>
    %98 = arith.addf %94, %97 : vector<16x256xf32>
    %c0_42 = arith.constant 0 : index
    %c0_43 = arith.constant 0 : index
    %99 = vector.load %arg9[%c0_42, %c0_43] : memref<16x1xf32, #tpu.memory_space<vmem>>, vector<16x1xf32>
    %c0_44 = arith.constant 0 : index
    %c0_45 = arith.constant 0 : index
    %100 = vector.load %arg10[%c0_44, %c0_45] : memref<16x1xf32, #tpu.memory_space<vmem>>, vector<16x1xf32>
    %c0_46 = arith.constant 0 : index
    %c0_47 = arith.constant 0 : index
    %101 = vector.load %arg11[%c0_46, %c0_47] : memref<16x4xf32, #tpu.memory_space<vmem>>, vector<16x4xf32>
    %c0_48 = arith.constant 0 : index
    %c0_49 = arith.constant 0 : index
    %102 = vector.load %arg12[%c0_48, %c0_49] : memref<4x16xf32, #tpu.memory_space<vmem>>, vector<4x16xf32>
    %cst_50 = arith.constant dense<0.000000e+00> : vector<16xf32>
    %103 = vector.multi_reduction <add>, %98, %cst_50 [1] : vector<16x256xf32> to vector<16xf32>
    %104 = vector.shape_cast %103 : vector<16xf32> to vector<16x1xf32>
    %cst_51 = arith.constant dense<0.000000e+00> : vector<4x1xf32>
    %105 = tpu.matmul %102, %104, %cst_51 {dimension_numbers = #tpu.dot_dimension_numbers<[1], [0], [0], [1], [0, 0, 1, 1], [], []>} : vector<4x16xf32>, vector<16x1xf32>, vector<4x1xf32> -> vector<4x1xf32>
    %cst_52 = arith.constant dense<0.000000e+00> : vector<16x1xf32>
    %106 = tpu.matmul %101, %105, %cst_52 {dimension_numbers = #tpu.dot_dimension_numbers<[1], [0], [0], [1], [0, 0, 1, 1], [], []>} : vector<16x4xf32>, vector<4x1xf32>, vector<16x1xf32> -> vector<16x1xf32>
    %107 = vector.broadcast %106 : vector<16x1xf32> to vector<16x256xf32>
    %108 = arith.subf %98, %107 : vector<16x256xf32>
    %109 = arith.mulf %108, %108 : vector<16x256xf32>
    %cst_53 = arith.constant dense<0.000000e+00> : vector<16xf32>
    %110 = vector.multi_reduction <add>, %109, %cst_53 [1] : vector<16x256xf32> to vector<16xf32>
    %111 = vector.shape_cast %110 : vector<16xf32> to vector<16x1xf32>
    %cst_54 = arith.constant dense<0.000000e+00> : vector<4x1xf32>
    %112 = tpu.matmul %102, %111, %cst_54 {dimension_numbers = #tpu.dot_dimension_numbers<[1], [0], [0], [1], [0, 0, 1, 1], [], []>} : vector<4x16xf32>, vector<16x1xf32>, vector<4x1xf32> -> vector<4x1xf32>
    %cst_55 = arith.constant dense<0.000000e+00> : vector<16x1xf32>
    %113 = tpu.matmul %101, %112, %cst_55 {dimension_numbers = #tpu.dot_dimension_numbers<[1], [0], [0], [1], [0, 0, 1, 1], [], []>} : vector<16x4xf32>, vector<4x1xf32>, vector<16x1xf32> -> vector<16x1xf32>
    %cst_56 = arith.constant 9.99999974E-6 : f32
    %114 = vector.broadcast %cst_56 : f32 to vector<16x1xf32>
    %115 = arith.addf %113, %114 : vector<16x1xf32>
    %116 = math.rsqrt %115 : vector<16x1xf32>
    %117 = arith.mulf %116, %99 : vector<16x1xf32>
    %118 = vector.broadcast %117 : vector<16x1xf32> to vector<16x256xf32>
    %119 = arith.mulf %108, %118 : vector<16x256xf32>
    %120 = vector.broadcast %100 : vector<16x1xf32> to vector<16x256xf32>
    %121 = arith.addf %119, %120 : vector<16x256xf32>
    %cst_57 = arith.constant 0.000000e+00 : f32
    %122 = vector.broadcast %cst_57 : f32 to vector<16x256xf32>
    %123 = arith.subf %122, %121 : vector<16x256xf32>
    %124 = math.exp %123 : vector<16x256xf32>
    %cst_58 = arith.constant 1.000000e+00 : f32
    %125 = vector.broadcast %cst_58 : f32 to vector<16x256xf32>
    %126 = arith.addf %125, %124 : vector<16x256xf32>
    %127 = tpu.reciprocal %126 {approx = true} : vector<16x256xf32> -> vector<16x256xf32>
    %128 = arith.mulf %121, %127 : vector<16x256xf32>
    %c17_i32_59 = arith.constant 17 : i32
    %129 = tpu.dynamic_rotate %128 by %c17_i32_59 dim 1 : vector<16x256xf32>, i32 -> vector<16x256xf32>
    %130 = arith.truncf %129 : vector<16x256xf32> to vector<16x256xbf16>
    %c0_60 = arith.constant 0 : index
    %c0_61 = arith.constant 0 : index
    %131 = vector.load %arg3[%c0_60, %c0_61] : memref<9x256xf32, #tpu.memory_space<vmem>>, vector<1x256xf32>
    %132 = arith.truncf %131 : vector<1x256xf32> to vector<1x256xbf16>
    %133 = vector.broadcast %132 : vector<1x256xbf16> to vector<16x256xbf16>
    %134 = arith.mulf %130, %133 : vector<16x256xbf16>
    %c16_i32_62 = arith.constant 16 : i32
    %135 = tpu.dynamic_rotate %128 by %c16_i32_62 dim 1 : vector<16x256xf32>, i32 -> vector<16x256xf32>
    %136 = arith.truncf %135 : vector<16x256xf32> to vector<16x256xbf16>
    %c1_63 = arith.constant 1 : index
    %c0_64 = arith.constant 0 : index
    %137 = vector.load %arg3[%c1_63, %c0_64] : memref<9x256xf32, #tpu.memory_space<vmem>>, vector<1x256xf32>
    %138 = arith.truncf %137 : vector<1x256xf32> to vector<1x256xbf16>
    %139 = vector.broadcast %138 : vector<1x256xbf16> to vector<16x256xbf16>
    %140 = arith.mulf %136, %139 : vector<16x256xbf16>
    %c15_i32_65 = arith.constant 15 : i32
    %141 = tpu.dynamic_rotate %128 by %c15_i32_65 dim 1 : vector<16x256xf32>, i32 -> vector<16x256xf32>
    %142 = arith.truncf %141 : vector<16x256xf32> to vector<16x256xbf16>
    %c2_66 = arith.constant 2 : index
    %c0_67 = arith.constant 0 : index
    %143 = vector.load %arg3[%c2_66, %c0_67] : memref<9x256xf32, #tpu.memory_space<vmem>>, vector<1x256xf32>
    %144 = arith.truncf %143 : vector<1x256xf32> to vector<1x256xbf16>
    %145 = vector.broadcast %144 : vector<1x256xbf16> to vector<16x256xbf16>
    %146 = arith.mulf %142, %145 : vector<16x256xbf16>
    %147 = tpu.concatenate %134, %140, %146 in 0 : vector<16x256xbf16>, vector<16x256xbf16>, vector<16x256xbf16> -> vector<48x256xbf16>
    %c0_68 = arith.constant 0 : index
    %c0_69 = arith.constant 0 : index
    %c0_70 = arith.constant 0 : index
    %148 = vector.load %arg13[%c0_68, %c0_69, %c0_70] : memref<3x16x48xbf16, #tpu.memory_space<vmem>>, vector<1x16x48xbf16>
    %149 = vector.shape_cast %148 : vector<1x16x48xbf16> to vector<16x48xbf16>
    %cst_71 = arith.constant dense<0.000000e+00> : vector<16x256xf32>
    %150 = tpu.matmul %149, %147, %cst_71 {dimension_numbers = #tpu.dot_dimension_numbers<[1], [0], [0], [1], [0, 0, 1, 1], [], []>} : vector<16x48xbf16>, vector<48x256xbf16>, vector<16x256xf32> -> vector<16x256xf32>
    %c1_i32_72 = arith.constant 1 : i32
    %151 = tpu.dynamic_rotate %128 by %c1_i32_72 dim 1 : vector<16x256xf32>, i32 -> vector<16x256xf32>
    %152 = arith.truncf %151 : vector<16x256xf32> to vector<16x256xbf16>
    %c3_73 = arith.constant 3 : index
    %c0_74 = arith.constant 0 : index
    %153 = vector.load %arg3[%c3_73, %c0_74] : memref<9x256xf32, #tpu.memory_space<vmem>>, vector<1x256xf32>
    %154 = arith.truncf %153 : vector<1x256xf32> to vector<1x256xbf16>
    %155 = vector.broadcast %154 : vector<1x256xbf16> to vector<16x256xbf16>
    %156 = arith.mulf %152, %155 : vector<16x256xbf16>
    %157 = arith.truncf %128 : vector<16x256xf32> to vector<16x256xbf16>
    %c255_i32_75 = arith.constant 255 : i32
    %158 = tpu.dynamic_rotate %128 by %c255_i32_75 dim 1 : vector<16x256xf32>, i32 -> vector<16x256xf32>
    %159 = arith.truncf %158 : vector<16x256xf32> to vector<16x256xbf16>
    %c5_76 = arith.constant 5 : index
    %c0_77 = arith.constant 0 : index
    %160 = vector.load %arg3[%c5_76, %c0_77] : memref<9x256xf32, #tpu.memory_space<vmem>>, vector<1x256xf32>
    %161 = arith.truncf %160 : vector<1x256xf32> to vector<1x256xbf16>
    %162 = vector.broadcast %161 : vector<1x256xbf16> to vector<16x256xbf16>
    %163 = arith.mulf %159, %162 : vector<16x256xbf16>
    %164 = tpu.concatenate %156, %157, %163 in 0 : vector<16x256xbf16>, vector<16x256xbf16>, vector<16x256xbf16> -> vector<48x256xbf16>
    %c1_78 = arith.constant 1 : index
    %c0_79 = arith.constant 0 : index
    %c0_80 = arith.constant 0 : index
    %165 = vector.load %arg13[%c1_78, %c0_79, %c0_80] : memref<3x16x48xbf16, #tpu.memory_space<vmem>>, vector<1x16x48xbf16>
    %166 = vector.shape_cast %165 : vector<1x16x48xbf16> to vector<16x48xbf16>
    %cst_81 = arith.constant dense<0.000000e+00> : vector<16x256xf32>
    %167 = tpu.matmul %166, %164, %cst_81 {dimension_numbers = #tpu.dot_dimension_numbers<[1], [0], [0], [1], [0, 0, 1, 1], [], []>} : vector<16x48xbf16>, vector<48x256xbf16>, vector<16x256xf32> -> vector<16x256xf32>
    %168 = arith.addf %150, %167 : vector<16x256xf32>
    %c241_i32_82 = arith.constant 241 : i32
    %169 = tpu.dynamic_rotate %128 by %c241_i32_82 dim 1 : vector<16x256xf32>, i32 -> vector<16x256xf32>
    %170 = arith.truncf %169 : vector<16x256xf32> to vector<16x256xbf16>
    %c6_83 = arith.constant 6 : index
    %c0_84 = arith.constant 0 : index
    %171 = vector.load %arg3[%c6_83, %c0_84] : memref<9x256xf32, #tpu.memory_space<vmem>>, vector<1x256xf32>
    %172 = arith.truncf %171 : vector<1x256xf32> to vector<1x256xbf16>
    %173 = vector.broadcast %172 : vector<1x256xbf16> to vector<16x256xbf16>
    %174 = arith.mulf %170, %173 : vector<16x256xbf16>
    %c240_i32_85 = arith.constant 240 : i32
    %175 = tpu.dynamic_rotate %128 by %c240_i32_85 dim 1 : vector<16x256xf32>, i32 -> vector<16x256xf32>
    %176 = arith.truncf %175 : vector<16x256xf32> to vector<16x256xbf16>
    %c7_86 = arith.constant 7 : index
    %c0_87 = arith.constant 0 : index
    %177 = vector.load %arg3[%c7_86, %c0_87] : memref<9x256xf32, #tpu.memory_space<vmem>>, vector<1x256xf32>
    %178 = arith.truncf %177 : vector<1x256xf32> to vector<1x256xbf16>
    %179 = vector.broadcast %178 : vector<1x256xbf16> to vector<16x256xbf16>
    %180 = arith.mulf %176, %179 : vector<16x256xbf16>
    %c239_i32_88 = arith.constant 239 : i32
    %181 = tpu.dynamic_rotate %128 by %c239_i32_88 dim 1 : vector<16x256xf32>, i32 -> vector<16x256xf32>
    %182 = arith.truncf %181 : vector<16x256xf32> to vector<16x256xbf16>
    %c8_89 = arith.constant 8 : index
    %c0_90 = arith.constant 0 : index
    %183 = vector.load %arg3[%c8_89, %c0_90] : memref<9x256xf32, #tpu.memory_space<vmem>>, vector<1x256xf32>
    %184 = arith.truncf %183 : vector<1x256xf32> to vector<1x256xbf16>
    %185 = vector.broadcast %184 : vector<1x256xbf16> to vector<16x256xbf16>
    %186 = arith.mulf %182, %185 : vector<16x256xbf16>
    %187 = tpu.concatenate %174, %180, %186 in 0 : vector<16x256xbf16>, vector<16x256xbf16>, vector<16x256xbf16> -> vector<48x256xbf16>
    %c2_91 = arith.constant 2 : index
    %c0_92 = arith.constant 0 : index
    %c0_93 = arith.constant 0 : index
    %188 = vector.load %arg13[%c2_91, %c0_92, %c0_93] : memref<3x16x48xbf16, #tpu.memory_space<vmem>>, vector<1x16x48xbf16>
    %189 = vector.shape_cast %188 : vector<1x16x48xbf16> to vector<16x48xbf16>
    %cst_94 = arith.constant dense<0.000000e+00> : vector<16x256xf32>
    %190 = tpu.matmul %189, %187, %cst_94 {dimension_numbers = #tpu.dot_dimension_numbers<[1], [0], [0], [1], [0, 0, 1, 1], [], []>} : vector<16x48xbf16>, vector<48x256xbf16>, vector<16x256xf32> -> vector<16x256xf32>
    %191 = arith.addf %168, %190 : vector<16x256xf32>
    %c0_95 = arith.constant 0 : index
    %c0_96 = arith.constant 0 : index
    %192 = vector.load %arg14[%c0_95, %c0_96] : memref<16x1xf32, #tpu.memory_space<vmem>>, vector<16x1xf32>
    %193 = vector.broadcast %192 : vector<16x1xf32> to vector<16x256xf32>
    %194 = arith.addf %191, %193 : vector<16x256xf32>
    %c0_97 = arith.constant 0 : index
    %c0_98 = arith.constant 0 : index
    %195 = vector.load %arg15[%c0_97, %c0_98] : memref<16x8xbf16, #tpu.memory_space<vmem>>, vector<16x8xbf16>
    %196 = arith.truncf %1 : vector<8x256xf32> to vector<8x256xbf16>
    %cst_99 = arith.constant dense<0.000000e+00> : vector<16x256xf32>
    %197 = tpu.matmul %195, %196, %cst_99 {dimension_numbers = #tpu.dot_dimension_numbers<[1], [0], [0], [1], [0, 0, 1, 1], [], []>} : vector<16x8xbf16>, vector<8x256xbf16>, vector<16x256xf32> -> vector<16x256xf32>
    %c0_100 = arith.constant 0 : index
    %c0_101 = arith.constant 0 : index
    %198 = vector.load %arg16[%c0_100, %c0_101] : memref<16x1xf32, #tpu.memory_space<vmem>>, vector<16x1xf32>
    %199 = vector.broadcast %198 : vector<16x1xf32> to vector<16x256xf32>
    %200 = arith.addf %197, %199 : vector<16x256xf32>
    %201 = arith.addf %194, %200 : vector<16x256xf32>
    %c0_102 = arith.constant 0 : index
    %c0_103 = arith.constant 0 : index
    %c0_104 = arith.constant 0 : index
    %202 = vector.load %arg17[%c0_102, %c0_103, %c0_104] : memref<1x16x256xf32, #tpu.memory_space<vmem>>, vector<1x16x256xf32>
    %203 = vector.shape_cast %202 : vector<1x16x256xf32> to vector<16x256xf32>
    %204 = vector.shape_cast %201 : vector<16x256xf32> to vector<1x16x256xf32>
    tpu.vector_store %arg17[%c0_102, %c0_103, %c0_104], %204 {strides = array<i32>} : memref<1x16x256xf32, #tpu.memory_space<vmem>>, vector<1x16x256xf32>,
    return
  }
  func.func @transform_0(%arg0: i32) -> (i32, i32, i32) {
    %c0_i32 = arith.constant 0 : i32
    %c0_i32_0 = arith.constant 0 : i32
    %c0_i32_1 = arith.constant 0 : i32
    return %arg0, %c0_i32, %c0_i32_0 : i32, i32, i32
  }
  func.func @transform_1(%arg0: i32) -> (i32, i32, i32) {
    %c0_i32 = arith.constant 0 : i32
    %c0_i32_0 = arith.constant 0 : i32
    %c0_i32_1 = arith.constant 0 : i32
    return %arg0, %c0_i32, %c0_i32_0 : i32, i32, i32
  }
  func.func @transform_2(%arg0: i32) -> (i32, i32) {
    %c0_i32 = arith.constant 0 : i32
    %c0_i32_0 = arith.constant 0 : i32
    %c0_i32_1 = arith.constant 0 : i32
    return %c0_i32, %c0_i32_0 : i32, i32
  }
  func.func @transform_3(%arg0: i32) -> (i32, i32) {
    %c0_i32 = arith.constant 0 : i32
    %c0_i32_0 = arith.constant 0 : i32
    %c0_i32_1 = arith.constant 0 : i32
    return %c0_i32, %c0_i32_0 : i32, i32
  }
  func.func @transform_4(%arg0: i32) -> (i32, i32) {
    %c0_i32 = arith.constant 0 : i32
    %c0_i32_0 = arith.constant 0 : i32
    %c0_i32_1 = arith.constant 0 : i32
    return %c0_i32, %c0_i32_0 : i32, i32
  }
  func.func @transform_5(%arg0: i32) -> (i32, i32) {
    %c0_i32 = arith.constant 0 : i32
    %c0_i32_0 = arith.constant 0 : i32
    %c0_i32_1 = arith.constant 0 : i32
    return %c0_i32, %c0_i32_0 : i32, i32
  }
  func.func @transform_6(%arg0: i32) -> (i32, i32) {
    %c0_i32 = arith.constant 0 : i32
    %c0_i32_0 = arith.constant 0 : i32
    %c0_i32_1 = arith.constant 0 : i32
    return %c0_i32, %c0_i32_0 : i32, i32
  }
  func.func @transform_7(%arg0: i32) -> (i32, i32, i32) {
    %c0_i32 = arith.constant 0 : i32
    %c0_i32_0 = arith.constant 0 : i32
    %c0_i32_1 = arith.constant 0 : i32
    %c0_i32_2 = arith.constant 0 : i32
    return %c0_i32, %c0_i32_0, %c0_i32_1 : i32, i32, i32
  }
  func.func @transform_8(%arg0: i32) -> (i32, i32) {
    %c0_i32 = arith.constant 0 : i32
    %c0_i32_0 = arith.constant 0 : i32
    %c0_i32_1 = arith.constant 0 : i32
    return %c0_i32, %c0_i32_0 : i32, i32
  }
  func.func @transform_9(%arg0: i32) -> (i32, i32) {
    %c0_i32 = arith.constant 0 : i32
    %c0_i32_0 = arith.constant 0 : i32
    %c0_i32_1 = arith.constant 0 : i32
    return %c0_i32, %c0_i32_0 : i32, i32
  }
  func.func @transform_10(%arg0: i32) -> (i32, i32) {
    %c0_i32 = arith.constant 0 : i32
    %c0_i32_0 = arith.constant 0 : i32
    %c0_i32_1 = arith.constant 0 : i32
    return %c0_i32, %c0_i32_0 : i32, i32
  }
  func.func @transform_11(%arg0: i32) -> (i32, i32) {
    %c0_i32 = arith.constant 0 : i32
    %c0_i32_0 = arith.constant 0 : i32
    %c0_i32_1 = arith.constant 0 : i32
    return %c0_i32, %c0_i32_0 : i32, i32
  }
  func.func @transform_12(%arg0: i32) -> (i32, i32, i32) {
    %c0_i32 = arith.constant 0 : i32
    %c0_i32_0 = arith.constant 0 : i32
    %c0_i32_1 = arith.constant 0 : i32
    %c0_i32_2 = arith.constant 0 : i32
    return %c0_i32, %c0_i32_0, %c0_i32_1 : i32, i32, i32
  }
  func.func @transform_13(%arg0: i32) -> (i32, i32) {
    %c0_i32 = arith.constant 0 : i32
    %c0_i32_0 = arith.constant 0 : i32
    %c0_i32_1 = arith.constant 0 : i32
    return %c0_i32, %c0_i32_0 : i32, i32
  }
  func.func @transform_14(%arg0: i32) -> (i32, i32) {
    %c0_i32 = arith.constant 0 : i32
    %c0_i32_0 = arith.constant 0 : i32
    %c0_i32_1 = arith.constant 0 : i32
    return %c0_i32, %c0_i32_0 : i32, i32
  }
  func.func @transform_15(%arg0: i32) -> (i32, i32) {
    %c0_i32 = arith.constant 0 : i32
    %c0_i32_0 = arith.constant 0 : i32
    %c0_i32_1 = arith.constant 0 : i32
    return %c0_i32, %c0_i32_0 : i32, i32
  }
  func.func @transform_16(%arg0: i32) -> (i32, i32, i32) {
    %c0_i32 = arith.constant 0 : i32
    %c0_i32_0 = arith.constant 0 : i32
    %c0_i32_1 = arith.constant 0 : i32
    return %arg0, %c0_i32, %c0_i32_0 : i32, i32, i32
  }
}

</mosaic_0001>

<bundles_post_ra>
// kernel: tpu_custom_call.1
= control target key start
LH: loop header
LB: loop body
LE: loop exit
PB: predicated region body
PF: predicated region fallthrough
CT: control target
= control target key end

     0   :  { %s3400_s0 = inlined_call_operand.vmem [shape: f32[2,8,256], index: 0, kind: input, shape index: {}]   ;;  %s3401_s1 = inlined_call_operand.vmem [shape: f32[2,16,1], index: 1, kind: input, shape index: {}]   ;;  %s3402_s2 = inlined_call_operand.vmem [shape: f32[9,256], index: 2, kind: input, shape index: {}]   ;;  %s3403_s3 = inlined_call_operand.vmem [shape: f32[8,1], index: 3, kind: input, shape index: {}]   ;;  %s3404_s4 = inlined_call_operand.vmem [shape: f32[8,1], index: 4, kind: input, shape index: {}]   ;;  %s3405_s5 = inlined_call_operand.vmem [shape: f32[8,4], index: 5, kind: input, shape index: {}]   ;;  %s3406_s6 = inlined_call_operand.vmem [shape: f32[4,8], index: 6, kind: input, shape index: {}]   ;;  %s3407_s7 = inlined_call_operand.vmem [shape: bf16[3,16,24], index: 7, kind: input, shape index: {}]   ;;  %s3408_s8 = inlined_call_operand.vmem [shape: f32[16,1], index: 8, kind: input, shape index: {}]   ;;  %s3409_s9 = inlined_call_operand.vmem [shape: f32[16,1], index: 9, kind: input, shape index: {}]   ;;  %s3410_s10 = inlined_call_operand.vmem [shape: f32[16,4], index: 10, kind: input, shape index: {}]   ;;  %s3411_s11 = inlined_call_operand.vmem [shape: f32[4,16], index: 11, kind: input, shape index: {}]   ;;  %s3412_s12 = inlined_call_operand.vmem [shape: bf16[3,16,48], index: 12, kind: input, shape index: {}]   ;;  %s3413_s13 = inlined_call_operand.vmem [shape: f32[16,1], index: 13, kind: input, shape index: {}]   ;;  %s3414_s14 = inlined_call_operand.vmem [shape: bf16[16,8], index: 14, kind: input, shape index: {}]   ;;  %s3415_s15 = inlined_call_operand.vmem [shape: f32[16,1], index: 15, kind: input, shape index: {}]   ;;  %s3416_s16 = inlined_call_operand.hbm [shape: f32[2,16,256], index: 16, kind: output, shape index: {}]  }
   0x1   :  { %3431 = sst [smem:[#allocation7_spill]] %s3400_s0 }
   0x2   :  { %3432 = sst [smem:[#allocation8_spill]] %s3403_s3 }
   0x3   :  { %3433 = sst [smem:[#allocation9_spill]] %s3404_s4 }
   0x4   :  { %3434 = sst [smem:[#allocation10_spill]] %s3405_s5 }
   0x5   :  { %21 = vsyncpa [#allocation3], 0 }
   0x6   :  { %23 = vsyncpa [#allocation3 + $0x1], 0  ;;  %s2862_s21 = smov 0   ;;  %s2864_s22 = smov 0  }
   0x7   :  { %s2866_s23 = smov 0   ;;  %s2868_s24 = smov 0  }
   0x8 LB: > { %3435 = sst [smem:[#allocation5_spill]] %s2757_s23  ;;  %s2883_s25 = sadd.s32 4294967295, %s2761_s24   ;;  %s2761_s24 = sphi %s2868_s24, %s3454_s24   ;;  %s2757_s23 = sphi %s2866_s23, %s3451_s23   ;;  %s2753_s22 = sphi %s2864_s22, %s3453_s22   ;;  %s2749_s21 = sphi %s2862_s21, %s3452_s21  }
   0x9   : > { %s2324_s26 = sadd.s32 4294967294, %s2761_s24   ;;  %s2887_s27 = sadd.s32 1, %s2761_s24  }
   0xa   : > { %s382_s28 = sadd.s32 1, %s2757_s23  ;;  %s379_s29 = ssub.s32 %s2761_s24, %s2887_s27 }
   0xb   : > { %p392_p0 = scmp.ne.s32.totalorder %s2757_s23, %s2753_s22  ;;  %p380_p1 = scmp.eq.s32.totalorder %s379_s29, 0 }
   0xc   : > { %p393_p2 = scmp.eq.s32.totalorder %s2883_s25, 1  ;;  %p398_p3 = scmp.ne.s32.totalorder %s2753_s22, %s2749_s21 }
   0xd   : > { %p399_p4 = scmp.eq.s32.totalorder %s2324_s26, 1  ;;  %p2327_p7 = scmp.ge.s32.totalorder %s2761_s24, 1 }
   0xe   : > { %s2898_s30 = scalar_select %p380_p1, %s2757_s23, %s382_s28  }
   0xf   : > { %p2900_p5 = por %p393_p2, %p392_p0  ;;  %p2904_p6 = por %p399_p4, %p398_p3 }
  0x10   : > { %3436 = sst [smem:[#allocation6_spill]] %s2898_s30  ;;  %p475_p8 = scmp.lt.s32.totalorder %s2761_s24, 3 }
  0x12   : > { %p476_p9 = pnand %p2327_p7, %p475_p8 }
  0x13   : > { %p530_p10 = scmp.lt.s32.totalorder (!%p476_p9), %s2883_s25, 1  ;;  %v2763_v0 = vmov (!%p476_p9), 0.0   ;;  %s3439_s28 = sld [smem:[#allocation7_spill]] (!%p476_p9)  ;;  %vm2764_vm0 = vmmov (!%p476_p9), 0   ;;  %v546_v4 = vld [vmem:[%s3406_s6] sm:$0xf] (!%p476_p9)  ;;  %v889_v49 = vlaneseq (!%p476_p9) }
  0x14   : > { %479 = sbr.rel (%p476_p9) target bundleno = 3719 (0xe87), region = 84  ;;  %2408 = vmatprep.subr.mxu0 (!%p476_p9), %v2763_v0  ;;  %2423 = vmatprep.subr.mxu1 (!%p476_p9), %v2763_v0  ;;  %vm550_vm1 = vcmask (!%p476_p9), 64512   ;;  %v2765_v6 = vmov (!%p476_p9), 0   ;;  %vm628_vm2 = vcmask (!%p476_p9), 1043456   ;;  %s3440_s5 = sld [smem:[#allocation10_spill]] (!%p476_p9)  ;;  %vm624_vm3 = vcmask (!%p476_p9), 31744  }
  0x15   : > { %2410 = vmatprep.mubr.msk.f32.mxu0 (!%p476_p9), %vm2764_vm0, %v2763_v0  ;;  %2425 = vmatprep.mubr.msk.f32.mxu1 (!%p476_p9), %vm2764_vm0, %v2763_v0  ;;  %s3441_s3 = sld [smem:[#allocation8_spill]] (!%p476_p9)  ;;  %s3442_s4 = sld [smem:[#allocation9_spill]] (!%p476_p9)  ;;  %v899_v50 = vshrl.u32 (!%p476_p9), %v889_v49, 7  ;;  %v2341_v53 = vld [vmem:[%s3402_s2 + $0x3] ss:$8 sm:$0x3] (!%p476_p9) }
  0x16   : > { %2538 = vset.pattern.permute.xlu0 (!%p476_p9), %v2765_v6  ;;  %2539 = vset.pattern.permute.xlu1 (!%p476_p9), %v2765_v6  ;;  %s3420_s20 = smov (!%p476_p9), 1   ;;  %s3424_s26 = smov (!%p476_p9), 111   ;;  %v2351_v54 = vld [vmem:[%s3402_s2 + $0x6] ss:$8 sm:$0x3] (!%p476_p9)  ;;  %vm1122_vm10 = vcmask (!%p476_p9), 195584  }
  0x17   : > { %v2978_v51 = vsub.s32 (!%p476_p9), 1, %v899_v50  ;;  %v2980_v52 = vsub.s32 (!%p476_p9), 0, %v899_v50  ;;  %v2342_v57 = vld [vmem:[%s3402_s2 + $0x5] ss:$8 sm:$0x3] (!%p476_p9)  ;;  %vm1457_vm13 = vcmask (!%p476_p9), 130048  }
  0x18   : > { %v2339_v60 = vld [vmem:[%s3402_s2 + $0x1] ss:$8 sm:$0x3] (!%p476_p9)  ;;  %s3445_s23 = smov (!%p476_p9), 112   ;;  %vm1935_vm14 = vcmask (!%p476_p9), 392192  }
  0x19   : > { %v1039_v55 = vrot.slane (!%p476_p9), %v2341_v53, %v2978_v51  ;;  %v1035_v56 = vrot.slane (!%p476_p9), %v2341_v53, %v2980_v52  ;;  %v1251_v58 = vrot.slane (!%p476_p9), %v2351_v54, %v2978_v51  ;;  %v1247_v59 = vrot.slane (!%p476_p9), %v2351_v54, %v2980_v52 }
  0x1a   : > { %v545_v7 = vld [vmem:[%s3440_s5] sm:$0xff] (!%p476_p9)  ;;  %s2770_s5 = smov (!%p476_p9), 17   ;;  %v1081_v62 = vrot.slane (!%p476_p9), %v2342_v57, %v2978_v51  ;;  %v1077_v63 = vrot.slane (!%p476_p9), %v2342_v57, %v2980_v52 }
  0x1b   : > { %s2914_s18 = scalar_select %p530_p10, %s2883_s25, 1  ;;  %v543_v24 = vld [vmem:[%s3441_s3] sm:$0xff]  ;;  %v1043_v61 = vpack.c.bf16 %v1039_v55, %v1039_v55 }
  0x1c   : > { %v544_v27 = vld [vmem:[%s3442_s4] sm:$0xff]  ;;  %s3418_s3 = smov 127   ;;  %s3430_s4 = smov 16  }
  0x1d   : > { %s2385_s19 = sshll.u32 %s2914_s18, 4  ;;  %s3428_s18 = smov 15  }
  0x1e   : > { %s2922_s29 = scalar_lea.vmem %s3439_s28, %s2385_s19  ;;  %s539_s30 = scalar_lea.vmem %s3401_s1, %s2385_s19 }
  0x1f   : > { %v541_v1 = vld [vmem:[%s2922_s29] sm:$0xff]  ;;  %v542_v2 = vld [vmem:[%s2922_s29 + $0x8] sm:$0xff]  ;;  %s3422_s28 = smov 113   ;;  %s3426_s19 = smov 112  }
  0x20   : > { %v547_v3 = vadd.f32 %v542_v2, %v541_v1  ;;  %v1428_v47 = vld [vmem:[%s539_s30] sm:$0xff]  ;;  %v1429_v48 = vld [vmem:[%s539_s30 + $0x8] sm:$0xff]  ;;  %s3447_s30 = smov 111  }
  0x22   : > { %548 = vadd.xlane.f32.xlu0 %v547_v3  ;;  %v945_v3 = vrot.slane %v2339_v60, %v2978_v51 }
  0xaf   : > { %v549_v5 = vpop.xlane.xlu0 %548 }
  0xb0   : > { %2409 = vmatpush3.msra.mxu0 %v549_v5  ;;  %v1254_v5 = vpack.c.bf16 %v1247_v59, %v1247_v59 }
  0xb1   : > { %2411 = vmatmul.mubr.msk.f32.vlgmr.msra.gmra.mrb[0].mxu0 %vm550_vm1, %v546_v4  ;;  %2413 = vmatprep.subr.mxu0 %v2763_v0 }
  0xb2   : > { %2415 = vmatprep.mubr.msk.f32.mxu0 %vm2764_vm0, %v2763_v0 }
 0x184   : > { %v620_v8 = vpop.f32.mrb[0].mxu0 }
 0x185   : > { %v2412_v9 = vpop.f32.mrb[1].mxu0  ;;  %2414 = vmatpush3.msk.msra.mxu0 %vm628_vm2, %v620_v8  ;;  %v1052_v8 = vpack.i.b16 %v1043_v61, %v1043_v61 }
 0x186   : > { %2416 = vmatmul.mubr.msk.f32.vlgmr.msra.gmra.mrb[2].mxu0 %vm624_vm3, %v545_v7  ;;  %2418 = vmatprep.subr.mxu0 %v2763_v0  ;;  %v1085_v9 = vpack.c.bf16 %v1081_v62, %v1081_v62 }
 0x187   : > { %2420 = vmatprep.mubr.msk.f32.mxu0 %vm2764_vm0, %v2763_v0 }
 0x259   : > { %v698_v10 = vpop.f32.mrb[2].mxu0 }
 0x25a   : > { %704 = vperm.xlu0 %2538, %v698_v10   ;;  %v2417_v11 = vpop.f32.mrb[3].mxu0  ;;  %v1084_v10 = vpack.c.bf16 %v1077_v63, %v1077_v63 }
 0x25b   : > { %v896_v11 = vld [vmem:[%s3402_s2] ss:$8 sm:$0x3] }
 0x2d9   : > { %v705_v12 = vpop.permute.xlu0 %704 }
 0x2da   : > { %v707_v13 = vsub.f32 %v541_v1, %v705_v12  ;;  %v708_v14 = vsub.f32 %v542_v2, %v705_v12  ;;  %v1042_v1 = vpack.c.bf16 %v1035_v56, %v1035_v56  ;;  %v1255_v2 = vpack.c.bf16 %v1251_v58, %v1251_v58 }
 0x2dc   : > { %v709_v15 = vmul.f32 %v707_v13, %v707_v13  ;;  %v710_v16 = vmul.f32 %v708_v14, %v708_v14  ;;  %v1045_v12 = vpack.i.b16 %v1042_v1, %v1042_v1 }
 0x2de   : > { %v711_v17 = vadd.f32 %v710_v16, %v709_v15  ;;  %v1257_v16 = vpack.i.b16 %v1254_v5, %v1254_v5 }
 0x2e0   : > { %712 = vadd.xlane.f32.xlu1 %v711_v17  ;;  %v905_v17 = vrot.slane %v896_v11, %v2978_v51 }
 0x36d   : > { %v713_v18 = vpop.xlane.xlu1 %712 }
 0x36e   : > { %2419 = vmatpush3.msra.mxu0 %v713_v18  ;;  %v3011_v18 = vrot.slane %v1052_v8, %v2980_v52 }
 0x36f   : > { %2421 = vmatmul.mubr.msk.f32.vlgmr.msra.gmra.mrb[4].mxu0 %vm550_vm1, %v546_v4  ;;  %v941_v4 = vrot.slane %v2339_v60, %v2980_v52 }
 0x370   : > { %1164 = vmatprep.mubr.bf16.mxu0 %v2765_v6 }
 0x371   : > { %v948_v15 = vpack.c.bf16 %v941_v4, %v941_v4 }
 0x442   : > { %v780_v19 = vpop.f32.mrb[4].mxu0 }
 0x443   : > { %v2422_v20 = vpop.f32.mrb[5].mxu0  ;;  %2424 = vmatpush3.msk.msra.mxu1 %vm628_vm2, %v780_v19  ;;  %v1094_v19 = vpack.i.b16 %v1085_v9, %v1085_v9 }
 0x444   : > { %2426 = vmatmul.mubr.msk.f32.vlgmr.msra.gmra.mrb[0].mxu1 %vm624_vm3, %v545_v7  ;;  %v3002_v7 = vand.u32 127, %v889_v49  ;;  %v1087_v20 = vpack.i.b16 %v1084_v10, %v1084_v10 }
 0x445   : > { %2432 = vmatprep.mubr.msk.f32.mxu1 %vm2764_vm0, %v2763_v0 }
 0x446   : > { %vm1024_vm4 = vcmp.lt.s32.totalorder %v3002_v7, 1  ;;  %vm1066_vm5 = vcmp.lt.s32.totalorder %v3002_v7, 127  ;;  %vm930_vm6 = vcmp.lt.s32.totalorder %v3002_v7, 16  ;;  %vm891_vm7 = vcmp.lt.s32.totalorder %v3002_v7, 17 }
 0x447   : > { %vm1236_vm8 = vcmp.lt.s32.totalorder %v3002_v7, 113  ;;  %vm970_vm9 = vcmp.lt.s32.totalorder %v3002_v7, 15  ;;  %vm1276_vm11 = vcmp.lt.s32.totalorder %v3002_v7, 112  ;;  %vm1316_vm12 = vcmp.lt.s32.totalorder %v3002_v7, 111 }
 0x517   : > { %v853_v21 = vpop.f32.mrb[0].mxu1 }
 0x518   : > { %v854_v22 = vadd.f32 1e-05, %v853_v21  ;;  %v2427_v23 = vpop.f32.mrb[1].mxu1  ;;  %v901_v21 = vrot.slane %v896_v11, %v2980_v52 }
 0x51a   : > { %2667 = vrsqrt.f32 %v854_v22  ;;  %v2340_v22 = vld [vmem:[%s3402_s2 + $0x2] ss:$8 sm:$0x3] }
 0x524   : > { %v2668_v25 = vpop.eup %2667 }
 0x525   : > { %v858_v26 = vmul.f32 %v2668_v25, %v543_v24  ;;  %v3020_v24 = vrot.slane %v1045_v12, %v2980_v52 }
 0x527   : > { %861 = vperm.xlu1 %2539, %v858_v26  }
 0x52b   : > { %868 = vperm.xlu1 %2539, %v544_v27  }
 0x5a6   : > { %v862_v28 = vpop.permute.xlu1 %861 }
 0x5a7   : > { %v864_v29 = vmul.f32 %v862_v28, %v707_v13  ;;  %v865_v30 = vmul.f32 %v862_v28, %v708_v14  ;;  %v1264_v13 = vpack.i.b16 %v1255_v2, %v1255_v2  ;;  %v949_v14 = vpack.c.bf16 %v945_v3, %v945_v3 }
 0x5a9   : > { %v3025_v26 = vrot.slane %v1264_v13, %v2980_v52  ;;  %v958_v28 = vpack.i.b16 %v949_v14, %v949_v14  ;;  %v2353_v14 = vld [vmem:[%s3402_s2 + $0x10] ss:$8 sm:$0x3] }
 0x5aa   : > { %v869_v31 = vpop.permute.xlu1 %868 }
 0x5ab   : > { %v871_v32 = vadd.f32 %v869_v31, %v864_v29  ;;  %v872_v33 = vadd.f32 %v869_v31, %v865_v30  ;;  %v951_v29 = vpack.i.b16 %v948_v15, %v948_v15  ;;  %v3029_v30 = vrot.slane %v1257_v16, %v2980_v52 }
 0x5ad   : > { %v873_v34 = vsub.f32 0.0, %v871_v32  ;;  %v874_v35 = vsub.f32 0.0, %v872_v33 }
 0x5af   : > { %v875_v36 = vmul.f32 1.442695, %v873_v34  ;;  %v877_v37 = vmul.f32 1.442695, %v874_v35  ;;  %v985_v34 = vrot.slane %v2340_v22, %v2978_v51  ;;  %v3033_v35 = vrot.slane %v1094_v19, %v2980_v52 }
 0x5b1   : > { %2669 = vpow2.f32 %v875_v36  ;;  %v3036_v36 = vrot.slane %v1087_v20, %v2980_v52  ;;  %v989_v54 = vpack.c.bf16 %v985_v34, %v985_v34 }
 0x5b2   : > { %2671 = vpow2.f32 %v877_v37  ;;  %v908_v37 = vpack.c.bf16 %v901_v21, %v901_v21 }
 0x5b3   : > { %v998_v12 = vpack.i.b16 %v989_v54, %v989_v54 }
 0x5b4   : > { %v911_v57 = vpack.i.b16 %v908_v37, %v908_v37 }
 0x5bb   : > { %v2670_v38 = vpop.eup %2669 }
 0x5bc   : > { %v2672_v39 = vpop.eup %2671  ;;  %v879_v40 = vadd.f32 1.0, %v2670_v38  ;;  %v981_v38 = vrot.slane %v2340_v22, %v2980_v52 }
 0x5bd   : > { %v880_v41 = vadd.f32 1.0, %v2672_v39 }
 0x5be   : > { %2673 = vrcp.f32 %v879_v40  ;;  %v988_v58 = vpack.c.bf16 %v981_v38, %v981_v38  ;;  %v3091_v38 = vrot.slane %v998_v12, %v2980_v52 }
 0x5bf   : > { %2675 = vrcp.f32 %v880_v41 }
 0x5c0   : > { %v991_v13 = vpack.i.b16 %v988_v58, %v988_v58 }
 0x5c8   : > { %v2674_v42 = vpop.eup %2673 }
 0x5c9   : > { %v2676_v43 = vpop.eup %2675  ;;  %v2959_v44 = vmul.f32 %v2674_v42, %v871_v32 }
 0x5ca   : > { %v2961_v45 = vmul.f32 %v2676_v43, %v872_v33  ;;  %v909_v33 = vpack.c.bf16 %v905_v17, %v905_v17  ;;  %v3078_v17 = vrot.slane %v911_v57, %v2980_v52 }
 0x5cb   : > { %v1060_v25 = vpack.c.bf16 %v2959_v44, %v2959_v44 }
 0x5cc   : > { %v2570_v46 = vpack.i.bf16 %v2961_v45, %v2959_v44  ;;  %v1061_v23 = vpack.c.bf16 %v2961_v45, %v2961_v45  ;;  %v918_v53 = vpack.i.b16 %v909_v33, %v909_v33  ;;  %v1327_v33 = vrot.slane %v2353_v14, %v2980_v52 }
 0x5cd   : > { %v1104_v42 = vrot.slane %v1060_v25, 4 }
 0x5ce   : > { %2571 = vrot.lane.b32.xlu0 %v2570_v46, %s3422_s28  ;;  %2541 = vrot.lane.b32.xlu1 %v2570_v46, %s3420_s20  ;;  %v1105_v41 = vrot.slane %v1061_v23, 4  ;;  %v3066_v9 = vrot.slane %v918_v53, %v2980_v52 }
 0x5d2   : > { %1432 = vperm.xlu0 %2538, %v1428_v47   ;;  %2546 = vrot.lane.b32.xlu1 %v2570_v46, %s3418_s3  ;;  %v3048_v47 = vrot.slane %v951_v29, %v2980_v52  ;;  %s3448_s3 = smov 127  }
 0x5d6   : > { %2551 = vrot.lane.b32.xlu1 %v2570_v46, %s3430_s4 }
 0x5da   : > { %2556 = vrot.lane.b32.xlu1 %v2570_v46, %s2770_s5 }
 0x5de   : > { %2561 = vrot.lane.b32.xlu1 %v2570_v46, %s3428_s18 }
 0x5e2   : > { %2566 = vrot.lane.b32.xlu1 %v2570_v46, %s3426_s19  ;;  %s3443_s19 = smov 15  }
 0x5e6   : > { %2576 = vrot.lane.b32.xlu1 %v2570_v46, %s3424_s26  ;;  %v3045_v46 = vrot.slane %v958_v28, %v2980_v52  ;;  %s3444_s26 = smov 113  }
 0x5ea   : > { %1437 = vperm.xlu1 %2539, %v1429_v48   ;;  %v2352_v48 = vld [vmem:[%s3402_s2 + $0x7] ss:$8 sm:$0x3] }
 0x5eb   : > { %v1291_v61 = vrot.slane %v2352_v48, %v2978_v51  ;;  %v1287_v62 = vrot.slane %v2352_v48, %v2980_v52 }
 0x5ed   : > { %v1295_v19 = vpack.c.bf16 %v1291_v61, %v1291_v61 }
 0x5ef   : > { %v1304_v48 = vpack.i.b16 %v1295_v19, %v1295_v19 }
 0x640   : > { %v2542_v27 = vpop.permute.xlu1 %2541  ;;  %v2572_v20 = vpop.permute.xlu0 %2571 }
 0x641   : > { %v2544_v31 = vunpack.i.h.bf16 %v2542_v27  ;;  %v2543_v32 = vunpack.i.l.bf16 %v2542_v27  ;;  %v1294_v27 = vpack.c.bf16 %v1287_v62, %v1287_v62 }
 0x643   : > { %v1025_v39 = vsel %vm1024_vm4, %v2543_v32, %v2544_v31  ;;  %v1026_v40 = vsel %vm1024_vm4, %v2544_v31, %v2543_v32  ;;  %v2660_v31 = vld [vmem:[%s3407_s7 + $0x8] sm:$0xff]   ;;  %v1331_v32 = vrot.slane %v2353_v14, %v2978_v51 }
 0x644   : > { %v1027_v43 = vpack.c.bf16 %v1026_v40, %v1026_v40  ;;  %v1028_v44 = vpack.c.bf16 %v1025_v39, %v1025_v39  ;;  %v2547_v45 = vpop.permute.xlu1 %2546  ;;  %v3094_v39 = vrot.slane %v991_v13, %v2980_v52  ;;  %v2574_v40 = vunpack.i.h.bf16 %v2572_v20 }
 0x645   : > { %v2549_v49 = vunpack.i.h.bf16 %v2547_v45  ;;  %v2548_v50 = vunpack.i.l.bf16 %v2547_v45  ;;  %v1335_v54 = vpack.c.bf16 %v1331_v32, %v1331_v32  ;;  %v2661_v32 = vld [vmem:[%s3407_s7] sm:$0xff]  }
 0x646   : > { %v1059_v55 = vmul.bf16 %v3011_v18, %v1028_v44  ;;  %v1058_v56 = vmul.bf16 %v3020_v24, %v1027_v43 }
 0x647   : > { %v1067_v59 = vsel %vm1066_vm5, %v2548_v50, %v2549_v49  ;;  %v1068_v60 = vsel %vm1066_vm5, %v2549_v49, %v2548_v50  ;;  %v1297_v49 = vpack.i.b16 %v1294_v27, %v1294_v27 }
 0x648   : > { %v1069_v63 = vpack.c.bf16 %v1067_v59, %v1067_v59  ;;  %v1070_v1 = vpack.c.bf16 %v1068_v60, %v1068_v60  ;;  %v2552_v2 = vpop.permute.xlu1 %2551  ;;  %v1112_v3 = vsel %vm628_vm2, %v1059_v55, %v1105_v41  ;;  %v1108_v4 = vsel %vm628_vm2, %v1058_v56, %v1104_v42 }
 0x649   : > { %v2554_v5 = vunpack.i.h.bf16 %v2552_v2  ;;  %v2553_v8 = vunpack.i.l.bf16 %v2552_v2  ;;  %1132 = vmatprep.subr.bf16.mxu0 %v1112_v3  ;;  %v2573_v41 = vunpack.i.l.bf16 %v2572_v20  ;;  %v1334_v55 = vpack.c.bf16 %v1327_v33, %v1327_v33 }
 0x64a   : > { %1133 = vmatpush1.bf16.msra.mxu0 %v1108_v4  ;;  %v1101_v10 = vmul.bf16 %v3033_v35, %v1070_v1  ;;  %v1100_v11 = vmul.bf16 %v3036_v36, %v1069_v63  ;;  %v3118_v12 = vrot.slane %v1297_v49, %v2980_v52 }
 0x64b   : > { %v931_v15 = vsel %vm930_vm6, %v2553_v8, %v2554_v5  ;;  %v932_v16 = vsel %vm930_vm6, %v2554_v5, %v2553_v8  ;;  %v1237_v60 = vsel %vm1236_vm8, %v2573_v41, %v2574_v40  ;;  %v1238_v61 = vsel %vm1236_vm8, %v2574_v40, %v2573_v41 }
 0x64c   : > { %v933_v21 = vpack.c.bf16 %v932_v16, %v932_v16  ;;  %v934_v22 = vpack.c.bf16 %v931_v15, %v931_v15  ;;  %v2557_v23 = vpop.permute.xlu1 %2556  ;;  %2346 = vmatprep.subr.msk.bf16.mxu0 %vm628_vm2, %v1101_v10  ;;  %v1127_v25 = vsel %vm628_vm2, %v1100_v11, 0  ;;  %v3115_v11 = vrot.slane %v1304_v48, %v2980_v52 }
 0x64d   : > { %v2559_v28 = vunpack.i.h.bf16 %v2557_v23  ;;  %v2558_v29 = vunpack.i.l.bf16 %v2557_v23  ;;  %v1344_v15 = vpack.i.b16 %v1335_v54, %v1335_v54  ;;  %v1337_v16 = vpack.i.b16 %v1334_v55, %v1334_v55 }
 0x64e   : > { %1135 = vmatpush1.bf16.msra.mxu0 %v1127_v25  ;;  %v965_v34 = vmul.bf16 %v3045_v46, %v934_v22  ;;  %v964_v37 = vmul.bf16 %v3048_v47, %v933_v21  ;;  %v1239_v19 = vpack.c.bf16 %v1237_v60, %v1237_v60  ;;  %v1240_v20 = vpack.c.bf16 %v1238_v61, %v1238_v61 }
 0x64f   : > { %v892_v42 = vsel %vm891_vm7, %v2558_v29, %v2559_v28  ;;  %v893_v51 = vsel %vm891_vm7, %v2559_v28, %v2558_v29  ;;  %v3138_v40 = vrot.slane %v1337_v16, %v2980_v52  ;;  %v1448_v16 = vld [vmem:[%s3410_s10] sm:$0xff] }
 0x650   : > { %v894_v43 = vpack.c.bf16 %v893_v51, %v893_v51  ;;  %v895_v44 = vpack.c.bf16 %v892_v42, %v892_v42  ;;  %v2562_v45 = vpop.permute.xlu1 %2561  ;;  %v1009_v57 = vrot.slane %v965_v34, 4  ;;  %v1008_v59 = vrot.slane %v964_v37, 4 }
 0x651   : > { %v2564_v50 = vunpack.i.h.bf16 %v2562_v45  ;;  %v2563_v53 = vunpack.i.l.bf16 %v2562_v45  ;;  %2347 = vmatmul.mubr.msk.bf16.vlgmr.msra.gmra.mrb[8].mxu0 %vm1122_vm10, %v2660_v31  ;;  %v3135_v37 = vrot.slane %v1344_v15, %v2980_v52  ;;  %v1271_v51 = vmul.bf16 %v3025_v26, %v1240_v20  ;;  %v1450_v15 = vld [vmem:[%s3411_s11] sm:$0xf]  ;;  %v1449_v20 = vld [vmem:[%s3410_s10 + $0x8] sm:$0xff] }
 0x652   : > { %v925_v56 = vmul.bf16 %v3066_v9, %v895_v44  ;;  %v924_v58 = vmul.bf16 %v3078_v17, %v894_v43  ;;  %1221 = vmatprep.mubr.bf16.mxu0 %v2765_v6  ;;  %v1270_v43 = vmul.bf16 %v3029_v30, %v1239_v19 }
 0x653   : > { %v971_v62 = vsel %vm970_vm9, %v2563_v53, %v2564_v50  ;;  %v972_v63 = vsel %vm970_vm9, %v2564_v50, %v2563_v53 }
 0x654   : > { %v973_v1 = vpack.c.bf16 %v972_v63, %v972_v63  ;;  %v974_v2 = vpack.c.bf16 %v971_v62, %v971_v62  ;;  %v2567_v3 = vpop.permute.xlu1 %2566  ;;  %v1016_v4 = vsel %vm628_vm2, %v925_v56, %v1009_v57  ;;  %v1012_v5 = vsel %vm628_vm2, %v924_v58, %v1008_v59  ;;  %v2662_v56 = vld [vmem:[%s3407_s7 + $0x10] sm:$0xff]   ;;  %v1433_v57 = vpop.permute.xlu0 %1432 }
 0x655   : > { %v2569_v8 = vunpack.i.h.bf16 %v2567_v3  ;;  %v2568_v10 = vunpack.i.l.bf16 %v2567_v3  ;;  %1189 = vmatprep.subr.bf16.mxu0 %v1016_v4 }
 0x656   : > { %1190 = vmatpush1.bf16.msra.mxu0 %v1012_v5  ;;  %v1005_v13 = vmul.bf16 %v3091_v38, %v974_v2  ;;  %v1004_v14 = vmul.bf16 %v3094_v39, %v973_v1 }
 0x657   : > { %v1277_v21 = vsel %vm1276_vm11, %v2568_v10, %v2569_v8  ;;  %v1278_v22 = vsel %vm1276_vm11, %v2569_v8, %v2568_v10  ;;  %v2774_v8 = vmov 0.0|0.0  }
 0x658   : > { %v1279_v23 = vpack.c.bf16 %v1277_v21, %v1277_v21  ;;  %v1280_v25 = vpack.c.bf16 %v1278_v22, %v1278_v22  ;;  %v2577_v27 = vpop.permute.xlu1 %2576  ;;  %2349 = vmatprep.subr.msk.bf16.mxu0 %vm628_vm2, %v1005_v13  ;;  %v1184_v28 = vsel %vm628_vm2, %v1004_v14, 0  ;;  %2452 = vmatprep.subr.bf16.mxu1 %v2774_v8 }
 0x659   : > { %v2579_v29 = vunpack.i.h.bf16 %v2577_v27  ;;  %v2578_v31 = vunpack.i.l.bf16 %v2577_v27 }
 0x65a   : > { %1192 = vmatpush1.bf16.msra.mxu0 %v1184_v28  ;;  %v1311_v33 = vmul.bf16 %v3115_v11, %v1280_v25  ;;  %v1310_v34 = vmul.bf16 %v3118_v12, %v1279_v23 }
 0x65b   : > { %v1317_v41 = vsel %vm1316_vm12, %v2578_v31, %v2579_v29  ;;  %v1318_v42 = vsel %vm1316_vm12, %v2579_v29, %v2578_v31 }
 0x65c   : > { %v1319_v44 = vpack.c.bf16 %v1317_v41, %v1317_v41  ;;  %v1320_v45 = vpack.c.bf16 %v1318_v42, %v1318_v42  ;;  %v1355_v48 = vrot.slane %v1311_v33, 4  ;;  %v1354_v49 = vrot.slane %v1310_v34, 4 }
 0x65d   : > { %2350 = vmatmul.mubr.msk.bf16.vlgmr.msra.gmra.mrb[8].mxu0 %vm1122_vm10, %v2661_v32 }
 0x65e   : > { %v1362_v50 = vsel %vm628_vm2, %v1271_v51, %v1355_v48  ;;  %v1358_v52 = vsel %vm628_vm2, %v1270_v43, %v1354_v49  ;;  %v1351_v53 = vmul.bf16 %v3135_v37, %v1320_v45  ;;  %1413 = vmatprep.mubr.bf16.mxu0 %v2765_v6  ;;  %v1350_v54 = vmul.bf16 %v3138_v40, %v1319_v44 }
 0x65f   : > { %1381 = vmatprep.subr.bf16.mxu0 %v1362_v50 }
 0x660   : > { %1382 = vmatpush1.bf16.msra.mxu0 %v1358_v52  ;;  %v1376_v55 = vsel %vm628_vm2, %v1350_v54, 0 }
 0x661   : > { %2357 = vmatprep.subr.msk.bf16.mxu0 %vm628_vm2, %v1351_v53 }
 0x664   : > { %1384 = vmatpush1.bf16.msra.mxu0 %v1376_v55  ;;  %v1445_v55 = vld [vmem:[%s3408_s8 + $0x8] sm:$0xff] }
 0x669   : > { %2358 = vmatmul.mubr.msk.bf16.vlgmr.msra.gmra.mrb[8].mxu0 %vm1122_vm10, %v2662_v56  ;;  %v1438_v61 = vpop.permute.xlu1 %1437  ;;  %v1444_v56 = vld [vmem:[%s3408_s8] sm:$0xff] }
 0x66a   : > { %1971 = vmatprep.mubr.bf16.mxu0 %v2765_v6 }
 0x73c   : > { %v1415_v58 = vpop.f32.mrb[8].mxu0 }
 0x73d   : > { %v1440_v59 = vadd.f32 %v1433_v57, %v1415_v58  ;;  %v1417_v60 = vpop.f32.mrb[9].mxu0 }
 0x73e   : > { %v1441_v62 = vadd.f32 %v1433_v57, %v1417_v60  ;;  %v1419_v63 = vpop.f32.mrb[10].mxu0 }
 0x73f   : > { %v1442_v1 = vadd.f32 %v1438_v61, %v1419_v63  ;;  %v1421_v2 = vpop.f32.mrb[11].mxu0 }
 0x740   : > { %v1443_v3 = vadd.f32 %v1438_v61, %v1421_v2  ;;  %v1451_v4 = vadd.f32 %v1441_v62, %v1440_v59  ;;  %v1447_v61 = vld [vmem:[%s3409_s9 + $0x8] sm:$0xff] }
 0x742   : > { %1452 = vadd.xlane.f32.xlu0 %v1451_v4  ;;  %v1454_v5 = vadd.f32 %v1443_v3, %v1442_v1 }
 0x744   : > { %1455 = vadd.xlane.f32.xlu1 %v1454_v5 }
 0x7cf   : > { %v1453_v10 = vpop.xlane.xlu0 %1452 }
 0x7d1   : > { %v1456_v13 = vpop.xlane.xlu1 %1455 }
 0x7d2   : > { %v2453_v14 = vpack.c.bf16 %v1456_v13, %v1453_v10 }
 0x7d4   : > { %2454 = vmatpush3.bf16.msra.mxu1 %v2453_v14 }
 0x7d7   : > { %2433 = vmatmul.mubr.msk.f32.vlgmr.msra.gmra.mrb[2].mxu1 %vm1457_vm13, %v1450_v15 }
 0x7d8   : > { %2437 = vmatprep.mubr.msk.f32.mxu1 %vm624_vm3, %v1448_v16 }
 0x8aa   : > { %v1527_v19 = vpop.f32.mrb[2].mxu1 }
 0x8ab   : > { %2435 = vmatprep.subr.msk.mxu1 %vm628_vm2, %v1527_v19  ;;  %v2434_v21 = vpop.f32.mrb[3].mxu1 }
 0x8ac   : > { %2436 = vmatpush3.msk.msra.mxu1 %vm628_vm2, %v1527_v19 }
 0x8ad   : > { %2438 = vmatmul.mubr.msk.f32.vlgmr.msra.gmra.mrb[4].mxu1 %vm624_vm3, %v1449_v20  ;;  %2455 = vmatprep.subr.bf16.mxu1 %v2774_v8 }
 0x8ae   : > { %2444 = vmatprep.mubr.msk.f32.mxu1 %vm2764_vm0, %v2763_v0 }
 0x980   : > { %v2439_v22 = vpop.f32.mrb[4].mxu1 }
 0x981   : > { %1622 = vperm.xlu1 %2539, %v2439_v22   ;;  %v1606_v23 = vpop.f32.mrb[5].mxu1 }
 0x982   : > { %1617 = vperm.xlu0 %2538, %v1606_v23  }
 0xa00   : > { %v1623_v25 = vpop.permute.xlu1 %1622 }
 0xa01   : > { %v1627_v27 = vsub.f32 %v1442_v1, %v1623_v25  ;;  %v1628_v28 = vsub.f32 %v1443_v3, %v1623_v25  ;;  %v1618_v29 = vpop.permute.xlu0 %1617 }
 0xa02   : > { %v1625_v31 = vsub.f32 %v1440_v59, %v1618_v29  ;;  %v1626_v32 = vsub.f32 %v1441_v62, %v1618_v29  ;;  %v1446_v62 = vld [vmem:[%s3409_s9] sm:$0xff] }
 0xa03   : > { %v1631_v33 = vmul.f32 %v1627_v27, %v1627_v27  ;;  %v1632_v34 = vmul.f32 %v1628_v28, %v1628_v28 }
 0xa04   : > { %v1629_v41 = vmul.f32 %v1625_v31, %v1625_v31  ;;  %v1630_v42 = vmul.f32 %v1626_v32, %v1626_v32 }
 0xa05   : > { %v1636_v51 = vadd.f32 %v1632_v34, %v1631_v33 }
 0xa06   : > { %v1633_v43 = vadd.f32 %v1630_v42, %v1629_v41 }
 0xa07   : > { %1637 = vadd.xlane.f32.xlu1 %v1636_v51 }
 0xa08   : > { %1634 = vadd.xlane.f32.xlu0 %v1633_v43 }
 0xa94   : > { %v1638_v44 = vpop.xlane.xlu1 %1637 }
 0xa95   : > { %v1635_v0 = vpop.xlane.xlu0 %1634 }
 0xa96   : > { %v2456_v45 = vpack.c.bf16 %v1638_v44, %v1635_v0 }
 0xa98   : > { %2457 = vmatpush3.bf16.msra.mxu1 %v2456_v45 }
 0xa9b   : > { %2445 = vmatmul.mubr.msk.f32.vlgmr.msra.gmra.mrb[6].mxu1 %vm1457_vm13, %v1450_v15 }
 0xa9c   : > { %2449 = vmatprep.mubr.msk.f32.mxu1 %vm624_vm3, %v1448_v16 }
 0xb6e   : > { %v1705_v48 = vpop.f32.mrb[6].mxu1 }
 0xb6f   : > { %2447 = vmatprep.subr.msk.mxu1 %vm628_vm2, %v1705_v48  ;;  %v2446_v49 = vpop.f32.mrb[7].mxu1 }
 0xb70   : > { %2448 = vmatpush3.msk.msra.mxu1 %vm628_vm2, %v1705_v48 }
 0xb71   : > { %2450 = vmatmul.mubr.msk.f32.vlgmr.msra.gmra.mrb[8].mxu1 %vm624_vm3, %v1449_v20 }
 0xb72   : > { %2022 = vmatprep.mubr.bf16.mxu1 %v2765_v6 }
 0xc44   : > { %v2451_v50 = vpop.f32.mrb[8].mxu1 }
 0xc45   : > { %v1784_v52 = vadd.f32 1e-05, %v2451_v50  ;;  %v1778_v53 = vpop.f32.mrb[9].mxu1 }
 0xc46   : > { %v1779_v54 = vadd.f32 1e-05, %v1778_v53 }
 0xc47   : > { %2677 = vrsqrt.f32 %v1784_v52 }
 0xc48   : > { %2679 = vrsqrt.f32 %v1779_v54 }
 0xc51   : > { %v2678_v57 = vpop.eup %2677 }
 0xc52   : > { %v2680_v58 = vpop.eup %2679  ;;  %v1790_v59 = vmul.f32 %v2678_v57, %v1445_v55  ;;  %v2139_v57 = vld [vmem:[%s3413_s13] sm:$0xff] }
 0xc53   : > { %v1789_v60 = vmul.f32 %v2680_v58, %v1444_v56  ;;  %v2140_v58 = vld [vmem:[%s3413_s13 + $0x8] sm:$0xff] }
 0xc54   : > { %1798 = vperm.xlu1 %2539, %v1790_v59   ;;  %v2159_v59 = vld [vmem:[%s3415_s15] sm:$0xff] }
 0xc55   : > { %1793 = vperm.xlu0 %2538, %v1789_v60   ;;  %v2160_v60 = vld [vmem:[%s3415_s15 + $0x8] sm:$0xff] }
 0xc58   : > { %1812 = vperm.xlu1 %2539, %v1447_v61  }
 0xc59   : > { %1807 = vperm.xlu0 %2538, %v1446_v62  }
 0xcd3   : > { %v1799_v63 = vpop.permute.xlu1 %1798 }
 0xcd4   : > { %v1794_v1 = vpop.permute.xlu0 %1793  ;;  %v1803_v2 = vmul.f32 %v1799_v63, %v1627_v27  ;;  %v1804_v3 = vmul.f32 %v1799_v63, %v1628_v28 }
 0xcd5   : > { %v1801_v4 = vmul.f32 %v1794_v1, %v1625_v31  ;;  %v1802_v5 = vmul.f32 %v1794_v1, %v1626_v32 }
 0xcd7   : > { %v1813_v8 = vpop.permute.xlu1 %1812 }
 0xcd8   : > { %v1817_v10 = vadd.f32 %v1813_v8, %v1803_v2  ;;  %v1818_v13 = vadd.f32 %v1813_v8, %v1804_v3  ;;  %v1808_v14 = vpop.permute.xlu0 %1807 }
 0xcd9   : > { %v1815_v15 = vadd.f32 %v1808_v14, %v1801_v4  ;;  %v1816_v16 = vadd.f32 %v1808_v14, %v1802_v5 }
 0xcda   : > { %v1821_v19 = vsub.f32 0.0, %v1817_v10  ;;  %v1822_v20 = vsub.f32 0.0, %v1818_v13 }
 0xcdb   : > { %v1819_v21 = vsub.f32 0.0, %v1815_v15  ;;  %v1820_v22 = vsub.f32 0.0, %v1816_v16 }
 0xcdc   : > { %v1827_v23 = vmul.f32 1.442695, %v1821_v19  ;;  %v1829_v25 = vmul.f32 1.442695, %v1822_v20 }
 0xcdd   : > { %v1823_v29 = vmul.f32 1.442695, %v1819_v21  ;;  %v1825_v33 = vmul.f32 1.442695, %v1820_v22 }
 0xcde   : > { %2681 = vpow2.f32 %v1827_v23 }
 0xcdf   : > { %2683 = vpow2.f32 %v1829_v25 }
 0xce0   : > { %2685 = vpow2.f32 %v1823_v29 }
 0xce1   : > { %2687 = vpow2.f32 %v1825_v33 }
 0xce8   : > { %v2682_v27 = vpop.eup %2681 }
 0xce9   : > { %v2684_v28 = vpop.eup %2683  ;;  %v1833_v31 = vadd.f32 1.0, %v2682_v27 }
 0xcea   : > { %v2686_v32 = vpop.eup %2685  ;;  %v1834_v34 = vadd.f32 1.0, %v2684_v28 }
 0xceb   : > { %v2688_v41 = vpop.eup %2687  ;;  %2689 = vrcp.f32 %v1833_v31  ;;  %v1831_v42 = vadd.f32 1.0, %v2686_v32 }
 0xcec   : > { %2691 = vrcp.f32 %v1834_v34  ;;  %v1832_v51 = vadd.f32 1.0, %v2688_v41 }
 0xced   : > { %2693 = vrcp.f32 %v1831_v42 }
 0xcee   : > { %2695 = vrcp.f32 %v1832_v51 }
 0xcf5   : > { %v2690_v43 = vpop.eup %2689 }
 0xcf6   : > { %v2692_v44 = vpop.eup %2691  ;;  %v3193_v0 = vmul.f32 %v2690_v43, %v1817_v10 }
 0xcf7   : > { %v2694_v45 = vpop.eup %2693  ;;  %v3195_v48 = vmul.f32 %v2692_v44, %v1818_v13 }
 0xcf8   : > { %v2696_v49 = vpop.eup %2695  ;;  %v3197_v50 = vmul.f32 %v2694_v45, %v1815_v15 }
 0xcf9   : > { %v3199_v52 = vmul.f32 %v2696_v49, %v1816_v16 }
 0xcfa   : > { %v2580_v53 = vpack.i.bf16 %v3193_v0, %v3197_v50  ;;  %v1909_v56 = vpack.c.bf16 %v3193_v0, %v3197_v50 }
 0xcfb   : > { %v2585_v54 = vpack.i.bf16 %v3195_v48, %v3199_v52  ;;  %v1910_v55 = vpack.c.bf16 %v3195_v48, %v3199_v52 }
 0xcfc   : > { %2581 = vrot.lane.b32.xlu0 %v2580_v53, %s2770_s5 }
 0xcfd   : > { %2586 = vrot.lane.b32.xlu1 %v2585_v54, %s2770_s5  ;;  %s3446_s5 = smov 1  }
 0xd00   : > { %2591 = vrot.lane.b32.xlu0 %v2580_v53, %s3430_s4 }
 0xd01   : > { %2596 = vrot.lane.b32.xlu1 %v2585_v54, %s3430_s4 }
 0xd04   : > { %2601 = vrot.lane.b32.xlu0 %v2580_v53, %s3443_s19 }
 0xd05   : > { %2606 = vrot.lane.b32.xlu1 %v2585_v54, %s3443_s19 }
 0xd08   : > { %2611 = vrot.lane.b32.xlu0 %v2580_v53, %s3444_s26 }
 0xd09   : > { %2616 = vrot.lane.b32.xlu1 %v2585_v54, %s3444_s26 }
 0xd0c   : > { %2621 = vrot.lane.b32.xlu0 %v2580_v53, %s3445_s23 }
 0xd0d   : > { %2626 = vrot.lane.b32.xlu1 %v2585_v54, %s3445_s23  ;;  %s2775_s23 = smov [#allocation2]  }
 0xd10   : > { %2631 = vrot.lane.b32.xlu0 %v2580_v53, %s3446_s5 }
 0xd11   : > { %2636 = vrot.lane.b32.xlu1 %v2585_v54, %s3446_s5  ;;  %s527_s5 = sand.u32 1, %s2753_s22  }
 0xd14   : > { %2641 = vrot.lane.b32.xlu0 %v2580_v53, %s3447_s30 }
 0xd15   : > { %2646 = vrot.lane.b32.xlu1 %v2585_v54, %s3447_s30  ;;  %s2328_s30 = sshll.u32 %s527_s5, 5 }
 0xd18   : > { %2651 = vrot.lane.b32.xlu0 %v2580_v53, %s3448_s3 }
 0xd19   : > { %2656 = vrot.lane.b32.xlu1 %v2585_v54, %s3448_s3  ;;  %s529_s3 = scalar_lea.vmem [#allocation2], %s2328_s30  ;;  %s2703_s30 = sshll.u32 %s2775_s23, 4  ;;  %s2704_s30 = int_to_ptr.vmem [resolvable:$false] %s2703_s30 }
 0xd1a   : > { %s2250_s28 = sshll.u32 %s529_s3, 4  ;;  %s2705_s4 = scalar_lea.vmem %s2704_s30, 1024  ;;  %s3349_s28 = int_to_ptr.vmem [resolvable:$true] %s2250_s28 }
 0xd1b   : > { %s2699_s26 = scalar_lea.vmem %s3349_s28, 512  ;;  %p2706_p0 = scmp.lt.s32.totalorder %s3349_s28, %s2704_s30 }
 0xd1c   : > { %2143 = vperm.xlu0 %2538, %v2139_v57   ;;  %p2700_p11 = scmp.ne.s32.totalorder %s3349_s28, %s2699_s26  ;;  %p2707_p1 = scmp.lt.s32.totalorder %s2705_s4, %s2699_s26 }
 0xd1d   : > { %2148 = vperm.xlu1 %2539, %v2140_v58  }
 0xd1e   : > { %p2701_p12 = pnand %p2700_p11, %p2900_p5  ;;  %p2708_p2 = por %p2707_p1, %p2706_p0 }
 0xd20   : > { %2163 = vperm.xlu0 %2538, %v2159_v59   ;;  %p2702_p13 = pneg %p2701_p12 }
 0xd21   : > { %2168 = vperm.xlu1 %2539, %v2160_v60  }
 0xd22   : > { %p2709_p3 = pnand %p2708_p2, %p2702_p13 }
 0xd6e   : > { %v2582_v61 = vpop.permute.xlu0 %2581 }
 0xd6f   : > { %v2587_v62 = vpop.permute.xlu1 %2586  ;;  %v2584_v63 = vunpack.i.h.bf16 %v2582_v61  ;;  %v2583_v1 = vunpack.i.l.bf16 %v2582_v61 }
 0xd70   : > { %v2589_v2 = vunpack.i.h.bf16 %v2587_v62  ;;  %v2588_v3 = vunpack.i.l.bf16 %v2587_v62 }
 0xd72   : > { %v1852_v4 = vsel %vm891_vm7, %v2584_v63, %v2589_v2  ;;  %v1854_v5 = vsel %vm891_vm7, %v2589_v2, %v2584_v63  ;;  %v1851_v8 = vsel %vm891_vm7, %v2583_v1, %v2588_v3  ;;  %v1853_v10 = vsel %vm891_vm7, %v2588_v3, %v2583_v1  ;;  %v2592_v13 = vpop.permute.xlu0 %2591 }
 0xd73   : > { %v1855_v14 = vpack.c.bf16 %v1854_v5, %v1853_v10  ;;  %v2597_v15 = vpop.permute.xlu1 %2596  ;;  %v2594_v16 = vunpack.i.h.bf16 %v2592_v13  ;;  %v2593_v19 = vunpack.i.l.bf16 %v2592_v13  ;;  %v1856_v20 = vpack.c.bf16 %v1852_v4, %v1851_v8 }
 0xd74   : > { %v2599_v21 = vunpack.i.h.bf16 %v2597_v15  ;;  %v2598_v22 = vunpack.i.l.bf16 %v2597_v15 }
 0xd75   : > { %v1858_v23 = vmul.bf16 %v1856_v20, %v3066_v9  ;;  %v1857_v25 = vmul.bf16 %v1855_v14, %v3078_v17 }
 0xd76   : > { %v1868_v29 = vsel %vm930_vm6, %v2594_v16, %v2599_v21  ;;  %v1870_v33 = vsel %vm930_vm6, %v2599_v21, %v2594_v16  ;;  %v1867_v27 = vsel %vm930_vm6, %v2593_v19, %v2598_v22  ;;  %v1869_v28 = vsel %vm930_vm6, %v2598_v22, %v2593_v19  ;;  %v2602_v31 = vpop.permute.xlu0 %2601 }
 0xd77   : > { %v1871_v32 = vpack.c.bf16 %v1870_v33, %v1869_v28  ;;  %v2607_v34 = vpop.permute.xlu1 %2606  ;;  %v2604_v41 = vunpack.i.h.bf16 %v2602_v31  ;;  %v2603_v42 = vunpack.i.l.bf16 %v2602_v31  ;;  %1990 = vmatprep.subr.bf16.mxu1 %v1858_v23  ;;  %v1872_v9 = vpack.c.bf16 %v1868_v29, %v1867_v27 }
 0xd78   : > { %v2609_v17 = vunpack.i.h.bf16 %v2607_v34  ;;  %v2608_v51 = vunpack.i.l.bf16 %v2607_v34  ;;  %1991 = vmatpush1.bf16.msra.mxu1 %v1857_v25 }
 0xd79   : > { %v1874_v43 = vmul.bf16 %v1872_v9, %v3045_v46  ;;  %v1873_v44 = vmul.bf16 %v1871_v32, %v3048_v47 }
 0xd7a   : > { %v1884_v45 = vsel %vm970_vm9, %v2604_v41, %v2609_v17  ;;  %v1886_v49 = vsel %vm970_vm9, %v2609_v17, %v2604_v41  ;;  %v1883_v53 = vsel %vm970_vm9, %v2603_v42, %v2608_v51  ;;  %v1885_v54 = vsel %vm970_vm9, %v2608_v51, %v2603_v42  ;;  %v2612_v57 = vpop.permute.xlu0 %2611 }
 0xd7b   : > { %v1887_v58 = vpack.c.bf16 %v1886_v49, %v1885_v54  ;;  %v2617_v59 = vpop.permute.xlu1 %2616  ;;  %v2614_v60 = vunpack.i.h.bf16 %v2612_v57  ;;  %v2613_v61 = vunpack.i.l.bf16 %v2612_v57  ;;  %1992 = vmatprep.subr.bf16.mxu1 %v1874_v43  ;;  %v1888_v46 = vpack.c.bf16 %v1884_v45, %v1883_v53 }
 0xd7c   : > { %v2619_v47 = vunpack.i.h.bf16 %v2617_v59  ;;  %v2618_v62 = vunpack.i.l.bf16 %v2617_v59  ;;  %1993 = vmatpush1.bf16.msra.mxu1 %v1873_v44 }
 0xd7d   : > { %v1890_v63 = vmul.bf16 %v1888_v46, %v3091_v38  ;;  %v1889_v1 = vmul.bf16 %v1887_v58, %v3094_v39  ;;  %v2663_v39 = vld [vmem:[%s3412_s12] sm:$0xff]  }
 0xd7e   : > { %v2042_v2 = vsel %vm1236_vm8, %v2614_v60, %v2619_v47  ;;  %v2044_v3 = vsel %vm1236_vm8, %v2619_v47, %v2614_v60  ;;  %v2041_v4 = vsel %vm1236_vm8, %v2613_v61, %v2618_v62  ;;  %v2043_v5 = vsel %vm1236_vm8, %v2618_v62, %v2613_v61  ;;  %v2622_v8 = vpop.permute.xlu0 %2621 }
 0xd7f   : > { %v2045_v10 = vpack.c.bf16 %v2042_v2, %v2041_v4  ;;  %v2627_v13 = vpop.permute.xlu1 %2626  ;;  %v2624_v14 = vunpack.i.h.bf16 %v2622_v8  ;;  %v2623_v15 = vunpack.i.l.bf16 %v2622_v8  ;;  %1994 = vmatprep.subr.bf16.mxu1 %v1890_v63  ;;  %v2046_v38 = vpack.c.bf16 %v2044_v3, %v2043_v5  ;;  %v2697_v5 = vld [vmem:[%s2922_s29] sm:$0xff] }
 0xd80   : > { %v2629_v16 = vunpack.i.h.bf16 %v2627_v13  ;;  %v2628_v19 = vunpack.i.l.bf16 %v2627_v13  ;;  %1995 = vmatpush1.bf16.msra.mxu1 %v1889_v1  ;;  %v2157_v8 = vpack.c.bf16 %v2697_v5, %v2697_v5 }
 0xd81   : > { %v2048_v20 = vmul.bf16 %v2046_v38, %v3025_v26  ;;  %v2047_v21 = vmul.bf16 %v2045_v10, %v3029_v30  ;;  %v2698_v10 = vld [vmem:[%s2922_s29 + $0x8] sm:$0xff]  ;;  %s2387_s29 = sshll.u32 %s2883_s25, 9  ;;  %s3358_s25 = scalar_lea.sflag [#allocation3], %s527_s5 }
 0xd82   : > { %v2058_v22 = vsel %vm1276_vm11, %v2624_v14, %v2629_v16  ;;  %v2060_v23 = vsel %vm1276_vm11, %v2629_v16, %v2624_v14  ;;  %v2057_v25 = vsel %vm1276_vm11, %v2623_v15, %v2628_v19  ;;  %v2059_v29 = vsel %vm1276_vm11, %v2628_v19, %v2623_v15  ;;  %v2632_v33 = vpop.permute.xlu0 %2631  ;;  %s3354_s19 = scalar_lea.hbm %s3416_s16, %s2387_s29 }
 0xd83   : > { %v2061_v27 = vpack.c.bf16 %v2058_v22, %v2057_v25  ;;  %v2637_v28 = vpop.permute.xlu1 %2636  ;;  %v2634_v31 = vunpack.i.h.bf16 %v2632_v33  ;;  %v2633_v32 = vunpack.i.l.bf16 %v2632_v33  ;;  %2092 = vmatprep.subr.bf16.mxu1 %v2048_v20  ;;  %2372 = vmatmul.mubr.msk.bf16.vlgmr.msra.gmra.mrb[12].mxu1 %vm1935_vm14, %v2663_v39  ;;  %v2062_v26 = vpack.c.bf16 %v2060_v23, %v2059_v29 }
 0xd84   : > { %v2639_v30 = vunpack.i.h.bf16 %v2637_v28  ;;  %v2638_v34 = vunpack.i.l.bf16 %v2637_v28  ;;  %2093 = vmatpush1.bf16.msra.mxu1 %v2047_v21  ;;  %2124 = vmatprep.mubr.bf16.mxu1 %v2765_v6  ;;  %v2158_v13 = vpack.c.bf16 %v2698_v10, %v2698_v10  ;;  %v2180_v7 = vsel %vm628_vm2, %v2157_v8, 0 }
 0xd85   : > { %v2064_v41 = vmul.bf16 %v2062_v26, %v3115_v11  ;;  %v2063_v42 = vmul.bf16 %v2061_v27, %v3118_v12 }
 0xd86   : > { %v1902_v9 = vsel %vm1024_vm4, %v2634_v31, %v2639_v30  ;;  %v1904_v17 = vsel %vm1024_vm4, %v2639_v30, %v2634_v31  ;;  %v1901_v51 = vsel %vm1024_vm4, %v2633_v32, %v2638_v34  ;;  %v1903_v43 = vsel %vm1024_vm4, %v2638_v34, %v2633_v32  ;;  %v2642_v44 = vpop.permute.xlu0 %2641 }
 0xd87   : > { %v1905_v45 = vpack.c.bf16 %v1904_v17, %v1903_v43  ;;  %v2647_v49 = vpop.permute.xlu1 %2646  ;;  %v2644_v53 = vunpack.i.h.bf16 %v2642_v44  ;;  %v2643_v54 = vunpack.i.l.bf16 %v2642_v44  ;;  %2094 = vmatprep.subr.bf16.mxu1 %v2064_v41  ;;  %v1906_v11 = vpack.c.bf16 %v1902_v9, %v1901_v51 }
 0xd88   : > { %v2649_v12 = vunpack.i.h.bf16 %v2647_v49  ;;  %v2648_v57 = vunpack.i.l.bf16 %v2647_v49  ;;  %2095 = vmatpush1.bf16.msra.mxu1 %v2063_v42 }
 0xd89   : > { %v1908_v58 = vmul.bf16 %v1906_v11, %v3011_v18  ;;  %v1907_v59 = vmul.bf16 %v1905_v45, %v3020_v24 }
 0xd8a   : > { %v2074_v60 = vsel %vm1316_vm12, %v2644_v53, %v2649_v12  ;;  %v2076_v61 = vsel %vm1316_vm12, %v2649_v12, %v2644_v53  ;;  %v2073_v46 = vsel %vm1316_vm12, %v2643_v54, %v2648_v57  ;;  %v2075_v47 = vsel %vm1316_vm12, %v2648_v57, %v2643_v54  ;;  %v2652_v62 = vpop.permute.xlu0 %2651 }
 0xd8b   : > { %v2077_v63 = vpack.c.bf16 %v2074_v60, %v2073_v46  ;;  %v2657_v1 = vpop.permute.xlu1 %2656  ;;  %v2654_v18 = vunpack.i.h.bf16 %v2652_v62  ;;  %v2653_v2 = vunpack.i.l.bf16 %v2652_v62  ;;  %1939 = vmatprep.subr.bf16.mxu0 %v1908_v58  ;;  %v2078_v24 = vpack.c.bf16 %v2076_v61, %v2075_v47 }
 0xd8c   : > { %v2659_v3 = vunpack.i.h.bf16 %v2657_v1  ;;  %v2658_v4 = vunpack.i.l.bf16 %v2657_v1  ;;  %1940 = vmatpush1.bf16.msra.mxu0 %v1907_v59 }
 0xd8d   : > { %1941 = vmatprep.subr.bf16.mxu0 %v1910_v55  ;;  %v2080_v14 = vmul.bf16 %v2078_v24, %v3135_v37  ;;  %v2079_v15 = vmul.bf16 %v2077_v63, %v3138_v40  ;;  %v2664_v37 = vld [vmem:[%s3412_s12 + $0x10] sm:$0xff]   ;;  %v2665_v55 = vld [vmem:[%s3412_s12 + $0x8] sm:$0xff]  }
 0xd8e   : > { %v1920_v38 = vsel %vm1066_vm5, %v2654_v18, %v2659_v3  ;;  %v1922_v39 = vsel %vm1066_vm5, %v2659_v3, %v2654_v18  ;;  %v1919_v16 = vsel %vm1066_vm5, %v2653_v2, %v2658_v4  ;;  %v1921_v19 = vsel %vm1066_vm5, %v2658_v4, %v2653_v2 }
 0xd8f   : > { %v1923_v20 = vpack.c.bf16 %v1920_v38, %v1919_v16  ;;  %2096 = vmatprep.subr.bf16.mxu1 %v2080_v14  ;;  %v1924_v48 = vpack.c.bf16 %v1922_v39, %v1921_v19 }
 0xd90   : > { %1942 = vmatpush1.bf16.msra.mxu0 %v1909_v56  ;;  %2097 = vmatpush1.bf16.msra.mxu1 %v2079_v15 }
 0xd91   : > { %v1926_v40 = vmul.bf16 %v1924_v48, %v3033_v35  ;;  %v1925_v52 = vmul.bf16 %v1923_v20, %v3036_v36  ;;  %2378 = vmatprep.subr.msk.bf16.mxu1 %vm628_vm2, %v2158_v13  ;;  %v2666_v35 = vld [vmem:[%s3414_s14] sm:$0xff]  }
 0xd93   : > { %1943 = vmatprep.subr.bf16.mxu0 %v1926_v40  ;;  %2376 = vmatmul.mubr.msk.bf16.vlgmr.msra.gmra.mrb[12].mxu1 %vm1935_vm14, %v2664_v37 }
 0xd94   : > { %1944 = vmatpush1.bf16.msra.mxu0 %v1925_v52  ;;  %2186 = vmatpush1.bf16.msra.mxu1 %v2180_v7 }
 0xd95   : > { %2217 = vmatprep.mubr.bf16.mxu1 %v2765_v6 }
 0xd97   : > { %2370 = vmatmul.mubr.msk.bf16.vlgmr.msra.gmra.mrb[12].mxu0 %vm1935_vm14, %v2665_v55 }
 0xd9b   : > { %v2144_v36 = vpop.permute.xlu0 %2143 }
 0xd9c   : > { %v2149_v56 = vpop.permute.xlu1 %2148 }
 0xd9f   : > { %2379 = vmatmul.mubr.msk.bf16.vlgmr.msra.gmra.mrb[12].mxu1 %vm550_vm1, %v2666_v35  ;;  %v2164_v29 = vpop.permute.xlu0 %2163 }
 0xda0   : > { %v2169_v28 = vpop.permute.xlu1 %2168 }
 0xe6a   : > { %v1973_v0 = vpop.f32.mrb[12].mxu0 }
 0xe6b   : > { %v1975_v50 = vpop.f32.mrb[13].mxu0  ;;  %v2458_v22 = vadd.f32 %v2144_v36, %v1973_v0 }
 0xe6c   : > { %v1977_v21 = vpop.f32.mrb[14].mxu0  ;;  %v2461_v25 = vadd.f32 %v2144_v36, %v1975_v50 }
 0xe6d   : > { %v1979_v23 = vpop.f32.mrb[15].mxu0  ;;  %v2464_v6 = vadd.f32 %v2149_v56, %v1977_v21  ;;  %v2459_v27 = vadd.f32 %v2458_v22, %v2164_v29 }
 0xe6e   : > { %v2467_v33 = vadd.f32 %v2149_v56, %v1979_v23  ;;  %v2462_v32 = vadd.f32 %v2461_v25, %v2164_v29 }
 0xe6f   : > { %v2465_v34 = vadd.f32 %v2464_v6, %v2169_v28 }
 0xe70   : > { %v2468_v9 = vadd.f32 %v2467_v33, %v2169_v28 }
 0xe72   : > { %v2219_v31 = vpop.f32.mrb[12].mxu1 }
 0xe73   : > { %v2460_v26 = vadd.f32 %v2459_v27, %v2219_v31  ;;  %v2221_v30 = vpop.f32.mrb[13].mxu1 }
 0xe74   : > { %v2463_v41 = vadd.f32 %v2462_v32, %v2221_v30  ;;  %v2223_v42 = vpop.f32.mrb[14].mxu1 }
 0xe75   : > { %2232 = vst [vmem:[%s529_s3] sm:$0xff] %v2460_v26  ;;  %v2466_v17 = vadd.f32 %v2465_v34, %v2223_v42  ;;  %v2225_v51 = vpop.f32.mrb[15].mxu1 }
 0xe76   : > { %2233 = vst [vmem:[%s529_s3 + $0x8] sm:$0xff] %v2463_v41  ;;  %v2469_v43 = vadd.f32 %v2468_v9, %v2225_v51 }
 0xe77   : > { %2234 = vst [vmem:[%s529_s3 + $0x10] sm:$0xff] %v2466_v17 }
 0xe78   : > { %2235 = vst [vmem:[%s529_s3 + $0x18] sm:$0xff] %v2469_v43 }
 0xe79   : > { %2712 = shalt.err (!%p2709_p3)
}
 0xe7a   : > { %s2713_s5 = scalar_lea.hbm %s3354_s19, 512  ;;  %s2717_s20 = scalar_lea.hbm %s3416_s16, 1024 }
 0xe7b   : > { %p2714_p4 = scmp.ne.s32.totalorder %s3354_s19, %s2713_s5  ;;  %p2718_p9 = scmp.lt.u32.totalorder %s3354_s19, %s3416_s16 }
 0xe7c   : > { %p2719_p10 = scmp.lt.u32.totalorder %s2717_s20, %s2713_s5  ;;  %p2721_p12 = scmp.lt.u32.totalorder %s2713_s5, %s3354_s19 }
 0xe7d   : > { %p2715_p7 = pnand %p2714_p4, %p2900_p5 }
 0xe7e   : > { %p2720_p11 = por %p2719_p10, %p2718_p9 }
 0xe7f   : > { %p2716_p8 = pneg %p2715_p7 }
 0xe80   : > { %p2722_p13 = por %p2721_p12, %p2720_p11 }
 0xe82   : > { %p2723_p0 = pnand %p2722_p13, %p2716_p8 }
 0xe84   : > { %2726 = shalt.err (!%p2723_p0)
}
 0xe85   : > { %s2776_s4 = smov 256   ;;  %s3449_s26 = smov 16  }
 0xe86   : > { %2486 = dma.vmem_to_hbm [thread:$0]  (%p2900_p5), %s3349_s28, 512, %s3354_s19, %s3358_s25, %s2776_s4, %s2776_s4, %s3449_s26  }
 0xe87 PF: > { %p2492_p1 = scmp.ge.s32.totalorder %s2761_s24, 2  ;;  %s2265_s30 = sand.u32 1, %s2749_s21  }
 0xe88   : > { %s2266_s5 = scalar_lea.sflag [#allocation3], %s2265_s30 }
 0xe89   : > { %p2489_p2 = pnand %p2492_p1, %p2904_p6 }
 0xe8b   : > { %2744 = dma.done.wait (!%p2489_p2), %s2266_s5, 512  }
 0xe8c   : > { %2746 = vsyncadd (!%p2489_p2), %s2266_s5, 4294966784  ;;  %s3450_s3 = sld [smem:[#allocation5_spill]]  ;;  %s3451_s23 = sld [smem:[#allocation6_spill]] }
 0xe8d   : > { %p26_p3 = scmp.ge.s32.totalorder %s2887_s27, 4   ;;  %s3452_s21 = smov %s2753_s22 }
 0xe8e   : > { %s3454_s24 = smov %s2887_s27 }
 0xe8f   :  { %28 = sbr.rel (!%p26_p3) target bundleno = 8 (0x8), region = 133 }
 0xe92   : > { %s3453_s22 = smov %s3450_s3 }
 0xe96   :  { %2271 = vsyncpa [#allocation3], 1 }
 0xe97   :  { %2273 = vsyncpa [#allocation3 + $0x1], 1 }

// kernel: tpu_custom_call.1
= control target key start
LH: loop header
LB: loop body
LE: loop exit
PB: predicated region body
PF: predicated region fallthrough
CT: control target
= control target key end

     0   :  { %s3400_s0 = inlined_call_operand.vmem [shape: f32[2,8,256], index: 0, kind: input, shape index: {}]   ;;  %s3401_s1 = inlined_call_operand.vmem [shape: f32[2,16,1], index: 1, kind: input, shape index: {}]   ;;  %s3402_s2 = inlined_call_operand.vmem [shape: f32[9,256], index: 2, kind: input, shape index: {}]   ;;  %s3403_s3 = inlined_call_operand.vmem [shape: f32[8,1], index: 3, kind: input, shape index: {}]   ;;  %s3404_s4 = inlined_call_operand.vmem [shape: f32[8,1], index: 4, kind: input, shape index: {}]   ;;  %s3405_s5 = inlined_call_operand.vmem [shape: f32[8,4], index: 5, kind: input, shape index: {}]   ;;  %s3406_s6 = inlined_call_operand.vmem [shape: f32[4,8], index: 6, kind: input, shape index: {}]   ;;  %s3407_s7 = inlined_call_operand.vmem [shape: bf16[3,16,24], index: 7, kind: input, shape index: {}]   ;;  %s3408_s8 = inlined_call_operand.vmem [shape: f32[16,1], index: 8, kind: input, shape index: {}]   ;;  %s3409_s9 = inlined_call_operand.vmem [shape: f32[16,1], index: 9, kind: input, shape index: {}]   ;;  %s3410_s10 = inlined_call_operand.vmem [shape: f32[16,4], index: 10, kind: input, shape index: {}]   ;;  %s3411_s11 = inlined_call_operand.vmem [shape: f32[4,16], index: 11, kind: input, shape index: {}]   ;;  %s3412_s12 = inlined_call_operand.vmem [shape: bf16[3,16,48], index: 12, kind: input, shape index: {}]   ;;  %s3413_s13 = inlined_call_operand.vmem [shape: f32[16,1], index: 13, kind: input, shape index: {}]   ;;  %s3414_s14 = inlined_call_operand.vmem [shape: bf16[16,8], index: 14, kind: input, shape index: {}]   ;;  %s3415_s15 = inlined_call_operand.vmem [shape: f32[16,1], index: 15, kind: input, shape index: {}]   ;;  %s3416_s16 = inlined_call_operand.hbm [shape: f32[2,16,256], index: 16, kind: output, shape index: {}]  }
   0x1   :  { %3431 = sst [smem:[#allocation7_spill]] %s3400_s0 }
   0x2   :  { %3432 = sst [smem:[#allocation8_spill]] %s3403_s3 }
   0x3   :  { %3433 = sst [smem:[#allocation9_spill]] %s3404_s4 }
   0x4   :  { %3434 = sst [smem:[#allocation10_spill]] %s3405_s5 }
   0x5   :  { %21 = vsyncpa [#allocation3], 0 }
   0x6   :  { %23 = vsyncpa [#allocation3 + $0x1], 0  ;;  %s2862_s21 = smov 0   ;;  %s2864_s22 = smov 0  }
   0x7   :  { %s2866_s23 = smov 0   ;;  %s2868_s24 = smov 0  }
   0x8 LB: > { %3435 = sst [smem:[#allocation5_spill]] %s2757_s23  ;;  %s2883_s25 = sadd.s32 4294967295, %s2761_s24   ;;  %s2761_s24 = sphi %s2868_s24, %s3454_s24   ;;  %s2757_s23 = sphi %s2866_s23, %s3451_s23   ;;  %s2753_s22 = sphi %s2864_s22, %s3453_s22   ;;  %s2749_s21 = sphi %s2862_s21, %s3452_s21  }
   0x9   : > { %s2324_s26 = sadd.s32 4294967294, %s2761_s24   ;;  %s2887_s27 = sadd.s32 1, %s2761_s24  }
   0xa   : > { %s382_s28 = sadd.s32 1, %s2757_s23  ;;  %s379_s29 = ssub.s32 %s2761_s24, %s2887_s27 }
   0xb   : > { %p392_p0 = scmp.ne.s32.totalorder %s2757_s23, %s2753_s22  ;;  %p380_p1 = scmp.eq.s32.totalorder %s379_s29, 0 }
   0xc   : > { %p393_p2 = scmp.eq.s32.totalorder %s2883_s25, 1  ;;  %p398_p3 = scmp.ne.s32.totalorder %s2753_s22, %s2749_s21 }
   0xd   : > { %p399_p4 = scmp.eq.s32.totalorder %s2324_s26, 1  ;;  %p2327_p7 = scmp.ge.s32.totalorder %s2761_s24, 1 }
   0xe   : > { %s2898_s30 = scalar_select %p380_p1, %s2757_s23, %s382_s28  }
   0xf   : > { %p2900_p5 = por %p393_p2, %p392_p0  ;;  %p2904_p6 = por %p399_p4, %p398_p3 }
  0x10   : > { %3436 = sst [smem:[#allocation6_spill]] %s2898_s30  ;;  %p475_p8 = scmp.lt.s32.totalorder %s2761_s24, 3 }
  0x12   : > { %p476_p9 = pnand %p2327_p7, %p475_p8 }
  0x13   : > { %p530_p10 = scmp.lt.s32.totalorder (!%p476_p9), %s2883_s25, 1  ;;  %v2763_v0 = vmov (!%p476_p9), 0.0   ;;  %s3439_s28 = sld [smem:[#allocation7_spill]] (!%p476_p9)  ;;  %vm2764_vm0 = vmmov (!%p476_p9), 0   ;;  %v546_v4 = vld [vmem:[%s3406_s6] sm:$0xf] (!%p476_p9)  ;;  %v889_v49 = vlaneseq (!%p476_p9) }
  0x14   : > { %479 = sbr.rel (%p476_p9) target bundleno = 3719 (0xe87), region = 84  ;;  %2408 = vmatprep.subr.mxu0 (!%p476_p9), %v2763_v0  ;;  %2423 = vmatprep.subr.mxu1 (!%p476_p9), %v2763_v0  ;;  %vm550_vm1 = vcmask (!%p476_p9), 64512   ;;  %v2765_v6 = vmov (!%p476_p9), 0   ;;  %vm628_vm2 = vcmask (!%p476_p9), 1043456   ;;  %s3440_s5 = sld [smem:[#allocation10_spill]] (!%p476_p9)  ;;  %vm624_vm3 = vcmask (!%p476_p9), 31744  }
  0x15   : > { %2410 = vmatprep.mubr.msk.f32.mxu0 (!%p476_p9), %vm2764_vm0, %v2763_v0  ;;  %2425 = vmatprep.mubr.msk.f32.mxu1 (!%p476_p9), %vm2764_vm0, %v2763_v0  ;;  %s3441_s3 = sld [smem:[#allocation8_spill]] (!%p476_p9)  ;;  %s3442_s4 = sld [smem:[#allocation9_spill]] (!%p476_p9)  ;;  %v899_v50 = vshrl.u32 (!%p476_p9), %v889_v49, 7  ;;  %v2341_v53 = vld [vmem:[%s3402_s2 + $0x3] ss:$8 sm:$0x3] (!%p476_p9) }
  0x16   : > { %2538 = vset.pattern.permute.xlu0 (!%p476_p9), %v2765_v6  ;;  %2539 = vset.pattern.permute.xlu1 (!%p476_p9), %v2765_v6  ;;  %s3420_s20 = smov (!%p476_p9), 1   ;;  %s3424_s26 = smov (!%p476_p9), 111   ;;  %v2351_v54 = vld [vmem:[%s3402_s2 + $0x6] ss:$8 sm:$0x3] (!%p476_p9)  ;;  %vm1122_vm10 = vcmask (!%p476_p9), 195584  }
  0x17   : > { %v2978_v51 = vsub.s32 (!%p476_p9), 1, %v899_v50  ;;  %v2980_v52 = vsub.s32 (!%p476_p9), 0, %v899_v50  ;;  %v2342_v57 = vld [vmem:[%s3402_s2 + $0x5] ss:$8 sm:$0x3] (!%p476_p9)  ;;  %vm1457_vm13 = vcmask (!%p476_p9), 130048  }
  0x18   : > { %v2339_v60 = vld [vmem:[%s3402_s2 + $0x1] ss:$8 sm:$0x3] (!%p476_p9)  ;;  %s3445_s23 = smov (!%p476_p9), 112   ;;  %vm1935_vm14 = vcmask (!%p476_p9), 392192  }
  0x19   : > { %v1039_v55 = vrot.slane (!%p476_p9), %v2341_v53, %v2978_v51  ;;  %v1035_v56 = vrot.slane (!%p476_p9), %v2341_v53, %v2980_v52  ;;  %v1251_v58 = vrot.slane (!%p476_p9), %v2351_v54, %v2978_v51  ;;  %v1247_v59 = vrot.slane (!%p476_p9), %v2351_v54, %v2980_v52 }
  0x1a   : > { %v545_v7 = vld [vmem:[%s3440_s5] sm:$0xff] (!%p476_p9)  ;;  %s2770_s5 = smov (!%p476_p9), 17   ;;  %v1081_v62 = vrot.slane (!%p476_p9), %v2342_v57, %v2978_v51  ;;  %v1077_v63 = vrot.slane (!%p476_p9), %v2342_v57, %v2980_v52 }
  0x1b   : > { %s2914_s18 = scalar_select %p530_p10, %s2883_s25, 1  ;;  %v543_v24 = vld [vmem:[%s3441_s3] sm:$0xff]  ;;  %v1043_v61 = vpack.c.bf16 %v1039_v55, %v1039_v55 }
  0x1c   : > { %v544_v27 = vld [vmem:[%s3442_s4] sm:$0xff]  ;;  %s3418_s3 = smov 127   ;;  %s3430_s4 = smov 16  }
  0x1d   : > { %s2385_s19 = sshll.u32 %s2914_s18, 4  ;;  %s3428_s18 = smov 15  }
  0x1e   : > { %s2922_s29 = scalar_lea.vmem %s3439_s28, %s2385_s19  ;;  %s539_s30 = scalar_lea.vmem %s3401_s1, %s2385_s19 }
  0x1f   : > { %v541_v1 = vld [vmem:[%s2922_s29] sm:$0xff]  ;;  %v542_v2 = vld [vmem:[%s2922_s29 + $0x8] sm:$0xff]  ;;  %s3422_s28 = smov 113   ;;  %s3426_s19 = smov 112  }
  0x20   : > { %v547_v3 = vadd.f32 %v542_v2, %v541_v1  ;;  %v1428_v47 = vld [vmem:[%s539_s30] sm:$0xff]  ;;  %v1429_v48 = vld [vmem:[%s539_s30 + $0x8] sm:$0xff]  ;;  %s3447_s30 = smov 111  }
  0x22   : > { %548 = vadd.xlane.f32.xlu0 %v547_v3  ;;  %v945_v3 = vrot.slane %v2339_v60, %v2978_v51 }
  0xaf   : > { %v549_v5 = vpop.xlane.xlu0 %548 }
  0xb0   : > { %2409 = vmatpush3.msra.mxu0 %v549_v5  ;;  %v1254_v5 = vpack.c.bf16 %v1247_v59, %v1247_v59 }
  0xb1   : > { %2411 = vmatmul.mubr.msk.f32.vlgmr.msra.gmra.mrb[0].mxu0 %vm550_vm1, %v546_v4  ;;  %2413 = vmatprep.subr.mxu0 %v2763_v0 }
  0xb2   : > { %2415 = vmatprep.mubr.msk.f32.mxu0 %vm2764_vm0, %v2763_v0 }
 0x184   : > { %v620_v8 = vpop.f32.mrb[0].mxu0 }
 0x185   : > { %v2412_v9 = vpop.f32.mrb[1].mxu0  ;;  %2414 = vmatpush3.msk.msra.mxu0 %vm628_vm2, %v620_v8  ;;  %v1052_v8 = vpack.i.b16 %v1043_v61, %v1043_v61 }
 0x186   : > { %2416 = vmatmul.mubr.msk.f32.vlgmr.msra.gmra.mrb[2].mxu0 %vm624_vm3, %v545_v7  ;;  %2418 = vmatprep.subr.mxu0 %v2763_v0  ;;  %v1085_v9 = vpack.c.bf16 %v1081_v62, %v1081_v62 }
 0x187   : > { %2420 = vmatprep.mubr.msk.f32.mxu0 %vm2764_vm0, %v2763_v0 }
 0x259   : > { %v698_v10 = vpop.f32.mrb[2].mxu0 }
 0x25a   : > { %704 = vperm.xlu0 %2538, %v698_v10   ;;  %v2417_v11 = vpop.f32.mrb[3].mxu0  ;;  %v1084_v10 = vpack.c.bf16 %v1077_v63, %v1077_v63 }
 0x25b   : > { %v896_v11 = vld [vmem:[%s3402_s2] ss:$8 sm:$0x3] }
 0x2d9   : > { %v705_v12 = vpop.permute.xlu0 %704 }
 0x2da   : > { %v707_v13 = vsub.f32 %v541_v1, %v705_v12  ;;  %v708_v14 = vsub.f32 %v542_v2, %v705_v12  ;;  %v1042_v1 = vpack.c.bf16 %v1035_v56, %v1035_v56  ;;  %v1255_v2 = vpack.c.bf16 %v1251_v58, %v1251_v58 }
 0x2dc   : > { %v709_v15 = vmul.f32 %v707_v13, %v707_v13  ;;  %v710_v16 = vmul.f32 %v708_v14, %v708_v14  ;;  %v1045_v12 = vpack.i.b16 %v1042_v1, %v1042_v1 }
 0x2de   : > { %v711_v17 = vadd.f32 %v710_v16, %v709_v15  ;;  %v1257_v16 = vpack.i.b16 %v1254_v5, %v1254_v5 }
 0x2e0   : > { %712 = vadd.xlane.f32.xlu1 %v711_v17  ;;  %v905_v17 = vrot.slane %v896_v11, %v2978_v51 }
 0x36d   : > { %v713_v18 = vpop.xlane.xlu1 %712 }
 0x36e   : > { %2419 = vmatpush3.msra.mxu0 %v713_v18  ;;  %v3011_v18 = vrot.slane %v1052_v8, %v2980_v52 }
 0x36f   : > { %2421 = vmatmul.mubr.msk.f32.vlgmr.msra.gmra.mrb[4].mxu0 %vm550_vm1, %v546_v4  ;;  %v941_v4 = vrot.slane %v2339_v60, %v2980_v52 }
 0x370   : > { %1164 = vmatprep.mubr.bf16.mxu0 %v2765_v6 }
 0x371   : > { %v948_v15 = vpack.c.bf16 %v941_v4, %v941_v4 }
 0x442   : > { %v780_v19 = vpop.f32.mrb[4].mxu0 }
 0x443   : > { %v2422_v20 = vpop.f32.mrb[5].mxu0  ;;  %2424 = vmatpush3.msk.msra.mxu1 %vm628_vm2, %v780_v19  ;;  %v1094_v19 = vpack.i.b16 %v1085_v9, %v1085_v9 }
 0x444   : > { %2426 = vmatmul.mubr.msk.f32.vlgmr.msra.gmra.mrb[0].mxu1 %vm624_vm3, %v545_v7  ;;  %v3002_v7 = vand.u32 127, %v889_v49  ;;  %v1087_v20 = vpack.i.b16 %v1084_v10, %v1084_v10 }
 0x445   : > { %2432 = vmatprep.mubr.msk.f32.mxu1 %vm2764_vm0, %v2763_v0 }
 0x446   : > { %vm1024_vm4 = vcmp.lt.s32.totalorder %v3002_v7, 1  ;;  %vm1066_vm5 = vcmp.lt.s32.totalorder %v3002_v7, 127  ;;  %vm930_vm6 = vcmp.lt.s32.totalorder %v3002_v7, 16  ;;  %vm891_vm7 = vcmp.lt.s32.totalorder %v3002_v7, 17 }
 0x447   : > { %vm1236_vm8 = vcmp.lt.s32.totalorder %v3002_v7, 113  ;;  %vm970_vm9 = vcmp.lt.s32.totalorder %v3002_v7, 15  ;;  %vm1276_vm11 = vcmp.lt.s32.totalorder %v3002_v7, 112  ;;  %vm1316_vm12 = vcmp.lt.s32.totalorder %v3002_v7, 111 }
 0x517   : > { %v853_v21 = vpop.f32.mrb[0].mxu1 }
 0x518   : > { %v854_v22 = vadd.f32 1e-05, %v853_v21  ;;  %v2427_v23 = vpop.f32.mrb[1].mxu1  ;;  %v901_v21 = vrot.slane %v896_v11, %v2980_v52 }
 0x51a   : > { %2667 = vrsqrt.f32 %v854_v22  ;;  %v2340_v22 = vld [vmem:[%s3402_s2 + $0x2] ss:$8 sm:$0x3] }
 0x524   : > { %v2668_v25 = vpop.eup %2667 }
 0x525   : > { %v858_v26 = vmul.f32 %v2668_v25, %v543_v24  ;;  %v3020_v24 = vrot.slane %v1045_v12, %v2980_v52 }
 0x527   : > { %861 = vperm.xlu1 %2539, %v858_v26  }
 0x52b   : > { %868 = vperm.xlu1 %2539, %v544_v27  }
 0x5a6   : > { %v862_v28 = vpop.permute.xlu1 %861 }
 0x5a7   : > { %v864_v29 = vmul.f32 %v862_v28, %v707_v13  ;;  %v865_v30 = vmul.f32 %v862_v28, %v708_v14  ;;  %v1264_v13 = vpack.i.b16 %v1255_v2, %v1255_v2  ;;  %v949_v14 = vpack.c.bf16 %v945_v3, %v945_v3 }
 0x5a9   : > { %v3025_v26 = vrot.slane %v1264_v13, %v2980_v52  ;;  %v958_v28 = vpack.i.b16 %v949_v14, %v949_v14  ;;  %v2353_v14 = vld [vmem:[%s3402_s2 + $0x10] ss:$8 sm:$0x3] }
 0x5aa   : > { %v869_v31 = vpop.permute.xlu1 %868 }
 0x5ab   : > { %v871_v32 = vadd.f32 %v869_v31, %v864_v29  ;;  %v872_v33 = vadd.f32 %v869_v31, %v865_v30  ;;  %v951_v29 = vpack.i.b16 %v948_v15, %v948_v15  ;;  %v3029_v30 = vrot.slane %v1257_v16, %v2980_v52 }
 0x5ad   : > { %v873_v34 = vsub.f32 0.0, %v871_v32  ;;  %v874_v35 = vsub.f32 0.0, %v872_v33 }
 0x5af   : > { %v875_v36 = vmul.f32 1.442695, %v873_v34  ;;  %v877_v37 = vmul.f32 1.442695, %v874_v35  ;;  %v985_v34 = vrot.slane %v2340_v22, %v2978_v51  ;;  %v3033_v35 = vrot.slane %v1094_v19, %v2980_v52 }
 0x5b1   : > { %2669 = vpow2.f32 %v875_v36  ;;  %v3036_v36 = vrot.slane %v1087_v20, %v2980_v52  ;;  %v989_v54 = vpack.c.bf16 %v985_v34, %v985_v34 }
 0x5b2   : > { %2671 = vpow2.f32 %v877_v37  ;;  %v908_v37 = vpack.c.bf16 %v901_v21, %v901_v21 }
 0x5b3   : > { %v998_v12 = vpack.i.b16 %v989_v54, %v989_v54 }
 0x5b4   : > { %v911_v57 = vpack.i.b16 %v908_v37, %v908_v37 }
 0x5bb   : > { %v2670_v38 = vpop.eup %2669 }
 0x5bc   : > { %v2672_v39 = vpop.eup %2671  ;;  %v879_v40 = vadd.f32 1.0, %v2670_v38  ;;  %v981_v38 = vrot.slane %v2340_v22, %v2980_v52 }
 0x5bd   : > { %v880_v41 = vadd.f32 1.0, %v2672_v39 }
 0x5be   : > { %2673 = vrcp.f32 %v879_v40  ;;  %v988_v58 = vpack.c.bf16 %v981_v38, %v981_v38  ;;  %v3091_v38 = vrot.slane %v998_v12, %v2980_v52 }
 0x5bf   : > { %2675 = vrcp.f32 %v880_v41 }
 0x5c0   : > { %v991_v13 = vpack.i.b16 %v988_v58, %v988_v58 }
 0x5c8   : > { %v2674_v42 = vpop.eup %2673 }
 0x5c9   : > { %v2676_v43 = vpop.eup %2675  ;;  %v2959_v44 = vmul.f32 %v2674_v42, %v871_v32 }
 0x5ca   : > { %v2961_v45 = vmul.f32 %v2676_v43, %v872_v33  ;;  %v909_v33 = vpack.c.bf16 %v905_v17, %v905_v17  ;;  %v3078_v17 = vrot.slane %v911_v57, %v2980_v52 }
 0x5cb   : > { %v1060_v25 = vpack.c.bf16 %v2959_v44, %v2959_v44 }
 0x5cc   : > { %v2570_v46 = vpack.i.bf16 %v2961_v45, %v2959_v44  ;;  %v1061_v23 = vpack.c.bf16 %v2961_v45, %v2961_v45  ;;  %v918_v53 = vpack.i.b16 %v909_v33, %v909_v33  ;;  %v1327_v33 = vrot.slane %v2353_v14, %v2980_v52 }
 0x5cd   : > { %v1104_v42 = vrot.slane %v1060_v25, 4 }
 0x5ce   : > { %2571 = vrot.lane.b32.xlu0 %v2570_v46, %s3422_s28  ;;  %2541 = vrot.lane.b32.xlu1 %v2570_v46, %s3420_s20  ;;  %v1105_v41 = vrot.slane %v1061_v23, 4  ;;  %v3066_v9 = vrot.slane %v918_v53, %v2980_v52 }
 0x5d2   : > { %1432 = vperm.xlu0 %2538, %v1428_v47   ;;  %2546 = vrot.lane.b32.xlu1 %v2570_v46, %s3418_s3  ;;  %v3048_v47 = vrot.slane %v951_v29, %v2980_v52  ;;  %s3448_s3 = smov 127  }
 0x5d6   : > { %2551 = vrot.lane.b32.xlu1 %v2570_v46, %s3430_s4 }
 0x5da   : > { %2556 = vrot.lane.b32.xlu1 %v2570_v46, %s2770_s5 }
 0x5de   : > { %2561 = vrot.lane.b32.xlu1 %v2570_v46, %s3428_s18 }
 0x5e2   : > { %2566 = vrot.lane.b32.xlu1 %v2570_v46, %s3426_s19  ;;  %s3443_s19 = smov 15  }
 0x5e6   : > { %2576 = vrot.lane.b32.xlu1 %v2570_v46, %s3424_s26  ;;  %v3045_v46 = vrot.slane %v958_v28, %v2980_v52  ;;  %s3444_s26 = smov 113  }
 0x5ea   : > { %1437 = vperm.xlu1 %2539, %v1429_v48   ;;  %v2352_v48 = vld [vmem:[%s3402_s2 + $0x7] ss:$8 sm:$0x3] }
 0x5eb   : > { %v1291_v61 = vrot.slane %v2352_v48, %v2978_v51  ;;  %v1287_v62 = vrot.slane %v2352_v48, %v2980_v52 }
 0x5ed   : > { %v1295_v19 = vpack.c.bf16 %v1291_v61, %v1291_v61 }
 0x5ef   : > { %v1304_v48 = vpack.i.b16 %v1295_v19, %v1295_v19 }
 0x640   : > { %v2542_v27 = vpop.permute.xlu1 %2541  ;;  %v2572_v20 = vpop.permute.xlu0 %2571 }
 0x641   : > { %v2544_v31 = vunpack.i.h.bf16 %v2542_v27  ;;  %v2543_v32 = vunpack.i.l.bf16 %v2542_v27  ;;  %v1294_v27 = vpack.c.bf16 %v1287_v62, %v1287_v62 }
 0x643   : > { %v1025_v39 = vsel %vm1024_vm4, %v2543_v32, %v2544_v31  ;;  %v1026_v40 = vsel %vm1024_vm4, %v2544_v31, %v2543_v32  ;;  %v2660_v31 = vld [vmem:[%s3407_s7 + $0x8] sm:$0xff]   ;;  %v1331_v32 = vrot.slane %v2353_v14, %v2978_v51 }
 0x644   : > { %v1027_v43 = vpack.c.bf16 %v1026_v40, %v1026_v40  ;;  %v1028_v44 = vpack.c.bf16 %v1025_v39, %v1025_v39  ;;  %v2547_v45 = vpop.permute.xlu1 %2546  ;;  %v3094_v39 = vrot.slane %v991_v13, %v2980_v52  ;;  %v2574_v40 = vunpack.i.h.bf16 %v2572_v20 }
 0x645   : > { %v2549_v49 = vunpack.i.h.bf16 %v2547_v45  ;;  %v2548_v50 = vunpack.i.l.bf16 %v2547_v45  ;;  %v1335_v54 = vpack.c.bf16 %v1331_v32, %v1331_v32  ;;  %v2661_v32 = vld [vmem:[%s3407_s7] sm:$0xff]  }
 0x646   : > { %v1059_v55 = vmul.bf16 %v3011_v18, %v1028_v44  ;;  %v1058_v56 = vmul.bf16 %v3020_v24, %v1027_v43 }
 0x647   : > { %v1067_v59 = vsel %vm1066_vm5, %v2548_v50, %v2549_v49  ;;  %v1068_v60 = vsel %vm1066_vm5, %v2549_v49, %v2548_v50  ;;  %v1297_v49 = vpack.i.b16 %v1294_v27, %v1294_v27 }
 0x648   : > { %v1069_v63 = vpack.c.bf16 %v1067_v59, %v1067_v59  ;;  %v1070_v1 = vpack.c.bf16 %v1068_v60, %v1068_v60  ;;  %v2552_v2 = vpop.permute.xlu1 %2551  ;;  %v1112_v3 = vsel %vm628_vm2, %v1059_v55, %v1105_v41  ;;  %v1108_v4 = vsel %vm628_vm2, %v1058_v56, %v1104_v42 }
 0x649   : > { %v2554_v5 = vunpack.i.h.bf16 %v2552_v2  ;;  %v2553_v8 = vunpack.i.l.bf16 %v2552_v2  ;;  %1132 = vmatprep.subr.bf16.mxu0 %v1112_v3  ;;  %v2573_v41 = vunpack.i.l.bf16 %v2572_v20  ;;  %v1334_v55 = vpack.c.bf16 %v1327_v33, %v1327_v33 }
 0x64a   : > { %1133 = vmatpush1.bf16.msra.mxu0 %v1108_v4  ;;  %v1101_v10 = vmul.bf16 %v3033_v35, %v1070_v1  ;;  %v1100_v11 = vmul.bf16 %v3036_v36, %v1069_v63  ;;  %v3118_v12 = vrot.slane %v1297_v49, %v2980_v52 }
 0x64b   : > { %v931_v15 = vsel %vm930_vm6, %v2553_v8, %v2554_v5  ;;  %v932_v16 = vsel %vm930_vm6, %v2554_v5, %v2553_v8  ;;  %v1237_v60 = vsel %vm1236_vm8, %v2573_v41, %v2574_v40  ;;  %v1238_v61 = vsel %vm1236_vm8, %v2574_v40, %v2573_v41 }
 0x64c   : > { %v933_v21 = vpack.c.bf16 %v932_v16, %v932_v16  ;;  %v934_v22 = vpack.c.bf16 %v931_v15, %v931_v15  ;;  %v2557_v23 = vpop.permute.xlu1 %2556  ;;  %2346 = vmatprep.subr.msk.bf16.mxu0 %vm628_vm2, %v1101_v10  ;;  %v1127_v25 = vsel %vm628_vm2, %v1100_v11, 0  ;;  %v3115_v11 = vrot.slane %v1304_v48, %v2980_v52 }
 0x64d   : > { %v2559_v28 = vunpack.i.h.bf16 %v2557_v23  ;;  %v2558_v29 = vunpack.i.l.bf16 %v2557_v23  ;;  %v1344_v15 = vpack.i.b16 %v1335_v54, %v1335_v54  ;;  %v1337_v16 = vpack.i.b16 %v1334_v55, %v1334_v55 }
 0x64e   : > { %1135 = vmatpush1.bf16.msra.mxu0 %v1127_v25  ;;  %v965_v34 = vmul.bf16 %v3045_v46, %v934_v22  ;;  %v964_v37 = vmul.bf16 %v3048_v47, %v933_v21  ;;  %v1239_v19 = vpack.c.bf16 %v1237_v60, %v1237_v60  ;;  %v1240_v20 = vpack.c.bf16 %v1238_v61, %v1238_v61 }
 0x64f   : > { %v892_v42 = vsel %vm891_vm7, %v2558_v29, %v2559_v28  ;;  %v893_v51 = vsel %vm891_vm7, %v2559_v28, %v2558_v29  ;;  %v3138_v40 = vrot.slane %v1337_v16, %v2980_v52  ;;  %v1448_v16 = vld [vmem:[%s3410_s10] sm:$0xff] }
 0x650   : > { %v894_v43 = vpack.c.bf16 %v893_v51, %v893_v51  ;;  %v895_v44 = vpack.c.bf16 %v892_v42, %v892_v42  ;;  %v2562_v45 = vpop.permute.xlu1 %2561  ;;  %v1009_v57 = vrot.slane %v965_v34, 4  ;;  %v1008_v59 = vrot.slane %v964_v37, 4 }
 0x651   : > { %v2564_v50 = vunpack.i.h.bf16 %v2562_v45  ;;  %v2563_v53 = vunpack.i.l.bf16 %v2562_v45  ;;  %2347 = vmatmul.mubr.msk.bf16.vlgmr.msra.gmra.mrb[8].mxu0 %vm1122_vm10, %v2660_v31  ;;  %v3135_v37 = vrot.slane %v1344_v15, %v2980_v52  ;;  %v1271_v51 = vmul.bf16 %v3025_v26, %v1240_v20  ;;  %v1450_v15 = vld [vmem:[%s3411_s11] sm:$0xf]  ;;  %v1449_v20 = vld [vmem:[%s3410_s10 + $0x8] sm:$0xff] }
 0x652   : > { %v925_v56 = vmul.bf16 %v3066_v9, %v895_v44  ;;  %v924_v58 = vmul.bf16 %v3078_v17, %v894_v43  ;;  %1221 = vmatprep.mubr.bf16.mxu0 %v2765_v6  ;;  %v1270_v43 = vmul.bf16 %v3029_v30, %v1239_v19 }
 0x653   : > { %v971_v62 = vsel %vm970_vm9, %v2563_v53, %v2564_v50  ;;  %v972_v63 = vsel %vm970_vm9, %v2564_v50, %v2563_v53 }
 0x654   : > { %v973_v1 = vpack.c.bf16 %v972_v63, %v972_v63  ;;  %v974_v2 = vpack.c.bf16 %v971_v62, %v971_v62  ;;  %v2567_v3 = vpop.permute.xlu1 %2566  ;;  %v1016_v4 = vsel %vm628_vm2, %v925_v56, %v1009_v57  ;;  %v1012_v5 = vsel %vm628_vm2, %v924_v58, %v1008_v59  ;;  %v2662_v56 = vld [vmem:[%s3407_s7 + $0x10] sm:$0xff]   ;;  %v1433_v57 = vpop.permute.xlu0 %1432 }
 0x655   : > { %v2569_v8 = vunpack.i.h.bf16 %v2567_v3  ;;  %v2568_v10 = vunpack.i.l.bf16 %v2567_v3  ;;  %1189 = vmatprep.subr.bf16.mxu0 %v1016_v4 }
 0x656   : > { %1190 = vmatpush1.bf16.msra.mxu0 %v1012_v5  ;;  %v1005_v13 = vmul.bf16 %v3091_v38, %v974_v2  ;;  %v1004_v14 = vmul.bf16 %v3094_v39, %v973_v1 }
 0x657   : > { %v1277_v21 = vsel %vm1276_vm11, %v2568_v10, %v2569_v8  ;;  %v1278_v22 = vsel %vm1276_vm11, %v2569_v8, %v2568_v10  ;;  %v2774_v8 = vmov 0.0|0.0  }
 0x658   : > { %v1279_v23 = vpack.c.bf16 %v1277_v21, %v1277_v21  ;;  %v1280_v25 = vpack.c.bf16 %v1278_v22, %v1278_v22  ;;  %v2577_v27 = vpop.permute.xlu1 %2576  ;;  %2349 = vmatprep.subr.msk.bf16.mxu0 %vm628_vm2, %v1005_v13  ;;  %v1184_v28 = vsel %vm628_vm2, %v1004_v14, 0  ;;  %2452 = vmatprep.subr.bf16.mxu1 %v2774_v8 }
 0x659   : > { %v2579_v29 = vunpack.i.h.bf16 %v2577_v27  ;;  %v2578_v31 = vunpack.i.l.bf16 %v2577_v27 }
 0x65a   : > { %1192 = vmatpush1.bf16.msra.mxu0 %v1184_v28  ;;  %v1311_v33 = vmul.bf16 %v3115_v11, %v1280_v25  ;;  %v1310_v34 = vmul.bf16 %v3118_v12, %v1279_v23 }
 0x65b   : > { %v1317_v41 = vsel %vm1316_vm12, %v2578_v31, %v2579_v29  ;;  %v1318_v42 = vsel %vm1316_vm12, %v2579_v29, %v2578_v31 }
 0x65c   : > { %v1319_v44 = vpack.c.bf16 %v1317_v41, %v1317_v41  ;;  %v1320_v45 = vpack.c.bf16 %v1318_v42, %v1318_v42  ;;  %v1355_v48 = vrot.slane %v1311_v33, 4  ;;  %v1354_v49 = vrot.slane %v1310_v34, 4 }
 0x65d   : > { %2350 = vmatmul.mubr.msk.bf16.vlgmr.msra.gmra.mrb[8].mxu0 %vm1122_vm10, %v2661_v32 }
 0x65e   : > { %v1362_v50 = vsel %vm628_vm2, %v1271_v51, %v1355_v48  ;;  %v1358_v52 = vsel %vm628_vm2, %v1270_v43, %v1354_v49  ;;  %v1351_v53 = vmul.bf16 %v3135_v37, %v1320_v45  ;;  %1413 = vmatprep.mubr.bf16.mxu0 %v2765_v6  ;;  %v1350_v54 = vmul.bf16 %v3138_v40, %v1319_v44 }
 0x65f   : > { %1381 = vmatprep.subr.bf16.mxu0 %v1362_v50 }
 0x660   : > { %1382 = vmatpush1.bf16.msra.mxu0 %v1358_v52  ;;  %v1376_v55 = vsel %vm628_vm2, %v1350_v54, 0 }
 0x661   : > { %2357 = vmatprep.subr.msk.bf16.mxu0 %vm628_vm2, %v1351_v53 }
 0x664   : > { %1384 = vmatpush1.bf16.msra.mxu0 %v1376_v55  ;;  %v1445_v55 = vld [vmem:[%s3408_s8 + $0x8] sm:$0xff] }
 0x669   : > { %2358 = vmatmul.mubr.msk.bf16.vlgmr.msra.gmra.mrb[8].mxu0 %vm1122_vm10, %v2662_v56  ;;  %v1438_v61 = vpop.permute.xlu1 %1437  ;;  %v1444_v56 = vld [vmem:[%s3408_s8] sm:$0xff] }
 0x66a   : > { %1971 = vmatprep.mubr.bf16.mxu0 %v2765_v6 }
 0x73c   : > { %v1415_v58 = vpop.f32.mrb[8].mxu0 }
 0x73d   : > { %v1440_v59 = vadd.f32 %v1433_v57, %v1415_v58  ;;  %v1417_v60 = vpop.f32.mrb[9].mxu0 }
 0x73e   : > { %v1441_v62 = vadd.f32 %v1433_v57, %v1417_v60  ;;  %v1419_v63 = vpop.f32.mrb[10].mxu0 }
 0x73f   : > { %v1442_v1 = vadd.f32 %v1438_v61, %v1419_v63  ;;  %v1421_v2 = vpop.f32.mrb[11].mxu0 }
 0x740   : > { %v1443_v3 = vadd.f32 %v1438_v61, %v1421_v2  ;;  %v1451_v4 = vadd.f32 %v1441_v62, %v1440_v59  ;;  %v1447_v61 = vld [vmem:[%s3409_s9 + $0x8] sm:$0xff] }
 0x742   : > { %1452 = vadd.xlane.f32.xlu0 %v1451_v4  ;;  %v1454_v5 = vadd.f32 %v1443_v3, %v1442_v1 }
 0x744   : > { %1455 = vadd.xlane.f32.xlu1 %v1454_v5 }
 0x7cf   : > { %v1453_v10 = vpop.xlane.xlu0 %1452 }
 0x7d1   : > { %v1456_v13 = vpop.xlane.xlu1 %1455 }
 0x7d2   : > { %v2453_v14 = vpack.c.bf16 %v1456_v13, %v1453_v10 }
 0x7d4   : > { %2454 = vmatpush3.bf16.msra.mxu1 %v2453_v14 }
 0x7d7   : > { %2433 = vmatmul.mubr.msk.f32.vlgmr.msra.gmra.mrb[2].mxu1 %vm1457_vm13, %v1450_v15 }
 0x7d8   : > { %2437 = vmatprep.mubr.msk.f32.mxu1 %vm624_vm3, %v1448_v16 }
 0x8aa   : > { %v1527_v19 = vpop.f32.mrb[2].mxu1 }
 0x8ab   : > { %2435 = vmatprep.subr.msk.mxu1 %vm628_vm2, %v1527_v19  ;;  %v2434_v21 = vpop.f32.mrb[3].mxu1 }
 0x8ac   : > { %2436 = vmatpush3.msk.msra.mxu1 %vm628_vm2, %v1527_v19 }
 0x8ad   : > { %2438 = vmatmul.mubr.msk.f32.vlgmr.msra.gmra.mrb[4].mxu1 %vm624_vm3, %v1449_v20  ;;  %2455 = vmatprep.subr.bf16.mxu1 %v2774_v8 }
 0x8ae   : > { %2444 = vmatprep.mubr.msk.f32.mxu1 %vm2764_vm0, %v2763_v0 }
 0x980   : > { %v2439_v22 = vpop.f32.mrb[4].mxu1 }
 0x981   : > { %1622 = vperm.xlu1 %2539, %v2439_v22   ;;  %v1606_v23 = vpop.f32.mrb[5].mxu1 }
 0x982   : > { %1617 = vperm.xlu0 %2538, %v1606_v23  }
 0xa00   : > { %v1623_v25 = vpop.permute.xlu1 %1622 }
 0xa01   : > { %v1627_v27 = vsub.f32 %v1442_v1, %v1623_v25  ;;  %v1628_v28 = vsub.f32 %v1443_v3, %v1623_v25  ;;  %v1618_v29 = vpop.permute.xlu0 %1617 }
 0xa02   : > { %v1625_v31 = vsub.f32 %v1440_v59, %v1618_v29  ;;  %v1626_v32 = vsub.f32 %v1441_v62, %v1618_v29  ;;  %v1446_v62 = vld [vmem:[%s3409_s9] sm:$0xff] }
 0xa03   : > { %v1631_v33 = vmul.f32 %v1627_v27, %v1627_v27  ;;  %v1632_v34 = vmul.f32 %v1628_v28, %v1628_v28 }
 0xa04   : > { %v1629_v41 = vmul.f32 %v1625_v31, %v1625_v31  ;;  %v1630_v42 = vmul.f32 %v1626_v32, %v1626_v32 }
 0xa05   : > { %v1636_v51 = vadd.f32 %v1632_v34, %v1631_v33 }
 0xa06   : > { %v1633_v43 = vadd.f32 %v1630_v42, %v1629_v41 }
 0xa07   : > { %1637 = vadd.xlane.f32.xlu1 %v1636_v51 }
 0xa08   : > { %1634 = vadd.xlane.f32.xlu0 %v1633_v43 }
 0xa94   : > { %v1638_v44 = vpop.xlane.xlu1 %1637 }
 0xa95   : > { %v1635_v0 = vpop.xlane.xlu0 %1634 }
 0xa96   : > { %v2456_v45 = vpack.c.bf16 %v1638_v44, %v1635_v0 }
 0xa98   : > { %2457 = vmatpush3.bf16.msra.mxu1 %v2456_v45 }
 0xa9b   : > { %2445 = vmatmul.mubr.msk.f32.vlgmr.msra.gmra.mrb[6].mxu1 %vm1457_vm13, %v1450_v15 }
 0xa9c   : > { %2449 = vmatprep.mubr.msk.f32.mxu1 %vm624_vm3, %v1448_v16 }
 0xb6e   : > { %v1705_v48 = vpop.f32.mrb[6].mxu1 }
 0xb6f   : > { %2447 = vmatprep.subr.msk.mxu1 %vm628_vm2, %v1705_v48  ;;  %v2446_v49 = vpop.f32.mrb[7].mxu1 }
 0xb70   : > { %2448 = vmatpush3.msk.msra.mxu1 %vm628_vm2, %v1705_v48 }
 0xb71   : > { %2450 = vmatmul.mubr.msk.f32.vlgmr.msra.gmra.mrb[8].mxu1 %vm624_vm3, %v1449_v20 }
 0xb72   : > { %2022 = vmatprep.mubr.bf16.mxu1 %v2765_v6 }
 0xc44   : > { %v2451_v50 = vpop.f32.mrb[8].mxu1 }
 0xc45   : > { %v1784_v52 = vadd.f32 1e-05, %v2451_v50  ;;  %v1778_v53 = vpop.f32.mrb[9].mxu1 }
 0xc46   : > { %v1779_v54 = vadd.f32 1e-05, %v1778_v53 }
 0xc47   : > { %2677 = vrsqrt.f32 %v1784_v52 }
 0xc48   : > { %2679 = vrsqrt.f32 %v1779_v54 }
 0xc51   : > { %v2678_v57 = vpop.eup %2677 }
 0xc52   : > { %v2680_v58 = vpop.eup %2679  ;;  %v1790_v59 = vmul.f32 %v2678_v57, %v1445_v55  ;;  %v2139_v57 = vld [vmem:[%s3413_s13] sm:$0xff] }
 0xc53   : > { %v1789_v60 = vmul.f32 %v2680_v58, %v1444_v56  ;;  %v2140_v58 = vld [vmem:[%s3413_s13 + $0x8] sm:$0xff] }
 0xc54   : > { %1798 = vperm.xlu1 %2539, %v1790_v59   ;;  %v2159_v59 = vld [vmem:[%s3415_s15] sm:$0xff] }
 0xc55   : > { %1793 = vperm.xlu0 %2538, %v1789_v60   ;;  %v2160_v60 = vld [vmem:[%s3415_s15 + $0x8] sm:$0xff] }
 0xc58   : > { %1812 = vperm.xlu1 %2539, %v1447_v61  }
 0xc59   : > { %1807 = vperm.xlu0 %2538, %v1446_v62  }
 0xcd3   : > { %v1799_v63 = vpop.permute.xlu1 %1798 }
 0xcd4   : > { %v1794_v1 = vpop.permute.xlu0 %1793  ;;  %v1803_v2 = vmul.f32 %v1799_v63, %v1627_v27  ;;  %v1804_v3 = vmul.f32 %v1799_v63, %v1628_v28 }
 0xcd5   : > { %v1801_v4 = vmul.f32 %v1794_v1, %v1625_v31  ;;  %v1802_v5 = vmul.f32 %v1794_v1, %v1626_v32 }
 0xcd7   : > { %v1813_v8 = vpop.permute.xlu1 %1812 }
 0xcd8   : > { %v1817_v10 = vadd.f32 %v1813_v8, %v1803_v2  ;;  %v1818_v13 = vadd.f32 %v1813_v8, %v1804_v3  ;;  %v1808_v14 = vpop.permute.xlu0 %1807 }
 0xcd9   : > { %v1815_v15 = vadd.f32 %v1808_v14, %v1801_v4  ;;  %v1816_v16 = vadd.f32 %v1808_v14, %v1802_v5 }
 0xcda   : > { %v1821_v19 = vsub.f32 0.0, %v1817_v10  ;;  %v1822_v20 = vsub.f32 0.0, %v1818_v13 }
 0xcdb   : > { %v1819_v21 = vsub.f32 0.0, %v1815_v15  ;;  %v1820_v22 = vsub.f32 0.0, %v1816_v16 }
 0xcdc   : > { %v1827_v23 = vmul.f32 1.442695, %v1821_v19  ;;  %v1829_v25 = vmul.f32 1.442695, %v1822_v20 }
 0xcdd   : > { %v1823_v29 = vmul.f32 1.442695, %v1819_v21  ;;  %v1825_v33 = vmul.f32 1.442695, %v1820_v22 }
 0xcde   : > { %2681 = vpow2.f32 %v1827_v23 }
 0xcdf   : > { %2683 = vpow2.f32 %v1829_v25 }
 0xce0   : > { %2685 = vpow2.f32 %v1823_v29 }
 0xce1   : > { %2687 = vpow2.f32 %v1825_v33 }
 0xce8   : > { %v2682_v27 = vpop.eup %2681 }
 0xce9   : > { %v2684_v28 = vpop.eup %2683  ;;  %v1833_v31 = vadd.f32 1.0, %v2682_v27 }
 0xcea   : > { %v2686_v32 = vpop.eup %2685  ;;  %v1834_v34 = vadd.f32 1.0, %v2684_v28 }
 0xceb   : > { %v2688_v41 = vpop.eup %2687  ;;  %2689 = vrcp.f32 %v1833_v31  ;;  %v1831_v42 = vadd.f32 1.0, %v2686_v32 }
 0xcec   : > { %2691 = vrcp.f32 %v1834_v34  ;;  %v1832_v51 = vadd.f32 1.0, %v2688_v41 }
 0xced   : > { %2693 = vrcp.f32 %v1831_v42 }
 0xcee   : > { %2695 = vrcp.f32 %v1832_v51 }
 0xcf5   : > { %v2690_v43 = vpop.eup %2689 }
 0xcf6   : > { %v2692_v44 = vpop.eup %2691  ;;  %v3193_v0 = vmul.f32 %v2690_v43, %v1817_v10 }
 0xcf7   : > { %v2694_v45 = vpop.eup %2693  ;;  %v3195_v48 = vmul.f32 %v2692_v44, %v1818_v13 }
 0xcf8   : > { %v2696_v49 = vpop.eup %2695  ;;  %v3197_v50 = vmul.f32 %v2694_v45, %v1815_v15 }
 0xcf9   : > { %v3199_v52 = vmul.f32 %v2696_v49, %v1816_v16 }
 0xcfa   : > { %v2580_v53 = vpack.i.bf16 %v3193_v0, %v3197_v50  ;;  %v1909_v56 = vpack.c.bf16 %v3193_v0, %v3197_v50 }
 0xcfb   : > { %v2585_v54 = vpack.i.bf16 %v3195_v48, %v3199_v52  ;;  %v1910_v55 = vpack.c.bf16 %v3195_v48, %v3199_v52 }
 0xcfc   : > { %2581 = vrot.lane.b32.xlu0 %v2580_v53, %s2770_s5 }
 0xcfd   : > { %2586 = vrot.lane.b32.xlu1 %v2585_v54, %s2770_s5  ;;  %s3446_s5 = smov 1  }
 0xd00   : > { %2591 = vrot.lane.b32.xlu0 %v2580_v53, %s3430_s4 }
 0xd01   : > { %2596 = vrot.lane.b32.xlu1 %v2585_v54, %s3430_s4 }
 0xd04   : > { %2601 = vrot.lane.b32.xlu0 %v2580_v53, %s3443_s19 }
 0xd05   : > { %2606 = vrot.lane.b32.xlu1 %v2585_v54, %s3443_s19 }
 0xd08   : > { %2611 = vrot.lane.b32.xlu0 %v2580_v53, %s3444_s26 }
 0xd09   : > { %2616 = vrot.lane.b32.xlu1 %v2585_v54, %s3444_s26 }
 0xd0c   : > { %2621 = vrot.lane.b32.xlu0 %v2580_v53, %s3445_s23 }
 0xd0d   : > { %2626 = vrot.lane.b32.xlu1 %v2585_v54, %s3445_s23  ;;  %s2775_s23 = smov [#allocation2]  }
 0xd10   : > { %2631 = vrot.lane.b32.xlu0 %v2580_v53, %s3446_s5 }
 0xd11   : > { %2636 = vrot.lane.b32.xlu1 %v2585_v54, %s3446_s5  ;;  %s527_s5 = sand.u32 1, %s2753_s22  }
 0xd14   : > { %2641 = vrot.lane.b32.xlu0 %v2580_v53, %s3447_s30 }
 0xd15   : > { %2646 = vrot.lane.b32.xlu1 %v2585_v54, %s3447_s30  ;;  %s2328_s30 = sshll.u32 %s527_s5, 5 }
 0xd18   : > { %2651 = vrot.lane.b32.xlu0 %v2580_v53, %s3448_s3 }
 0xd19   : > { %2656 = vrot.lane.b32.xlu1 %v2585_v54, %s3448_s3  ;;  %s529_s3 = scalar_lea.vmem [#allocation2], %s2328_s30  ;;  %s2703_s30 = sshll.u32 %s2775_s23, 4  ;;  %s2704_s30 = int_to_ptr.vmem [resolvable:$false] %s2703_s30 }
 0xd1a   : > { %s2250_s28 = sshll.u32 %s529_s3, 4  ;;  %s2705_s4 = scalar_lea.vmem %s2704_s30, 1024  ;;  %s3349_s28 = int_to_ptr.vmem [resolvable:$true] %s2250_s28 }
 0xd1b   : > { %s2699_s26 = scalar_lea.vmem %s3349_s28, 512  ;;  %p2706_p0 = scmp.lt.s32.totalorder %s3349_s28, %s2704_s30 }
 0xd1c   : > { %2143 = vperm.xlu0 %2538, %v2139_v57   ;;  %p2700_p11 = scmp.ne.s32.totalorder %s3349_s28, %s2699_s26  ;;  %p2707_p1 = scmp.lt.s32.totalorder %s2705_s4, %s2699_s26 }
 0xd1d   : > { %2148 = vperm.xlu1 %2539, %v2140_v58  }
 0xd1e   : > { %p2701_p12 = pnand %p2700_p11, %p2900_p5  ;;  %p2708_p2 = por %p2707_p1, %p2706_p0 }
 0xd20   : > { %2163 = vperm.xlu0 %2538, %v2159_v59   ;;  %p2702_p13 = pneg %p2701_p12 }
 0xd21   : > { %2168 = vperm.xlu1 %2539, %v2160_v60  }
 0xd22   : > { %p2709_p3 = pnand %p2708_p2, %p2702_p13 }
 0xd6e   : > { %v2582_v61 = vpop.permute.xlu0 %2581 }
 0xd6f   : > { %v2587_v62 = vpop.permute.xlu1 %2586  ;;  %v2584_v63 = vunpack.i.h.bf16 %v2582_v61  ;;  %v2583_v1 = vunpack.i.l.bf16 %v2582_v61 }
 0xd70   : > { %v2589_v2 = vunpack.i.h.bf16 %v2587_v62  ;;  %v2588_v3 = vunpack.i.l.bf16 %v2587_v62 }
 0xd72   : > { %v1852_v4 = vsel %vm891_vm7, %v2584_v63, %v2589_v2  ;;  %v1854_v5 = vsel %vm891_vm7, %v2589_v2, %v2584_v63  ;;  %v1851_v8 = vsel %vm891_vm7, %v2583_v1, %v2588_v3  ;;  %v1853_v10 = vsel %vm891_vm7, %v2588_v3, %v2583_v1  ;;  %v2592_v13 = vpop.permute.xlu0 %2591 }
 0xd73   : > { %v1855_v14 = vpack.c.bf16 %v1854_v5, %v1853_v10  ;;  %v2597_v15 = vpop.permute.xlu1 %2596  ;;  %v2594_v16 = vunpack.i.h.bf16 %v2592_v13  ;;  %v2593_v19 = vunpack.i.l.bf16 %v2592_v13  ;;  %v1856_v20 = vpack.c.bf16 %v1852_v4, %v1851_v8 }
 0xd74   : > { %v2599_v21 = vunpack.i.h.bf16 %v2597_v15  ;;  %v2598_v22 = vunpack.i.l.bf16 %v2597_v15 }
 0xd75   : > { %v1858_v23 = vmul.bf16 %v1856_v20, %v3066_v9  ;;  %v1857_v25 = vmul.bf16 %v1855_v14, %v3078_v17 }
 0xd76   : > { %v1868_v29 = vsel %vm930_vm6, %v2594_v16, %v2599_v21  ;;  %v1870_v33 = vsel %vm930_vm6, %v2599_v21, %v2594_v16  ;;  %v1867_v27 = vsel %vm930_vm6, %v2593_v19, %v2598_v22  ;;  %v1869_v28 = vsel %vm930_vm6, %v2598_v22, %v2593_v19  ;;  %v2602_v31 = vpop.permute.xlu0 %2601 }
 0xd77   : > { %v1871_v32 = vpack.c.bf16 %v1870_v33, %v1869_v28  ;;  %v2607_v34 = vpop.permute.xlu1 %2606  ;;  %v2604_v41 = vunpack.i.h.bf16 %v2602_v31  ;;  %v2603_v42 = vunpack.i.l.bf16 %v2602_v31  ;;  %1990 = vmatprep.subr.bf16.mxu1 %v1858_v23  ;;  %v1872_v9 = vpack.c.bf16 %v1868_v29, %v1867_v27 }
 0xd78   : > { %v2609_v17 = vunpack.i.h.bf16 %v2607_v34  ;;  %v2608_v51 = vunpack.i.l.bf16 %v2607_v34  ;;  %1991 = vmatpush1.bf16.msra.mxu1 %v1857_v25 }
 0xd79   : > { %v1874_v43 = vmul.bf16 %v1872_v9, %v3045_v46  ;;  %v1873_v44 = vmul.bf16 %v1871_v32, %v3048_v47 }
 0xd7a   : > { %v1884_v45 = vsel %vm970_vm9, %v2604_v41, %v2609_v17  ;;  %v1886_v49 = vsel %vm970_vm9, %v2609_v17, %v2604_v41  ;;  %v1883_v53 = vsel %vm970_vm9, %v2603_v42, %v2608_v51  ;;  %v1885_v54 = vsel %vm970_vm9, %v2608_v51, %v2603_v42  ;;  %v2612_v57 = vpop.permute.xlu0 %2611 }
 0xd7b   : > { %v1887_v58 = vpack.c.bf16 %v1886_v49, %v1885_v54  ;;  %v2617_v59 = vpop.permute.xlu1 %2616  ;;  %v2614_v60 = vunpack.i.h.bf16 %v2612_v57  ;;  %v2613_v61 = vunpack.i.l.bf16 %v2612_v57  ;;  %1992 = vmatprep.subr.bf16.mxu1 %v1874_v43  ;;  %v1888_v46 = vpack.c.bf16 %v1884_v45, %v1883_v53 }
 0xd7c   : > { %v2619_v47 = vunpack.i.h.bf16 %v2617_v59  ;;  %v2618_v62 = vunpack.i.l.bf16 %v2617_v59  ;;  %1993 = vmatpush1.bf16.msra.mxu1 %v1873_v44 }
 0xd7d   : > { %v1890_v63 = vmul.bf16 %v1888_v46, %v3091_v38  ;;  %v1889_v1 = vmul.bf16 %v1887_v58, %v3094_v39  ;;  %v2663_v39 = vld [vmem:[%s3412_s12] sm:$0xff]  }
 0xd7e   : > { %v2042_v2 = vsel %vm1236_vm8, %v2614_v60, %v2619_v47  ;;  %v2044_v3 = vsel %vm1236_vm8, %v2619_v47, %v2614_v60  ;;  %v2041_v4 = vsel %vm1236_vm8, %v2613_v61, %v2618_v62  ;;  %v2043_v5 = vsel %vm1236_vm8, %v2618_v62, %v2613_v61  ;;  %v2622_v8 = vpop.permute.xlu0 %2621 }
 0xd7f   : > { %v2045_v10 = vpack.c.bf16 %v2042_v2, %v2041_v4  ;;  %v2627_v13 = vpop.permute.xlu1 %2626  ;;  %v2624_v14 = vunpack.i.h.bf16 %v2622_v8  ;;  %v2623_v15 = vunpack.i.l.bf16 %v2622_v8  ;;  %1994 = vmatprep.subr.bf16.mxu1 %v1890_v63  ;;  %v2046_v38 = vpack.c.bf16 %v2044_v3, %v2043_v5  ;;  %v2697_v5 = vld [vmem:[%s2922_s29] sm:$0xff] }
 0xd80   : > { %v2629_v16 = vunpack.i.h.bf16 %v2627_v13  ;;  %v2628_v19 = vunpack.i.l.bf16 %v2627_v13  ;;  %1995 = vmatpush1.bf16.msra.mxu1 %v1889_v1  ;;  %v2157_v8 = vpack.c.bf16 %v2697_v5, %v2697_v5 }
 0xd81   : > { %v2048_v20 = vmul.bf16 %v2046_v38, %v3025_v26  ;;  %v2047_v21 = vmul.bf16 %v2045_v10, %v3029_v30  ;;  %v2698_v10 = vld [vmem:[%s2922_s29 + $0x8] sm:$0xff]  ;;  %s2387_s29 = sshll.u32 %s2883_s25, 9  ;;  %s3358_s25 = scalar_lea.sflag [#allocation3], %s527_s5 }
 0xd82   : > { %v2058_v22 = vsel %vm1276_vm11, %v2624_v14, %v2629_v16  ;;  %v2060_v23 = vsel %vm1276_vm11, %v2629_v16, %v2624_v14  ;;  %v2057_v25 = vsel %vm1276_vm11, %v2623_v15, %v2628_v19  ;;  %v2059_v29 = vsel %vm1276_vm11, %v2628_v19, %v2623_v15  ;;  %v2632_v33 = vpop.permute.xlu0 %2631  ;;  %s3354_s19 = scalar_lea.hbm %s3416_s16, %s2387_s29 }
 0xd83   : > { %v2061_v27 = vpack.c.bf16 %v2058_v22, %v2057_v25  ;;  %v2637_v28 = vpop.permute.xlu1 %2636  ;;  %v2634_v31 = vunpack.i.h.bf16 %v2632_v33  ;;  %v2633_v32 = vunpack.i.l.bf16 %v2632_v33  ;;  %2092 = vmatprep.subr.bf16.mxu1 %v2048_v20  ;;  %2372 = vmatmul.mubr.msk.bf16.vlgmr.msra.gmra.mrb[12].mxu1 %vm1935_vm14, %v2663_v39  ;;  %v2062_v26 = vpack.c.bf16 %v2060_v23, %v2059_v29 }
 0xd84   : > { %v2639_v30 = vunpack.i.h.bf16 %v2637_v28  ;;  %v2638_v34 = vunpack.i.l.bf16 %v2637_v28  ;;  %2093 = vmatpush1.bf16.msra.mxu1 %v2047_v21  ;;  %2124 = vmatprep.mubr.bf16.mxu1 %v2765_v6  ;;  %v2158_v13 = vpack.c.bf16 %v2698_v10, %v2698_v10  ;;  %v2180_v7 = vsel %vm628_vm2, %v2157_v8, 0 }
 0xd85   : > { %v2064_v41 = vmul.bf16 %v2062_v26, %v3115_v11  ;;  %v2063_v42 = vmul.bf16 %v2061_v27, %v3118_v12 }
 0xd86   : > { %v1902_v9 = vsel %vm1024_vm4, %v2634_v31, %v2639_v30  ;;  %v1904_v17 = vsel %vm1024_vm4, %v2639_v30, %v2634_v31  ;;  %v1901_v51 = vsel %vm1024_vm4, %v2633_v32, %v2638_v34  ;;  %v1903_v43 = vsel %vm1024_vm4, %v2638_v34, %v2633_v32  ;;  %v2642_v44 = vpop.permute.xlu0 %2641 }
 0xd87   : > { %v1905_v45 = vpack.c.bf16 %v1904_v17, %v1903_v43  ;;  %v2647_v49 = vpop.permute.xlu1 %2646  ;;  %v2644_v53 = vunpack.i.h.bf16 %v2642_v44  ;;  %v2643_v54 = vunpack.i.l.bf16 %v2642_v44  ;;  %2094 = vmatprep.subr.bf16.mxu1 %v2064_v41  ;;  %v1906_v11 = vpack.c.bf16 %v1902_v9, %v1901_v51 }
 0xd88   : > { %v2649_v12 = vunpack.i.h.bf16 %v2647_v49  ;;  %v2648_v57 = vunpack.i.l.bf16 %v2647_v49  ;;  %2095 = vmatpush1.bf16.msra.mxu1 %v2063_v42 }
 0xd89   : > { %v1908_v58 = vmul.bf16 %v1906_v11, %v3011_v18  ;;  %v1907_v59 = vmul.bf16 %v1905_v45, %v3020_v24 }
 0xd8a   : > { %v2074_v60 = vsel %vm1316_vm12, %v2644_v53, %v2649_v12  ;;  %v2076_v61 = vsel %vm1316_vm12, %v2649_v12, %v2644_v53  ;;  %v2073_v46 = vsel %vm1316_vm12, %v2643_v54, %v2648_v57  ;;  %v2075_v47 = vsel %vm1316_vm12, %v2648_v57, %v2643_v54  ;;  %v2652_v62 = vpop.permute.xlu0 %2651 }
 0xd8b   : > { %v2077_v63 = vpack.c.bf16 %v2074_v60, %v2073_v46  ;;  %v2657_v1 = vpop.permute.xlu1 %2656  ;;  %v2654_v18 = vunpack.i.h.bf16 %v2652_v62  ;;  %v2653_v2 = vunpack.i.l.bf16 %v2652_v62  ;;  %1939 = vmatprep.subr.bf16.mxu0 %v1908_v58  ;;  %v2078_v24 = vpack.c.bf16 %v2076_v61, %v2075_v47 }
 0xd8c   : > { %v2659_v3 = vunpack.i.h.bf16 %v2657_v1  ;;  %v2658_v4 = vunpack.i.l.bf16 %v2657_v1  ;;  %1940 = vmatpush1.bf16.msra.mxu0 %v1907_v59 }
 0xd8d   : > { %1941 = vmatprep.subr.bf16.mxu0 %v1910_v55  ;;  %v2080_v14 = vmul.bf16 %v2078_v24, %v3135_v37  ;;  %v2079_v15 = vmul.bf16 %v2077_v63, %v3138_v40  ;;  %v2664_v37 = vld [vmem:[%s3412_s12 + $0x10] sm:$0xff]   ;;  %v2665_v55 = vld [vmem:[%s3412_s12 + $0x8] sm:$0xff]  }
 0xd8e   : > { %v1920_v38 = vsel %vm1066_vm5, %v2654_v18, %v2659_v3  ;;  %v1922_v39 = vsel %vm1066_vm5, %v2659_v3, %v2654_v18  ;;  %v1919_v16 = vsel %vm1066_vm5, %v2653_v2, %v2658_v4  ;;  %v1921_v19 = vsel %vm1066_vm5, %v2658_v4, %v2653_v2 }
 0xd8f   : > { %v1923_v20 = vpack.c.bf16 %v1920_v38, %v1919_v16  ;;  %2096 = vmatprep.subr.bf16.mxu1 %v2080_v14  ;;  %v1924_v48 = vpack.c.bf16 %v1922_v39, %v1921_v19 }
 0xd90   : > { %1942 = vmatpush1.bf16.msra.mxu0 %v1909_v56  ;;  %2097 = vmatpush1.bf16.msra.mxu1 %v2079_v15 }
 0xd91   : > { %v1926_v40 = vmul.bf16 %v1924_v48, %v3033_v35  ;;  %v1925_v52 = vmul.bf16 %v1923_v20, %v3036_v36  ;;  %2378 = vmatprep.subr.msk.bf16.mxu1 %vm628_vm2, %v2158_v13  ;;  %v2666_v35 = vld [vmem:[%s3414_s14] sm:$0xff]  }
 0xd93   : > { %1943 = vmatprep.subr.bf16.mxu0 %v1926_v40  ;;  %2376 = vmatmul.mubr.msk.bf16.vlgmr.msra.gmra.mrb[12].mxu1 %vm1935_vm14, %v2664_v37 }
 0xd94   : > { %1944 = vmatpush1.bf16.msra.mxu0 %v1925_v52  ;;  %2186 = vmatpush1.bf16.msra.mxu1 %v2180_v7 }
 0xd95   : > { %2217 = vmatprep.mubr.bf16.mxu1 %v2765_v6 }
 0xd97   : > { %2370 = vmatmul.mubr.msk.bf16.vlgmr.msra.gmra.mrb[12].mxu0 %vm1935_vm14, %v2665_v55 }
 0xd9b   : > { %v2144_v36 = vpop.permute.xlu0 %2143 }
 0xd9c   : > { %v2149_v56 = vpop.permute.xlu1 %2148 }
 0xd9f   : > { %2379 = vmatmul.mubr.msk.bf16.vlgmr.msra.gmra.mrb[12].mxu1 %vm550_vm1, %v2666_v35  ;;  %v2164_v29 = vpop.permute.xlu0 %2163 }
 0xda0   : > { %v2169_v28 = vpop.permute.xlu1 %2168 }
 0xe6a   : > { %v1973_v0 = vpop.f32.mrb[12].mxu0 }
 0xe6b   : > { %v1975_v50 = vpop.f32.mrb[13].mxu0  ;;  %v2458_v22 = vadd.f32 %v2144_v36, %v1973_v0 }
 0xe6c   : > { %v1977_v21 = vpop.f32.mrb[14].mxu0  ;;  %v2461_v25 = vadd.f32 %v2144_v36, %v1975_v50 }
 0xe6d   : > { %v1979_v23 = vpop.f32.mrb[15].mxu0  ;;  %v2464_v6 = vadd.f32 %v2149_v56, %v1977_v21  ;;  %v2459_v27 = vadd.f32 %v2458_v22, %v2164_v29 }
 0xe6e   : > { %v2467_v33 = vadd.f32 %v2149_v56, %v1979_v23  ;;  %v2462_v32 = vadd.f32 %v2461_v25, %v2164_v29 }
 0xe6f   : > { %v2465_v34 = vadd.f32 %v2464_v6, %v2169_v28 }
 0xe70   : > { %v2468_v9 = vadd.f32 %v2467_v33, %v2169_v28 }
 0xe72   : > { %v2219_v31 = vpop.f32.mrb[12].mxu1 }
 0xe73   : > { %v2460_v26 = vadd.f32 %v2459_v27, %v2219_v31  ;;  %v2221_v30 = vpop.f32.mrb[13].mxu1 }
 0xe74   : > { %v2463_v41 = vadd.f32 %v2462_v32, %v2221_v30  ;;  %v2223_v42 = vpop.f32.mrb[14].mxu1 }
 0xe75   : > { %2232 = vst [vmem:[%s529_s3] sm:$0xff] %v2460_v26  ;;  %v2466_v17 = vadd.f32 %v2465_v34, %v2223_v42  ;;  %v2225_v51 = vpop.f32.mrb[15].mxu1 }
 0xe76   : > { %2233 = vst [vmem:[%s529_s3 + $0x8] sm:$0xff] %v2463_v41  ;;  %v2469_v43 = vadd.f32 %v2468_v9, %v2225_v51 }
 0xe77   : > { %2234 = vst [vmem:[%s529_s3 + $0x10] sm:$0xff] %v2466_v17 }
 0xe78   : > { %2235 = vst [vmem:[%s529_s3 + $0x18] sm:$0xff] %v2469_v43 }
 0xe79   : > { %2712 = shalt.err (!%p2709_p3)
}
 0xe7a   : > { %s2713_s5 = scalar_lea.hbm %s3354_s19, 512  ;;  %s2717_s20 = scalar_lea.hbm %s3416_s16, 1024 }
 0xe7b   : > { %p2714_p4 = scmp.ne.s32.totalorder %s3354_s19, %s2713_s5  ;;  %p2718_p9 = scmp.lt.u32.totalorder %s3354_s19, %s3416_s16 }
 0xe7c   : > { %p2719_p10 = scmp.lt.u32.totalorder %s2717_s20, %s2713_s5  ;;  %p2721_p12 = scmp.lt.u32.totalorder %s2713_s5, %s3354_s19 }
 0xe7d   : > { %p2715_p7 = pnand %p2714_p4, %p2900_p5 }
 0xe7e   : > { %p2720_p11 = por %p2719_p10, %p2718_p9 }
 0xe7f   : > { %p2716_p8 = pneg %p2715_p7 }
 0xe80   : > { %p2722_p13 = por %p2721_p12, %p2720_p11 }
 0xe82   : > { %p2723_p0 = pnand %p2722_p13, %p2716_p8 }
 0xe84   : > { %2726 = shalt.err (!%p2723_p0)
}
 0xe85   : > { %s2776_s4 = smov 256   ;;  %s3449_s26 = smov 16  }
 0xe86   : > { %2486 = dma.vmem_to_hbm [thread:$0]  (%p2900_p5), %s3349_s28, 512, %s3354_s19, %s3358_s25, %s2776_s4, %s2776_s4, %s3449_s26  }
 0xe87 PF: > { %p2492_p1 = scmp.ge.s32.totalorder %s2761_s24, 2  ;;  %s2265_s30 = sand.u32 1, %s2749_s21  }
 0xe88   : > { %s2266_s5 = scalar_lea.sflag [#allocation3], %s2265_s30 }
 0xe89   : > { %p2489_p2 = pnand %p2492_p1, %p2904_p6 }
 0xe8b   : > { %2744 = dma.done.wait (!%p2489_p2), %s2266_s5, 512  }
 0xe8c   : > { %2746 = vsyncadd (!%p2489_p2), %s2266_s5, 4294966784  ;;  %s3450_s3 = sld [smem:[#allocation5_spill]]  ;;  %s3451_s23 = sld [smem:[#allocation6_spill]] }
 0xe8d   : > { %p26_p3 = scmp.ge.s32.totalorder %s2887_s27, 4   ;;  %s3452_s21 = smov %s2753_s22 }
 0xe8e   : > { %s3454_s24 = smov %s2887_s27 }
 0xe8f   :  { %28 = sbr.rel (!%p26_p3) target bundleno = 8 (0x8), region = 133 }
 0xe92   : > { %s3453_s22 = smov %s3450_s3 }
 0xe96   :  { %2271 = vsyncpa [#allocation3], 1 }
 0xe97   :  { %2273 = vsyncpa [#allocation3 + $0x1], 1 }

</bundles_post_ra>
